<compile_context>
chip_gen: v7x
topology: tpu7x:2x2x1
jax: 0.10.0
libtpu: 0.0.40
codegen_flags: <defaults>
</compile_context>

<pallas_src>
import functools
import numpy as np
import jax
import jax.numpy as jnp
from jax.experimental import pallas as pl
from jax.experimental.pallas import tpu as pltpu


# MXU operand dtype (accumulation is always f32).  Set to jnp.float32 for
# bit-accurate validation against an f32 reference.
MXU_COMPUTE_DTYPE = jnp.bfloat16


# --------------------------------------------------------------------------------------
# Fused whole-network kernel
# --------------------------------------------------------------------------------------

def _gencoder_kernel(*refs, layer_has_self, n_heads, eps, compute_dtype):
    """Entire Gencoder forward for the whole batch, entirely in VMEM.

    Ref order (inputs): x(B,S,E), y(B,S,E), pos(S,E), then per layer:
      vecs(K,E),
      [self-attn: w_qkv(E,3HD), b_qkv(1,3HD), w_o(HD,E)],
      cross-attn: w_q(E,HD), w_kv(E,2HD), b_qkv(1,3HD), w_o(HD,E),
      ffn: w1(E,E), w2(E,E).
    Last ref is the output (B*S, E).
    """
    o_ref = refs[-1]
    it = iter(refs[:-1])
    cd = compute_dtype

    def nxt():
        return next(it)[...]

    x = nxt()                          # (B, S, E) f32 decoding embeddings
    y = nxt()                          # (B, S, E) f32 encoder-stack output
    pos = nxt()                        # (S, E)    f32 sinusoidal positional encoding
    B, S, E = x.shape

    # Fused positional add; fold batch into rows for all row-wise matmuls / LN.
    x2 = (x + pos[None]).reshape(B * S, E)        # residual stream, f32
    y2 = y.reshape(B * S, E).astype(cd)           # cast once, reused by every layer

    def layer_norm(t, g, b):
        mu = jnp.mean(t, axis=-1, keepdims=True)
        tc = t - mu
        var = jnp.mean(tc * tc, axis=-1, keepdims=True)   # biased, like torch LayerNorm
        return tc * jax.lax.rsqrt(var + eps) * g + b

    def mh_attention(q, k, v):
        # q, k, v: (B*S, H*D) f32.  Per-(batch, head) softmax attention; heads are
        # only split here — projections / output matmul stay head-fused.
        HD = q.shape[-1]
        D = HD // n_heads
        qc, kc, vc = q.astype(cd), k.astype(cd), v.astype(cd)
        outs = []
        for h in range(n_heads):                  # tiny static loop (H*S*S elems)
            sl = slice(h * D, (h + 1) * D)
            qh = qc[:, sl].reshape(B, S, D)
            kh = kc[:, sl].reshape(B, S, D)
            vh = vc[:, sl].reshape(B, S, D)
            s = jnp.einsum("bqd,bkd->bqk", qh, kh,
                           preferred_element_type=jnp.float32)    # (B,S,S) f32
            s = s - jnp.max(s, axis=-1, keepdims=True)
            p = jnp.exp(s)
            p = p * pl.reciprocal(jnp.sum(p, axis=-1, keepdims=True), approx=True)
            o = jnp.einsum("bqk,bkd->bqd", p.astype(cd), vh,
                           preferred_element_type=jnp.float32)
            outs.append(o.reshape(B * S, D))
        return jnp.concatenate(outs, axis=-1)                      # (B*S, H*D) f32

    for has_self in layer_has_self:
        vecs = nxt()                   # (K, E) f32: [bo, ln_g, ln_b]* + [ff_b1, ff_b2, ln_g, ln_b]
        r = 0

        if has_self:                   # DecodingBlock: self-attention sub-block
            w_qkv, b_qkv, w_o = nxt(), nxt(), nxt()
            HD = w_qkv.shape[-1] // 3
            qkv = jnp.dot(x2.astype(cd), w_qkv,
                          preferred_element_type=jnp.float32) + b_qkv
            a = mh_attention(qkv[:, :HD], qkv[:, HD:2 * HD], qkv[:, 2 * HD:])
            proj = jnp.dot(a.astype(cd), w_o,
                           preferred_element_type=jnp.float32) + vecs[r:r + 1]
            x2 = layer_norm(proj + x2, vecs[r + 1:r + 2], vecs[r + 2:r + 3])
            r += 3

        # cross-attention sub-block (queries from x, keys/values from y).
        # 1/sqrt(D) is pre-folded into w_q / b_q at parameter-prep time.
        w_q, w_kv, b_qkv, w_o = nxt(), nxt(), nxt(), nxt()
        HD = w_q.shape[-1]
        q = jnp.dot(x2.astype(cd), w_q,
                    preferred_element_type=jnp.float32) + b_qkv[:, :HD]
        kv = jnp.dot(y2, w_kv,
                     preferred_element_type=jnp.float32) + b_qkv[:, HD:]
        a = mh_attention(q, kv[:, :HD], kv[:, HD:])
        proj = jnp.dot(a.astype(cd), w_o,
                       preferred_element_type=jnp.float32) + vecs[r:r + 1]
        x2 = layer_norm(proj + x2, vecs[r + 1:r + 2], vecs[r + 2:r + 3])
        r += 3

        # feed-forward sub-block (hidden = emb_size, ReLU)
        w1, w2 = nxt(), nxt()
        hdn = jnp.maximum(
            jnp.dot(x2.astype(cd), w1,
                    preferred_element_type=jnp.float32) + vecs[r:r + 1], 0.0)
        f = jnp.dot(hdn.astype(cd), w2,
                    preferred_element_type=jnp.float32) + vecs[r + 1:r + 2]
        x2 = layer_norm(f + x2, vecs[r + 2:r + 3], vecs[r + 3:r + 4])

    o_ref[...] = x2                    # (B*S, E) f32


# --------------------------------------------------------------------------------------
# Model forward (single pallas_call for the whole network)
# --------------------------------------------------------------------------------------

def gencoder_forward(params, x, y, x_mask=None, y_mask=None):
    """x: (B,S,E) or None (-> learned init_vec), y: (B,S,E).  Returns (B,S,E) f32."""
    # TODO(synk): additive attention masks (x_mask / y_mask, use_mask) and
    # prob_embs/prob_attn sampling are not wired into the fused kernel; the
    # default forward path (masks=None, prob_*=False) is implemented.
    if x is None:
        B = y.shape[0]
        x = jnp.broadcast_to(params["init_vec"],
                             (B, params["seq_len"], params["emb_size"]))
    B, S, E = x.shape
    layers = params["layers"]

    inputs = [x, y, params["pos_enc"]]
    layer_has_self = []
    for lyr in layers:
        has_self = lyr["has_self"]
        layer_has_self.append(has_self)
        inputs.append(lyr["vecs"])
        if has_self:
            inputs += [lyr["sa_w_qkv"], lyr["sa_b_qkv"], lyr["sa_w_o"]]
        inputs += [lyr["ca_w_q"], lyr["ca_w_kv"], lyr["ca_b_qkv"], lyr["ca_w_o"],
                   lyr["ff_w1"], lyr["ff_w2"]]

    kernel = functools.partial(
        _gencoder_kernel,
        layer_has_self=tuple(layer_has_self),
        n_heads=params["n_heads"],
        eps=1e-5,
        compute_dtype=params["mxu_dtype"])

    vmem_spec = pl.BlockSpec(memory_space=pltpu.MemorySpace.VMEM)
    out2d = pl.pallas_call(
        kernel,
        out_shape=jax.ShapeDtypeStruct((B * S, E), jnp.float32),
        in_specs=[vmem_spec] * len(inputs),
        out_specs=vmem_spec,
        compiler_params=pltpu.CompilerParams(
            vmem_limit_bytes=32 * 1024 * 1024),
    )(*inputs)
    return out2d.reshape(B, S, E)


# --------------------------------------------------------------------------------------
# Deterministic parameter initialization (weights pre-packed / pre-cast for the kernel)
# --------------------------------------------------------------------------------------

def sinusoidal_pos_encoding(seq_len, emb_size):
    pos = np.arange(seq_len, dtype=np.float32)[:, None]
    div = np.exp(np.arange(0, emb_size, 2, dtype=np.float32)
                 * -(np.log(10000.0) / emb_size))
    pe = np.zeros((seq_len, emb_size), dtype=np.float32)
    pe[:, 0::2] = np.sin(pos * div)
    pe[:, 1::2] = np.cos(pos * div)
    return jnp.asarray(pe)


def init_params(key, seq_len, emb_size, attn_size, n_layers, n_heads,
                mxu_dtype=MXU_COMPUTE_DTYPE):
    assert attn_size % n_heads == 0
    HD = attn_size
    D = attn_size // n_heads
    scale = 1.0 / float(np.sqrt(D))          # folded into Q projection below
    keys = iter(jax.random.split(key, 256))

    def rnd(shape, fan_in):
        return jax.random.normal(next(keys), shape, jnp.float32) / np.sqrt(fan_in)

    ones = jnp.ones((1, emb_size), jnp.float32)
    zeros = jnp.zeros((1, emb_size), jnp.float32)

    def attn_weights():
        # Head-fused projection weights (E, H*D); 1/sqrt(D) folded into Q.
        wq = rnd((emb_size, HD), emb_size) * scale
        wk = rnd((emb_size, HD), emb_size)
        wv = rnd((emb_size, HD), emb_size)
        wo = rnd((HD, emb_size), HD)
        bq = jnp.zeros((1, HD), jnp.float32)   # zero bias (scale fold is a no-op)
        bk = jnp.zeros((1, HD), jnp.float32)
        bv = jnp.zeros((1, HD), jnp.float32)
        bo = zeros
        return wq, wk, wv, wo, bq, bk, bv, bo

    layers = []
    for li in range(n_layers):
        has_self = li > 0                      # first block is the GencodingBlock
        lyr = {"has_self": has_self}
        vec_rows = []

        if has_self:                           # DecodingBlock self-attention
            wq, wk, wv, wo, bq, bk, bv, bo = attn_weights()
            lyr["sa_w_qkv"] = jnp.concatenate([wq, wk, wv], axis=1).astype(mxu_dtype)
            lyr["sa_b_qkv"] = jnp.concatenate([bq, bk, bv], axis=1)
            lyr["sa_w_o"] = wo.astype(mxu_dtype)
            vec_rows += [bo, ones, zeros]      # sa_bo, ln_sa_gamma, ln_sa_beta

        wq, wk, wv, wo, bq, bk, bv, bo = attn_weights()   # cross-attention
        lyr["ca_w_q"] = wq.astype(mxu_dtype)
        lyr["ca_w_kv"] = jnp.concatenate([wk, wv], axis=1).astype(mxu_dtype)
        lyr["ca_b_qkv"] = jnp.concatenate([bq, bk, bv], axis=1)
        lyr["ca_w_o"] = wo.astype(mxu_dtype)
        vec_rows += [bo, ones, zeros]          # ca_bo, ln_ca_gamma, ln_ca_beta

        lyr["ff_w1"] = rnd((emb_size, emb_size), emb_size).astype(mxu_dtype)
        lyr["ff_w2"] = rnd((emb_size, emb_size), emb_size).astype(mxu_dtype)
        vec_rows += [zeros, zeros, ones, zeros]  # ff_b1, ff_b2, ln_ff_gamma, ln_ff_beta

        lyr["vecs"] = jnp.concatenate(vec_rows, axis=0)   # (7 or 10, E) f32
        layers.append(lyr)

    init_vec = rnd((1, 1, emb_size), emb_size)   # randn / sqrt(vec_size), like the module

    return dict(
        seq_len=seq_len,
        emb_size=emb_size,
        n_heads=n_heads,
        mxu_dtype=mxu_dtype,
        init_vec=init_vec,
        pos_enc=sinusoidal_pos_encoding(seq_len, emb_size),
        layers=layers,
    )


# --------------------------------------------------------------------------------------

if __name__ == "__main__":
    B, S, E, A, H, L = 2, 8, 32, 32, 4, 2   # batch, seq_len, emb_size, attn_size, heads, layers

    key = jax.random.PRNGKey(0)
    kp, kx, ky = jax.random.split(key, 3)
    params = init_params(kp, seq_len=S, emb_size=E, attn_size=A, n_layers=L, n_heads=H)

    x = jax.random.normal(kx, (B, S, E), jnp.float32)   # decoding embeddings
    y = jax.random.normal(ky, (B, S, E), jnp.float32)   # encoder-stack output

    fwd = jax.jit(functools.partial(gencoder_forward, params))
    out = jax.block_until_ready(fwd(x, y))

    assert out.shape == (B, S, E) and out.dtype == jnp.float32
    assert bool(jnp.all(jnp.isfinite(out)))
    print("KERNEL_OK")
</pallas_src>

<mosaic_0001>
module attributes {stable_mosaic.version = 11 : i64} {
  func.func @_gencoder_kernel(%arg0: memref<2x8x32xf32, #tpu.memory_space<vmem>>, %arg1: memref<2x8x32xf32, #tpu.memory_space<vmem>>, %arg2: memref<8x32xf32, #tpu.memory_space<vmem>>, %arg3: memref<7x32xf32, #tpu.memory_space<vmem>>, %arg4: memref<32x32xbf16, #tpu.memory_space<vmem>>, %arg5: memref<32x64xbf16, #tpu.memory_space<vmem>>, %arg6: memref<1x96xf32, #tpu.memory_space<vmem>>, %arg7: memref<32x32xbf16, #tpu.memory_space<vmem>>, %arg8: memref<32x32xbf16, #tpu.memory_space<vmem>>, %arg9: memref<32x32xbf16, #tpu.memory_space<vmem>>, %arg10: memref<10x32xf32, #tpu.memory_space<vmem>>, %arg11: memref<32x96xbf16, #tpu.memory_space<vmem>>, %arg12: memref<1x96xf32, #tpu.memory_space<vmem>>, %arg13: memref<32x32xbf16, #tpu.memory_space<vmem>>, %arg14: memref<32x32xbf16, #tpu.memory_space<vmem>>, %arg15: memref<32x64xbf16, #tpu.memory_space<vmem>>, %arg16: memref<1x96xf32, #tpu.memory_space<vmem>>, %arg17: memref<32x32xbf16, #tpu.memory_space<vmem>>, %arg18: memref<32x32xbf16, #tpu.memory_space<vmem>>, %arg19: memref<32x32xbf16, #tpu.memory_space<vmem>>, %arg20: memref<16x32xf32, #tpu.memory_space<vmem>>) attributes {dimension_semantics = [], scalar_prefetch = 0 : i64, scratch_operands = 0 : i64, tpu.core_type = #tpu.core_type<tc>} {
    %c0 = arith.constant 0 : index
    %c0_0 = arith.constant 0 : index
    %c0_1 = arith.constant 0 : index
    %0 = vector.load %arg0[%c0, %c0_0, %c0_1] : memref<2x8x32xf32, #tpu.memory_space<vmem>>, vector<2x8x32xf32>
    %c0_2 = arith.constant 0 : index
    %c0_3 = arith.constant 0 : index
    %c0_4 = arith.constant 0 : index
    %1 = vector.load %arg1[%c0_2, %c0_3, %c0_4] : memref<2x8x32xf32, #tpu.memory_space<vmem>>, vector<2x8x32xf32>
    %c0_5 = arith.constant 0 : index
    %c0_6 = arith.constant 0 : index
    %2 = vector.load %arg2[%c0_5, %c0_6] : memref<8x32xf32, #tpu.memory_space<vmem>>, vector<8x32xf32>
    %3 = vector.shape_cast %2 : vector<8x32xf32> to vector<1x8x32xf32>
    %4 = vector.broadcast %3 : vector<1x8x32xf32> to vector<2x8x32xf32>
    %5 = arith.addf %0, %4 : vector<2x8x32xf32>
    %6 = vector.shape_cast %5 : vector<2x8x32xf32> to vector<16x32xf32>
    %7 = vector.shape_cast %1 : vector<2x8x32xf32> to vector<16x32xf32>
    %8 = arith.truncf %7 : vector<16x32xf32> to vector<16x32xbf16>
    %c0_7 = arith.constant 0 : index
    %c0_8 = arith.constant 0 : index
    %9 = vector.load %arg3[%c0_7, %c0_8] : memref<7x32xf32, #tpu.memory_space<vmem>>, vector<7x32xf32>
    %c0_9 = arith.constant 0 : index
    %c0_10 = arith.constant 0 : index
    %10 = vector.load %arg4[%c0_9, %c0_10] : memref<32x32xbf16, #tpu.memory_space<vmem>>, vector<32x32xbf16>
    %c0_11 = arith.constant 0 : index
    %c0_12 = arith.constant 0 : index
    %11 = vector.load %arg5[%c0_11, %c0_12] : memref<32x64xbf16, #tpu.memory_space<vmem>>, vector<32x64xbf16>
    %c0_13 = arith.constant 0 : index
    %c0_14 = arith.constant 0 : index
    %12 = vector.load %arg6[%c0_13, %c0_14] : memref<1x96xf32, #tpu.memory_space<vmem>>, vector<1x96xf32>
    %c0_15 = arith.constant 0 : index
    %c0_16 = arith.constant 0 : index
    %13 = vector.load %arg7[%c0_15, %c0_16] : memref<32x32xbf16, #tpu.memory_space<vmem>>, vector<32x32xbf16>
    %14 = arith.truncf %6 : vector<16x32xf32> to vector<16x32xbf16>
    %cst = arith.constant dense<0.000000e+00> : vector<16x32xf32>
    %15 = tpu.matmul %14, %10, %cst {dimension_numbers = #tpu.dot_dimension_numbers<[1], [0], [0], [1], [0, 0, 1, 1], [], []>} : vector<16x32xbf16>, vector<32x32xbf16>, vector<16x32xf32> -> vector<16x32xf32>
    %16 = vector.extract_strided_slice %12 {offsets = [0, 0], sizes = [1, 32], strides = [1, 1]} : vector<1x96xf32> to vector<1x32xf32>
    %17 = vector.broadcast %16 : vector<1x32xf32> to vector<16x32xf32>
    %18 = arith.addf %15, %17 : vector<16x32xf32>
    %cst_17 = arith.constant dense<0.000000e+00> : vector<16x64xf32>
    %19 = tpu.matmul %8, %11, %cst_17 {dimension_numbers = #tpu.dot_dimension_numbers<[1], [0], [0], [1], [0, 0, 1, 1], [], []>} : vector<16x32xbf16>, vector<32x64xbf16>, vector<16x64xf32> -> vector<16x64xf32>
    %20 = vector.extract_strided_slice %12 {offsets = [0, 32], sizes = [1, 64], strides = [1, 1]} : vector<1x96xf32> to vector<1x64xf32>
    %21 = vector.broadcast %20 : vector<1x64xf32> to vector<16x64xf32>
    %22 = arith.addf %19, %21 : vector<16x64xf32>
    %23 = vector.extract_strided_slice %22 {offsets = [0, 0], sizes = [16, 32], strides = [1, 1]} : vector<16x64xf32> to vector<16x32xf32>
    %24 = vector.extract_strided_slice %22 {offsets = [0, 32], sizes = [16, 32], strides = [1, 1]} : vector<16x64xf32> to vector<16x32xf32>
    %25 = arith.truncf %18 : vector<16x32xf32> to vector<16x32xbf16>
    %26 = arith.truncf %23 : vector<16x32xf32> to vector<16x32xbf16>
    %27 = arith.truncf %24 : vector<16x32xf32> to vector<16x32xbf16>
    %28 = vector.extract_strided_slice %25 {offsets = [0, 0], sizes = [16, 8], strides = [1, 1]} : vector<16x32xbf16> to vector<16x8xbf16>
    %29 = vector.shape_cast %28 : vector<16x8xbf16> to vector<2x8x8xbf16>
    %30 = vector.extract_strided_slice %26 {offsets = [0, 0], sizes = [16, 8], strides = [1, 1]} : vector<16x32xbf16> to vector<16x8xbf16>
    %31 = vector.shape_cast %30 : vector<16x8xbf16> to vector<2x8x8xbf16>
    %32 = vector.extract_strided_slice %27 {offsets = [0, 0], sizes = [16, 8], strides = [1, 1]} : vector<16x32xbf16> to vector<16x8xbf16>
    %33 = vector.shape_cast %32 : vector<16x8xbf16> to vector<2x8x8xbf16>
    "tpu.trace_start"() <{level = 10 : i32, message = "bqd,bkd->bqk"}> : () -> ()
    %cst_18 = arith.constant dense<0.000000e+00> : vector<2x8x8xf32>
    %34 = tpu.matmul %29, %31, %cst_18 {dimension_numbers = #tpu.dot_dimension_numbers<[2], [2], [1], [1], [0, 0, 0, 1, 1, 1], [0], [0]>} : vector<2x8x8xbf16>, vector<2x8x8xbf16>, vector<2x8x8xf32> -> vector<2x8x8xf32>
    "tpu.trace_stop"() : () -> ()
    %cst_19 = arith.constant dense<0xFF800000> : vector<2x8xf32>
    %35 = vector.multi_reduction <maximumf>, %34, %cst_19 [2] : vector<2x8x8xf32> to vector<2x8xf32>
    %36 = vector.shape_cast %35 : vector<2x8xf32> to vector<2x8x1xf32>
    %37 = vector.broadcast %36 : vector<2x8x1xf32> to vector<2x8x8xf32>
    %38 = arith.subf %34, %37 : vector<2x8x8xf32>
    %39 = math.exp %38 : vector<2x8x8xf32>
    %cst_20 = arith.constant dense<0.000000e+00> : vector<2x8xf32>
    %40 = vector.multi_reduction <add>, %39, %cst_20 [2] : vector<2x8x8xf32> to vector<2x8xf32>
    %41 = vector.shape_cast %40 : vector<2x8xf32> to vector<2x8x1xf32>
    %42 = tpu.reciprocal %41 {approx = true} : vector<2x8x1xf32> -> vector<2x8x1xf32>
    %43 = vector.broadcast %42 : vector<2x8x1xf32> to vector<2x8x8xf32>
    %44 = arith.mulf %39, %43 : vector<2x8x8xf32>
    %45 = arith.truncf %44 : vector<2x8x8xf32> to vector<2x8x8xbf16>
    "tpu.trace_start"() <{level = 10 : i32, message = "bqk,bkd->bqd"}> : () -> ()
    %cst_21 = arith.constant dense<0.000000e+00> : vector<2x8x8xf32>
    %46 = tpu.matmul %45, %33, %cst_21 {dimension_numbers = #tpu.dot_dimension_numbers<[2], [1], [1], [2], [0, 0, 0, 1, 1, 2], [0], [0]>} : vector<2x8x8xbf16>, vector<2x8x8xbf16>, vector<2x8x8xf32> -> vector<2x8x8xf32>
    "tpu.trace_stop"() : () -> ()
    %47 = vector.shape_cast %46 : vector<2x8x8xf32> to vector<16x8xf32>
    %48 = vector.extract_strided_slice %25 {offsets = [0, 8], sizes = [16, 8], strides = [1, 1]} : vector<16x32xbf16> to vector<16x8xbf16>
    %49 = vector.shape_cast %48 : vector<16x8xbf16> to vector<2x8x8xbf16>
    %50 = vector.extract_strided_slice %26 {offsets = [0, 8], sizes = [16, 8], strides = [1, 1]} : vector<16x32xbf16> to vector<16x8xbf16>
    %51 = vector.shape_cast %50 : vector<16x8xbf16> to vector<2x8x8xbf16>
    %52 = vector.extract_strided_slice %27 {offsets = [0, 8], sizes = [16, 8], strides = [1, 1]} : vector<16x32xbf16> to vector<16x8xbf16>
    %53 = vector.shape_cast %52 : vector<16x8xbf16> to vector<2x8x8xbf16>
    "tpu.trace_start"() <{level = 10 : i32, message = "bqd,bkd->bqk"}> : () -> ()
    %cst_22 = arith.constant dense<0.000000e+00> : vector<2x8x8xf32>
    %54 = tpu.matmul %49, %51, %cst_22 {dimension_numbers = #tpu.dot_dimension_numbers<[2], [2], [1], [1], [0, 0, 0, 1, 1, 1], [0], [0]>} : vector<2x8x8xbf16>, vector<2x8x8xbf16>, vector<2x8x8xf32> -> vector<2x8x8xf32>
    "tpu.trace_stop"() : () -> ()
    %cst_23 = arith.constant dense<0xFF800000> : vector<2x8xf32>
    %55 = vector.multi_reduction <maximumf>, %54, %cst_23 [2] : vector<2x8x8xf32> to vector<2x8xf32>
    %56 = vector.shape_cast %55 : vector<2x8xf32> to vector<2x8x1xf32>
    %57 = vector.broadcast %56 : vector<2x8x1xf32> to vector<2x8x8xf32>
    %58 = arith.subf %54, %57 : vector<2x8x8xf32>
    %59 = math.exp %58 : vector<2x8x8xf32>
    %cst_24 = arith.constant dense<0.000000e+00> : vector<2x8xf32>
    %60 = vector.multi_reduction <add>, %59, %cst_24 [2] : vector<2x8x8xf32> to vector<2x8xf32>
    %61 = vector.shape_cast %60 : vector<2x8xf32> to vector<2x8x1xf32>
    %62 = tpu.reciprocal %61 {approx = true} : vector<2x8x1xf32> -> vector<2x8x1xf32>
    %63 = vector.broadcast %62 : vector<2x8x1xf32> to vector<2x8x8xf32>
    %64 = arith.mulf %59, %63 : vector<2x8x8xf32>
    %65 = arith.truncf %64 : vector<2x8x8xf32> to vector<2x8x8xbf16>
    "tpu.trace_start"() <{level = 10 : i32, message = "bqk,bkd->bqd"}> : () -> ()
    %cst_25 = arith.constant dense<0.000000e+00> : vector<2x8x8xf32>
    %66 = tpu.matmul %65, %53, %cst_25 {dimension_numbers = #tpu.dot_dimension_numbers<[2], [1], [1], [2], [0, 0, 0, 1, 1, 2], [0], [0]>} : vector<2x8x8xbf16>, vector<2x8x8xbf16>, vector<2x8x8xf32> -> vector<2x8x8xf32>
    "tpu.trace_stop"() : () -> ()
    %67 = vector.shape_cast %66 : vector<2x8x8xf32> to vector<16x8xf32>
    %68 = vector.extract_strided_slice %25 {offsets = [0, 16], sizes = [16, 8], strides = [1, 1]} : vector<16x32xbf16> to vector<16x8xbf16>
    %69 = vector.shape_cast %68 : vector<16x8xbf16> to vector<2x8x8xbf16>
    %70 = vector.extract_strided_slice %26 {offsets = [0, 16], sizes = [16, 8], strides = [1, 1]} : vector<16x32xbf16> to vector<16x8xbf16>
    %71 = vector.shape_cast %70 : vector<16x8xbf16> to vector<2x8x8xbf16>
    %72 = vector.extract_strided_slice %27 {offsets = [0, 16], sizes = [16, 8], strides = [1, 1]} : vector<16x32xbf16> to vector<16x8xbf16>
    %73 = vector.shape_cast %72 : vector<16x8xbf16> to vector<2x8x8xbf16>
    "tpu.trace_start"() <{level = 10 : i32, message = "bqd,bkd->bqk"}> : () -> ()
    %cst_26 = arith.constant dense<0.000000e+00> : vector<2x8x8xf32>
    %74 = tpu.matmul %69, %71, %cst_26 {dimension_numbers = #tpu.dot_dimension_numbers<[2], [2], [1], [1], [0, 0, 0, 1, 1, 1], [0], [0]>} : vector<2x8x8xbf16>, vector<2x8x8xbf16>, vector<2x8x8xf32> -> vector<2x8x8xf32>
    "tpu.trace_stop"() : () -> ()
    %cst_27 = arith.constant dense<0xFF800000> : vector<2x8xf32>
    %75 = vector.multi_reduction <maximumf>, %74, %cst_27 [2] : vector<2x8x8xf32> to vector<2x8xf32>
    %76 = vector.shape_cast %75 : vector<2x8xf32> to vector<2x8x1xf32>
    %77 = vector.broadcast %76 : vector<2x8x1xf32> to vector<2x8x8xf32>
    %78 = arith.subf %74, %77 : vector<2x8x8xf32>
    %79 = math.exp %78 : vector<2x8x8xf32>
    %cst_28 = arith.constant dense<0.000000e+00> : vector<2x8xf32>
    %80 = vector.multi_reduction <add>, %79, %cst_28 [2] : vector<2x8x8xf32> to vector<2x8xf32>
    %81 = vector.shape_cast %80 : vector<2x8xf32> to vector<2x8x1xf32>
    %82 = tpu.reciprocal %81 {approx = true} : vector<2x8x1xf32> -> vector<2x8x1xf32>
    %83 = vector.broadcast %82 : vector<2x8x1xf32> to vector<2x8x8xf32>
    %84 = arith.mulf %79, %83 : vector<2x8x8xf32>
    %85 = arith.truncf %84 : vector<2x8x8xf32> to vector<2x8x8xbf16>
    "tpu.trace_start"() <{level = 10 : i32, message = "bqk,bkd->bqd"}> : () -> ()
    %cst_29 = arith.constant dense<0.000000e+00> : vector<2x8x8xf32>
    %86 = tpu.matmul %85, %73, %cst_29 {dimension_numbers = #tpu.dot_dimension_numbers<[2], [1], [1], [2], [0, 0, 0, 1, 1, 2], [0], [0]>} : vector<2x8x8xbf16>, vector<2x8x8xbf16>, vector<2x8x8xf32> -> vector<2x8x8xf32>
    "tpu.trace_stop"() : () -> ()
    %87 = vector.shape_cast %86 : vector<2x8x8xf32> to vector<16x8xf32>
    %88 = vector.extract_strided_slice %25 {offsets = [0, 24], sizes = [16, 8], strides = [1, 1]} : vector<16x32xbf16> to vector<16x8xbf16>
    %89 = vector.shape_cast %88 : vector<16x8xbf16> to vector<2x8x8xbf16>
    %90 = vector.extract_strided_slice %26 {offsets = [0, 24], sizes = [16, 8], strides = [1, 1]} : vector<16x32xbf16> to vector<16x8xbf16>
    %91 = vector.shape_cast %90 : vector<16x8xbf16> to vector<2x8x8xbf16>
    %92 = vector.extract_strided_slice %27 {offsets = [0, 24], sizes = [16, 8], strides = [1, 1]} : vector<16x32xbf16> to vector<16x8xbf16>
    %93 = vector.shape_cast %92 : vector<16x8xbf16> to vector<2x8x8xbf16>
    "tpu.trace_start"() <{level = 10 : i32, message = "bqd,bkd->bqk"}> : () -> ()
    %cst_30 = arith.constant dense<0.000000e+00> : vector<2x8x8xf32>
    %94 = tpu.matmul %89, %91, %cst_30 {dimension_numbers = #tpu.dot_dimension_numbers<[2], [2], [1], [1], [0, 0, 0, 1, 1, 1], [0], [0]>} : vector<2x8x8xbf16>, vector<2x8x8xbf16>, vector<2x8x8xf32> -> vector<2x8x8xf32>
    "tpu.trace_stop"() : () -> ()
    %cst_31 = arith.constant dense<0xFF800000> : vector<2x8xf32>
    %95 = vector.multi_reduction <maximumf>, %94, %cst_31 [2] : vector<2x8x8xf32> to vector<2x8xf32>
    %96 = vector.shape_cast %95 : vector<2x8xf32> to vector<2x8x1xf32>
    %97 = vector.broadcast %96 : vector<2x8x1xf32> to vector<2x8x8xf32>
    %98 = arith.subf %94, %97 : vector<2x8x8xf32>
    %99 = math.exp %98 : vector<2x8x8xf32>
    %cst_32 = arith.constant dense<0.000000e+00> : vector<2x8xf32>
    %100 = vector.multi_reduction <add>, %99, %cst_32 [2] : vector<2x8x8xf32> to vector<2x8xf32>
    %101 = vector.shape_cast %100 : vector<2x8xf32> to vector<2x8x1xf32>
    %102 = tpu.reciprocal %101 {approx = true} : vector<2x8x1xf32> -> vector<2x8x1xf32>
    %103 = vector.broadcast %102 : vector<2x8x1xf32> to vector<2x8x8xf32>
    %104 = arith.mulf %99, %103 : vector<2x8x8xf32>
    %105 = arith.truncf %104 : vector<2x8x8xf32> to vector<2x8x8xbf16>
    "tpu.trace_start"() <{level = 10 : i32, message = "bqk,bkd->bqd"}> : () -> ()
    %cst_33 = arith.constant dense<0.000000e+00> : vector<2x8x8xf32>
    %106 = tpu.matmul %105, %93, %cst_33 {dimension_numbers = #tpu.dot_dimension_numbers<[2], [1], [1], [2], [0, 0, 0, 1, 1, 2], [0], [0]>} : vector<2x8x8xbf16>, vector<2x8x8xbf16>, vector<2x8x8xf32> -> vector<2x8x8xf32>
    "tpu.trace_stop"() : () -> ()
    %107 = vector.shape_cast %106 : vector<2x8x8xf32> to vector<16x8xf32>
    %108 = tpu.concatenate %47, %67, %87, %107 in 1 : vector<16x8xf32>, vector<16x8xf32>, vector<16x8xf32>, vector<16x8xf32> -> vector<16x32xf32>
    %109 = arith.truncf %108 : vector<16x32xf32> to vector<16x32xbf16>
    %cst_34 = arith.constant dense<0.000000e+00> : vector<16x32xf32>
    %110 = tpu.matmul %109, %13, %cst_34 {dimension_numbers = #tpu.dot_dimension_numbers<[1], [0], [0], [1], [0, 0, 1, 1], [], []>} : vector<16x32xbf16>, vector<32x32xbf16>, vector<16x32xf32> -> vector<16x32xf32>
    %111 = vector.extract_strided_slice %9 {offsets = [0, 0], sizes = [1, 32], strides = [1, 1]} : vector<7x32xf32> to vector<1x32xf32>
    %112 = vector.broadcast %111 : vector<1x32xf32> to vector<16x32xf32>
    %113 = arith.addf %110, %112 : vector<16x32xf32>
    %114 = arith.addf %113, %6 : vector<16x32xf32>
    %115 = vector.extract_strided_slice %9 {offsets = [1, 0], sizes = [1, 32], strides = [1, 1]} : vector<7x32xf32> to vector<1x32xf32>
    %116 = vector.extract_strided_slice %9 {offsets = [2, 0], sizes = [1, 32], strides = [1, 1]} : vector<7x32xf32> to vector<1x32xf32>
    %cst_35 = arith.constant dense<0.000000e+00> : vector<16xf32>
    %117 = vector.multi_reduction <add>, %114, %cst_35 [1] : vector<16x32xf32> to vector<16xf32>
    %118 = vector.shape_cast %117 : vector<16xf32> to vector<16x1xf32>
    %cst_36 = arith.constant 3.200000e+01 : f32
    %119 = vector.broadcast %cst_36 : f32 to vector<16x1xf32>
    %120 = arith.divf %118, %119 : vector<16x1xf32>
    %121 = vector.broadcast %120 : vector<16x1xf32> to vector<16x32xf32>
    %122 = arith.subf %114, %121 : vector<16x32xf32>
    %123 = arith.mulf %122, %122 : vector<16x32xf32>
    %cst_37 = arith.constant dense<0.000000e+00> : vector<16xf32>
    %124 = vector.multi_reduction <add>, %123, %cst_37 [1] : vector<16x32xf32> to vector<16xf32>
    %125 = vector.shape_cast %124 : vector<16xf32> to vector<16x1xf32>
    %cst_38 = arith.constant 3.200000e+01 : f32
    %126 = vector.broadcast %cst_38 : f32 to vector<16x1xf32>
    %127 = arith.divf %125, %126 : vector<16x1xf32>
    %cst_39 = arith.constant 9.99999974E-6 : f32
    %128 = vector.broadcast %cst_39 : f32 to vector<16x1xf32>
    %129 = arith.addf %127, %128 : vector<16x1xf32>
    %130 = math.rsqrt %129 : vector<16x1xf32>
    %131 = vector.broadcast %130 : vector<16x1xf32> to vector<16x32xf32>
    %132 = arith.mulf %122, %131 : vector<16x32xf32>
    %133 = vector.broadcast %115 : vector<1x32xf32> to vector<16x32xf32>
    %134 = arith.mulf %132, %133 : vector<16x32xf32>
    %135 = vector.broadcast %116 : vector<1x32xf32> to vector<16x32xf32>
    %136 = arith.addf %134, %135 : vector<16x32xf32>
    %c0_40 = arith.constant 0 : index
    %c0_41 = arith.constant 0 : index
    %137 = vector.load %arg8[%c0_40, %c0_41] : memref<32x32xbf16, #tpu.memory_space<vmem>>, vector<32x32xbf16>
    %c0_42 = arith.constant 0 : index
    %c0_43 = arith.constant 0 : index
    %138 = vector.load %arg9[%c0_42, %c0_43] : memref<32x32xbf16, #tpu.memory_space<vmem>>, vector<32x32xbf16>
    %139 = arith.truncf %136 : vector<16x32xf32> to vector<16x32xbf16>
    %cst_44 = arith.constant dense<0.000000e+00> : vector<16x32xf32>
    %140 = tpu.matmul %139, %137, %cst_44 {dimension_numbers = #tpu.dot_dimension_numbers<[1], [0], [0], [1], [0, 0, 1, 1], [], []>} : vector<16x32xbf16>, vector<32x32xbf16>, vector<16x32xf32> -> vector<16x32xf32>
    %141 = vector.extract_strided_slice %9 {offsets = [3, 0], sizes = [1, 32], strides = [1, 1]} : vector<7x32xf32> to vector<1x32xf32>
    %142 = vector.broadcast %141 : vector<1x32xf32> to vector<16x32xf32>
    %143 = arith.addf %140, %142 : vector<16x32xf32>
    %cst_45 = arith.constant 0.000000e+00 : f32
    %144 = vector.broadcast %cst_45 : f32 to vector<16x32xf32>
    %145 = arith.maximumf %143, %144 : vector<16x32xf32>
    %146 = arith.truncf %145 : vector<16x32xf32> to vector<16x32xbf16>
    %cst_46 = arith.constant dense<0.000000e+00> : vector<16x32xf32>
    %147 = tpu.matmul %146, %138, %cst_46 {dimension_numbers = #tpu.dot_dimension_numbers<[1], [0], [0], [1], [0, 0, 1, 1], [], []>} : vector<16x32xbf16>, vector<32x32xbf16>, vector<16x32xf32> -> vector<16x32xf32>
    %148 = vector.extract_strided_slice %9 {offsets = [4, 0], sizes = [1, 32], strides = [1, 1]} : vector<7x32xf32> to vector<1x32xf32>
    %149 = vector.broadcast %148 : vector<1x32xf32> to vector<16x32xf32>
    %150 = arith.addf %147, %149 : vector<16x32xf32>
    %151 = arith.addf %150, %136 : vector<16x32xf32>
    %152 = vector.extract_strided_slice %9 {offsets = [5, 0], sizes = [1, 32], strides = [1, 1]} : vector<7x32xf32> to vector<1x32xf32>
    %153 = vector.extract_strided_slice %9 {offsets = [6, 0], sizes = [1, 32], strides = [1, 1]} : vector<7x32xf32> to vector<1x32xf32>
    %cst_47 = arith.constant dense<0.000000e+00> : vector<16xf32>
    %154 = vector.multi_reduction <add>, %151, %cst_47 [1] : vector<16x32xf32> to vector<16xf32>
    %155 = vector.shape_cast %154 : vector<16xf32> to vector<16x1xf32>
    %cst_48 = arith.constant 3.200000e+01 : f32
    %156 = vector.broadcast %cst_48 : f32 to vector<16x1xf32>
    %157 = arith.divf %155, %156 : vector<16x1xf32>
    %158 = vector.broadcast %157 : vector<16x1xf32> to vector<16x32xf32>
    %159 = arith.subf %151, %158 : vector<16x32xf32>
    %160 = arith.mulf %159, %159 : vector<16x32xf32>
    %cst_49 = arith.constant dense<0.000000e+00> : vector<16xf32>
    %161 = vector.multi_reduction <add>, %160, %cst_49 [1] : vector<16x32xf32> to vector<16xf32>
    %162 = vector.shape_cast %161 : vector<16xf32> to vector<16x1xf32>
    %cst_50 = arith.constant 3.200000e+01 : f32
    %163 = vector.broadcast %cst_50 : f32 to vector<16x1xf32>
    %164 = arith.divf %162, %163 : vector<16x1xf32>
    %cst_51 = arith.constant 9.99999974E-6 : f32
    %165 = vector.broadcast %cst_51 : f32 to vector<16x1xf32>
    %166 = arith.addf %164, %165 : vector<16x1xf32>
    %167 = math.rsqrt %166 : vector<16x1xf32>
    %168 = vector.broadcast %167 : vector<16x1xf32> to vector<16x32xf32>
    %169 = arith.mulf %159, %168 : vector<16x32xf32>
    %170 = vector.broadcast %152 : vector<1x32xf32> to vector<16x32xf32>
    %171 = arith.mulf %169, %170 : vector<16x32xf32>
    %172 = vector.broadcast %153 : vector<1x32xf32> to vector<16x32xf32>
    %173 = arith.addf %171, %172 : vector<16x32xf32>
    %c0_52 = arith.constant 0 : index
    %c0_53 = arith.constant 0 : index
    %174 = vector.load %arg10[%c0_52, %c0_53] : memref<10x32xf32, #tpu.memory_space<vmem>>, vector<10x32xf32>
    %c0_54 = arith.constant 0 : index
    %c0_55 = arith.constant 0 : index
    %175 = vector.load %arg11[%c0_54, %c0_55] : memref<32x96xbf16, #tpu.memory_space<vmem>>, vector<32x96xbf16>
    %c0_56 = arith.constant 0 : index
    %c0_57 = arith.constant 0 : index
    %176 = vector.load %arg12[%c0_56, %c0_57] : memref<1x96xf32, #tpu.memory_space<vmem>>, vector<1x96xf32>
    %c0_58 = arith.constant 0 : index
    %c0_59 = arith.constant 0 : index
    %177 = vector.load %arg13[%c0_58, %c0_59] : memref<32x32xbf16, #tpu.memory_space<vmem>>, vector<32x32xbf16>
    %178 = arith.truncf %173 : vector<16x32xf32> to vector<16x32xbf16>
    %cst_60 = arith.constant dense<0.000000e+00> : vector<16x96xf32>
    %179 = tpu.matmul %178, %175, %cst_60 {dimension_numbers = #tpu.dot_dimension_numbers<[1], [0], [0], [1], [0, 0, 1, 1], [], []>} : vector<16x32xbf16>, vector<32x96xbf16>, vector<16x96xf32> -> vector<16x96xf32>
    %180 = vector.broadcast %176 : vector<1x96xf32> to vector<16x96xf32>
    %181 = arith.addf %179, %180 : vector<16x96xf32>
    %182 = vector.extract_strided_slice %181 {offsets = [0, 0], sizes = [16, 32], strides = [1, 1]} : vector<16x96xf32> to vector<16x32xf32>
    %183 = vector.extract_strided_slice %181 {offsets = [0, 32], sizes = [16, 32], strides = [1, 1]} : vector<16x96xf32> to vector<16x32xf32>
    %184 = vector.extract_strided_slice %181 {offsets = [0, 64], sizes = [16, 32], strides = [1, 1]} : vector<16x96xf32> to vector<16x32xf32>
    %185 = arith.truncf %182 : vector<16x32xf32> to vector<16x32xbf16>
    %186 = arith.truncf %183 : vector<16x32xf32> to vector<16x32xbf16>
    %187 = arith.truncf %184 : vector<16x32xf32> to vector<16x32xbf16>
    %188 = vector.extract_strided_slice %185 {offsets = [0, 0], sizes = [16, 8], strides = [1, 1]} : vector<16x32xbf16> to vector<16x8xbf16>
    %189 = vector.shape_cast %188 : vector<16x8xbf16> to vector<2x8x8xbf16>
    %190 = vector.extract_strided_slice %186 {offsets = [0, 0], sizes = [16, 8], strides = [1, 1]} : vector<16x32xbf16> to vector<16x8xbf16>
    %191 = vector.shape_cast %190 : vector<16x8xbf16> to vector<2x8x8xbf16>
    %192 = vector.extract_strided_slice %187 {offsets = [0, 0], sizes = [16, 8], strides = [1, 1]} : vector<16x32xbf16> to vector<16x8xbf16>
    %193 = vector.shape_cast %192 : vector<16x8xbf16> to vector<2x8x8xbf16>
    "tpu.trace_start"() <{level = 10 : i32, message = "bqd,bkd->bqk"}> : () -> ()
    %cst_61 = arith.constant dense<0.000000e+00> : vector<2x8x8xf32>
    %194 = tpu.matmul %189, %191, %cst_61 {dimension_numbers = #tpu.dot_dimension_numbers<[2], [2], [1], [1], [0, 0, 0, 1, 1, 1], [0], [0]>} : vector<2x8x8xbf16>, vector<2x8x8xbf16>, vector<2x8x8xf32> -> vector<2x8x8xf32>
    "tpu.trace_stop"() : () -> ()
    %cst_62 = arith.constant dense<0xFF800000> : vector<2x8xf32>
    %195 = vector.multi_reduction <maximumf>, %194, %cst_62 [2] : vector<2x8x8xf32> to vector<2x8xf32>
    %196 = vector.shape_cast %195 : vector<2x8xf32> to vector<2x8x1xf32>
    %197 = vector.broadcast %196 : vector<2x8x1xf32> to vector<2x8x8xf32>
    %198 = arith.subf %194, %197 : vector<2x8x8xf32>
    %199 = math.exp %198 : vector<2x8x8xf32>
    %cst_63 = arith.constant dense<0.000000e+00> : vector<2x8xf32>
    %200 = vector.multi_reduction <add>, %199, %cst_63 [2] : vector<2x8x8xf32> to vector<2x8xf32>
    %201 = vector.shape_cast %200 : vector<2x8xf32> to vector<2x8x1xf32>
    %202 = tpu.reciprocal %201 {approx = true} : vector<2x8x1xf32> -> vector<2x8x1xf32>
    %203 = vector.broadcast %202 : vector<2x8x1xf32> to vector<2x8x8xf32>
    %204 = arith.mulf %199, %203 : vector<2x8x8xf32>
    %205 = arith.truncf %204 : vector<2x8x8xf32> to vector<2x8x8xbf16>
    "tpu.trace_start"() <{level = 10 : i32, message = "bqk,bkd->bqd"}> : () -> ()
    %cst_64 = arith.constant dense<0.000000e+00> : vector<2x8x8xf32>
    %206 = tpu.matmul %205, %193, %cst_64 {dimension_numbers = #tpu.dot_dimension_numbers<[2], [1], [1], [2], [0, 0, 0, 1, 1, 2], [0], [0]>} : vector<2x8x8xbf16>, vector<2x8x8xbf16>, vector<2x8x8xf32> -> vector<2x8x8xf32>
    "tpu.trace_stop"() : () -> ()
    %207 = vector.shape_cast %206 : vector<2x8x8xf32> to vector<16x8xf32>
    %208 = vector.extract_strided_slice %185 {offsets = [0, 8], sizes = [16, 8], strides = [1, 1]} : vector<16x32xbf16> to vector<16x8xbf16>
    %209 = vector.shape_cast %208 : vector<16x8xbf16> to vector<2x8x8xbf16>
    %210 = vector.extract_strided_slice %186 {offsets = [0, 8], sizes = [16, 8], strides = [1, 1]} : vector<16x32xbf16> to vector<16x8xbf16>
    %211 = vector.shape_cast %210 : vector<16x8xbf16> to vector<2x8x8xbf16>
    %212 = vector.extract_strided_slice %187 {offsets = [0, 8], sizes = [16, 8], strides = [1, 1]} : vector<16x32xbf16> to vector<16x8xbf16>
    %213 = vector.shape_cast %212 : vector<16x8xbf16> to vector<2x8x8xbf16>
    "tpu.trace_start"() <{level = 10 : i32, message = "bqd,bkd->bqk"}> : () -> ()
    %cst_65 = arith.constant dense<0.000000e+00> : vector<2x8x8xf32>
    %214 = tpu.matmul %209, %211, %cst_65 {dimension_numbers = #tpu.dot_dimension_numbers<[2], [2], [1], [1], [0, 0, 0, 1, 1, 1], [0], [0]>} : vector<2x8x8xbf16>, vector<2x8x8xbf16>, vector<2x8x8xf32> -> vector<2x8x8xf32>
    "tpu.trace_stop"() : () -> ()
    %cst_66 = arith.constant dense<0xFF800000> : vector<2x8xf32>
    %215 = vector.multi_reduction <maximumf>, %214, %cst_66 [2] : vector<2x8x8xf32> to vector<2x8xf32>
    %216 = vector.shape_cast %215 : vector<2x8xf32> to vector<2x8x1xf32>
    %217 = vector.broadcast %216 : vector<2x8x1xf32> to vector<2x8x8xf32>
    %218 = arith.subf %214, %217 : vector<2x8x8xf32>
    %219 = math.exp %218 : vector<2x8x8xf32>
    %cst_67 = arith.constant dense<0.000000e+00> : vector<2x8xf32>
    %220 = vector.multi_reduction <add>, %219, %cst_67 [2] : vector<2x8x8xf32> to vector<2x8xf32>
    %221 = vector.shape_cast %220 : vector<2x8xf32> to vector<2x8x1xf32>
    %222 = tpu.reciprocal %221 {approx = true} : vector<2x8x1xf32> -> vector<2x8x1xf32>
    %223 = vector.broadcast %222 : vector<2x8x1xf32> to vector<2x8x8xf32>
    %224 = arith.mulf %219, %223 : vector<2x8x8xf32>
    %225 = arith.truncf %224 : vector<2x8x8xf32> to vector<2x8x8xbf16>
    "tpu.trace_start"() <{level = 10 : i32, message = "bqk,bkd->bqd"}> : () -> ()
    %cst_68 = arith.constant dense<0.000000e+00> : vector<2x8x8xf32>
    %226 = tpu.matmul %225, %213, %cst_68 {dimension_numbers = #tpu.dot_dimension_numbers<[2], [1], [1], [2], [0, 0, 0, 1, 1, 2], [0], [0]>} : vector<2x8x8xbf16>, vector<2x8x8xbf16>, vector<2x8x8xf32> -> vector<2x8x8xf32>
    "tpu.trace_stop"() : () -> ()
    %227 = vector.shape_cast %226 : vector<2x8x8xf32> to vector<16x8xf32>
    %228 = vector.extract_strided_slice %185 {offsets = [0, 16], sizes = [16, 8], strides = [1, 1]} : vector<16x32xbf16> to vector<16x8xbf16>
    %229 = vector.shape_cast %228 : vector<16x8xbf16> to vector<2x8x8xbf16>
    %230 = vector.extract_strided_slice %186 {offsets = [0, 16], sizes = [16, 8], strides = [1, 1]} : vector<16x32xbf16> to vector<16x8xbf16>
    %231 = vector.shape_cast %230 : vector<16x8xbf16> to vector<2x8x8xbf16>
    %232 = vector.extract_strided_slice %187 {offsets = [0, 16], sizes = [16, 8], strides = [1, 1]} : vector<16x32xbf16> to vector<16x8xbf16>
    %233 = vector.shape_cast %232 : vector<16x8xbf16> to vector<2x8x8xbf16>
    "tpu.trace_start"() <{level = 10 : i32, message = "bqd,bkd->bqk"}> : () -> ()
    %cst_69 = arith.constant dense<0.000000e+00> : vector<2x8x8xf32>
    %234 = tpu.matmul %229, %231, %cst_69 {dimension_numbers = #tpu.dot_dimension_numbers<[2], [2], [1], [1], [0, 0, 0, 1, 1, 1], [0], [0]>} : vector<2x8x8xbf16>, vector<2x8x8xbf16>, vector<2x8x8xf32> -> vector<2x8x8xf32>
    "tpu.trace_stop"() : () -> ()
    %cst_70 = arith.constant dense<0xFF800000> : vector<2x8xf32>
    %235 = vector.multi_reduction <maximumf>, %234, %cst_70 [2] : vector<2x8x8xf32> to vector<2x8xf32>
    %236 = vector.shape_cast %235 : vector<2x8xf32> to vector<2x8x1xf32>
    %237 = vector.broadcast %236 : vector<2x8x1xf32> to vector<2x8x8xf32>
    %238 = arith.subf %234, %237 : vector<2x8x8xf32>
    %239 = math.exp %238 : vector<2x8x8xf32>
    %cst_71 = arith.constant dense<0.000000e+00> : vector<2x8xf32>
    %240 = vector.multi_reduction <add>, %239, %cst_71 [2] : vector<2x8x8xf32> to vector<2x8xf32>
    %241 = vector.shape_cast %240 : vector<2x8xf32> to vector<2x8x1xf32>
    %242 = tpu.reciprocal %241 {approx = true} : vector<2x8x1xf32> -> vector<2x8x1xf32>
    %243 = vector.broadcast %242 : vector<2x8x1xf32> to vector<2x8x8xf32>
    %244 = arith.mulf %239, %243 : vector<2x8x8xf32>
    %245 = arith.truncf %244 : vector<2x8x8xf32> to vector<2x8x8xbf16>
    "tpu.trace_start"() <{level = 10 : i32, message = "bqk,bkd->bqd"}> : () -> ()
    %cst_72 = arith.constant dense<0.000000e+00> : vector<2x8x8xf32>
    %246 = tpu.matmul %245, %233, %cst_72 {dimension_numbers = #tpu.dot_dimension_numbers<[2], [1], [1], [2], [0, 0, 0, 1, 1, 2], [0], [0]>} : vector<2x8x8xbf16>, vector<2x8x8xbf16>, vector<2x8x8xf32> -> vector<2x8x8xf32>
    "tpu.trace_stop"() : () -> ()
    %247 = vector.shape_cast %246 : vector<2x8x8xf32> to vector<16x8xf32>
    %248 = vector.extract_strided_slice %185 {offsets = [0, 24], sizes = [16, 8], strides = [1, 1]} : vector<16x32xbf16> to vector<16x8xbf16>
    %249 = vector.shape_cast %248 : vector<16x8xbf16> to vector<2x8x8xbf16>
    %250 = vector.extract_strided_slice %186 {offsets = [0, 24], sizes = [16, 8], strides = [1, 1]} : vector<16x32xbf16> to vector<16x8xbf16>
    %251 = vector.shape_cast %250 : vector<16x8xbf16> to vector<2x8x8xbf16>
    %252 = vector.extract_strided_slice %187 {offsets = [0, 24], sizes = [16, 8], strides = [1, 1]} : vector<16x32xbf16> to vector<16x8xbf16>
    %253 = vector.shape_cast %252 : vector<16x8xbf16> to vector<2x8x8xbf16>
    "tpu.trace_start"() <{level = 10 : i32, message = "bqd,bkd->bqk"}> : () -> ()
    %cst_73 = arith.constant dense<0.000000e+00> : vector<2x8x8xf32>
    %254 = tpu.matmul %249, %251, %cst_73 {dimension_numbers = #tpu.dot_dimension_numbers<[2], [2], [1], [1], [0, 0, 0, 1, 1, 1], [0], [0]>} : vector<2x8x8xbf16>, vector<2x8x8xbf16>, vector<2x8x8xf32> -> vector<2x8x8xf32>
    "tpu.trace_stop"() : () -> ()
    %cst_74 = arith.constant dense<0xFF800000> : vector<2x8xf32>
    %255 = vector.multi_reduction <maximumf>, %254, %cst_74 [2] : vector<2x8x8xf32> to vector<2x8xf32>
    %256 = vector.shape_cast %255 : vector<2x8xf32> to vector<2x8x1xf32>
    %257 = vector.broadcast %256 : vector<2x8x1xf32> to vector<2x8x8xf32>
    %258 = arith.subf %254, %257 : vector<2x8x8xf32>
    %259 = math.exp %258 : vector<2x8x8xf32>
    %cst_75 = arith.constant dense<0.000000e+00> : vector<2x8xf32>
    %260 = vector.multi_reduction <add>, %259, %cst_75 [2] : vector<2x8x8xf32> to vector<2x8xf32>
    %261 = vector.shape_cast %260 : vector<2x8xf32> to vector<2x8x1xf32>
    %262 = tpu.reciprocal %261 {approx = true} : vector<2x8x1xf32> -> vector<2x8x1xf32>
    %263 = vector.broadcast %262 : vector<2x8x1xf32> to vector<2x8x8xf32>
    %264 = arith.mulf %259, %263 : vector<2x8x8xf32>
    %265 = arith.truncf %264 : vector<2x8x8xf32> to vector<2x8x8xbf16>
    "tpu.trace_start"() <{level = 10 : i32, message = "bqk,bkd->bqd"}> : () -> ()
    %cst_76 = arith.constant dense<0.000000e+00> : vector<2x8x8xf32>
    %266 = tpu.matmul %265, %253, %cst_76 {dimension_numbers = #tpu.dot_dimension_numbers<[2], [1], [1], [2], [0, 0, 0, 1, 1, 2], [0], [0]>} : vector<2x8x8xbf16>, vector<2x8x8xbf16>, vector<2x8x8xf32> -> vector<2x8x8xf32>
    "tpu.trace_stop"() : () -> ()
    %267 = vector.shape_cast %266 : vector<2x8x8xf32> to vector<16x8xf32>
    %268 = tpu.concatenate %207, %227, %247, %267 in 1 : vector<16x8xf32>, vector<16x8xf32>, vector<16x8xf32>, vector<16x8xf32> -> vector<16x32xf32>
    %269 = arith.truncf %268 : vector<16x32xf32> to vector<16x32xbf16>
    %cst_77 = arith.constant dense<0.000000e+00> : vector<16x32xf32>
    %270 = tpu.matmul %269, %177, %cst_77 {dimension_numbers = #tpu.dot_dimension_numbers<[1], [0], [0], [1], [0, 0, 1, 1], [], []>} : vector<16x32xbf16>, vector<32x32xbf16>, vector<16x32xf32> -> vector<16x32xf32>
    %271 = vector.extract_strided_slice %174 {offsets = [0, 0], sizes = [1, 32], strides = [1, 1]} : vector<10x32xf32> to vector<1x32xf32>
    %272 = vector.broadcast %271 : vector<1x32xf32> to vector<16x32xf32>
    %273 = arith.addf %270, %272 : vector<16x32xf32>
    %274 = arith.addf %273, %173 : vector<16x32xf32>
    %275 = vector.extract_strided_slice %174 {offsets = [1, 0], sizes = [1, 32], strides = [1, 1]} : vector<10x32xf32> to vector<1x32xf32>
    %276 = vector.extract_strided_slice %174 {offsets = [2, 0], sizes = [1, 32], strides = [1, 1]} : vector<10x32xf32> to vector<1x32xf32>
    %cst_78 = arith.constant dense<0.000000e+00> : vector<16xf32>
    %277 = vector.multi_reduction <add>, %274, %cst_78 [1] : vector<16x32xf32> to vector<16xf32>
    %278 = vector.shape_cast %277 : vector<16xf32> to vector<16x1xf32>
    %cst_79 = arith.constant 3.200000e+01 : f32
    %279 = vector.broadcast %cst_79 : f32 to vector<16x1xf32>
    %280 = arith.divf %278, %279 : vector<16x1xf32>
    %281 = vector.broadcast %280 : vector<16x1xf32> to vector<16x32xf32>
    %282 = arith.subf %274, %281 : vector<16x32xf32>
    %283 = arith.mulf %282, %282 : vector<16x32xf32>
    %cst_80 = arith.constant dense<0.000000e+00> : vector<16xf32>
    %284 = vector.multi_reduction <add>, %283, %cst_80 [1] : vector<16x32xf32> to vector<16xf32>
    %285 = vector.shape_cast %284 : vector<16xf32> to vector<16x1xf32>
    %cst_81 = arith.constant 3.200000e+01 : f32
    %286 = vector.broadcast %cst_81 : f32 to vector<16x1xf32>
    %287 = arith.divf %285, %286 : vector<16x1xf32>
    %cst_82 = arith.constant 9.99999974E-6 : f32
    %288 = vector.broadcast %cst_82 : f32 to vector<16x1xf32>
    %289 = arith.addf %287, %288 : vector<16x1xf32>
    %290 = math.rsqrt %289 : vector<16x1xf32>
    %291 = vector.broadcast %290 : vector<16x1xf32> to vector<16x32xf32>
    %292 = arith.mulf %282, %291 : vector<16x32xf32>
    %293 = vector.broadcast %275 : vector<1x32xf32> to vector<16x32xf32>
    %294 = arith.mulf %292, %293 : vector<16x32xf32>
    %295 = vector.broadcast %276 : vector<1x32xf32> to vector<16x32xf32>
    %296 = arith.addf %294, %295 : vector<16x32xf32>
    %c0_83 = arith.constant 0 : index
    %c0_84 = arith.constant 0 : index
    %297 = vector.load %arg14[%c0_83, %c0_84] : memref<32x32xbf16, #tpu.memory_space<vmem>>, vector<32x32xbf16>
    %c0_85 = arith.constant 0 : index
    %c0_86 = arith.constant 0 : index
    %298 = vector.load %arg15[%c0_85, %c0_86] : memref<32x64xbf16, #tpu.memory_space<vmem>>, vector<32x64xbf16>
    %c0_87 = arith.constant 0 : index
    %c0_88 = arith.constant 0 : index
    %299 = vector.load %arg16[%c0_87, %c0_88] : memref<1x96xf32, #tpu.memory_space<vmem>>, vector<1x96xf32>
    %c0_89 = arith.constant 0 : index
    %c0_90 = arith.constant 0 : index
    %300 = vector.load %arg17[%c0_89, %c0_90] : memref<32x32xbf16, #tpu.memory_space<vmem>>, vector<32x32xbf16>
    %301 = arith.truncf %296 : vector<16x32xf32> to vector<16x32xbf16>
    %cst_91 = arith.constant dense<0.000000e+00> : vector<16x32xf32>
    %302 = tpu.matmul %301, %297, %cst_91 {dimension_numbers = #tpu.dot_dimension_numbers<[1], [0], [0], [1], [0, 0, 1, 1], [], []>} : vector<16x32xbf16>, vector<32x32xbf16>, vector<16x32xf32> -> vector<16x32xf32>
    %303 = vector.extract_strided_slice %299 {offsets = [0, 0], sizes = [1, 32], strides = [1, 1]} : vector<1x96xf32> to vector<1x32xf32>
    %304 = vector.broadcast %303 : vector<1x32xf32> to vector<16x32xf32>
    %305 = arith.addf %302, %304 : vector<16x32xf32>
    %cst_92 = arith.constant dense<0.000000e+00> : vector<16x64xf32>
    %306 = tpu.matmul %8, %298, %cst_92 {dimension_numbers = #tpu.dot_dimension_numbers<[1], [0], [0], [1], [0, 0, 1, 1], [], []>} : vector<16x32xbf16>, vector<32x64xbf16>, vector<16x64xf32> -> vector<16x64xf32>
    %307 = vector.extract_strided_slice %299 {offsets = [0, 32], sizes = [1, 64], strides = [1, 1]} : vector<1x96xf32> to vector<1x64xf32>
    %308 = vector.broadcast %307 : vector<1x64xf32> to vector<16x64xf32>
    %309 = arith.addf %306, %308 : vector<16x64xf32>
    %310 = vector.extract_strided_slice %309 {offsets = [0, 0], sizes = [16, 32], strides = [1, 1]} : vector<16x64xf32> to vector<16x32xf32>
    %311 = vector.extract_strided_slice %309 {offsets = [0, 32], sizes = [16, 32], strides = [1, 1]} : vector<16x64xf32> to vector<16x32xf32>
    %312 = arith.truncf %305 : vector<16x32xf32> to vector<16x32xbf16>
    %313 = arith.truncf %310 : vector<16x32xf32> to vector<16x32xbf16>
    %314 = arith.truncf %311 : vector<16x32xf32> to vector<16x32xbf16>
    %315 = vector.extract_strided_slice %312 {offsets = [0, 0], sizes = [16, 8], strides = [1, 1]} : vector<16x32xbf16> to vector<16x8xbf16>
    %316 = vector.shape_cast %315 : vector<16x8xbf16> to vector<2x8x8xbf16>
    %317 = vector.extract_strided_slice %313 {offsets = [0, 0], sizes = [16, 8], strides = [1, 1]} : vector<16x32xbf16> to vector<16x8xbf16>
    %318 = vector.shape_cast %317 : vector<16x8xbf16> to vector<2x8x8xbf16>
    %319 = vector.extract_strided_slice %314 {offsets = [0, 0], sizes = [16, 8], strides = [1, 1]} : vector<16x32xbf16> to vector<16x8xbf16>
    %320 = vector.shape_cast %319 : vector<16x8xbf16> to vector<2x8x8xbf16>
    "tpu.trace_start"() <{level = 10 : i32, message = "bqd,bkd->bqk"}> : () -> ()
    %cst_93 = arith.constant dense<0.000000e+00> : vector<2x8x8xf32>
    %321 = tpu.matmul %316, %318, %cst_93 {dimension_numbers = #tpu.dot_dimension_numbers<[2], [2], [1], [1], [0, 0, 0, 1, 1, 1], [0], [0]>} : vector<2x8x8xbf16>, vector<2x8x8xbf16>, vector<2x8x8xf32> -> vector<2x8x8xf32>
    "tpu.trace_stop"() : () -> ()
    %cst_94 = arith.constant dense<0xFF800000> : vector<2x8xf32>
    %322 = vector.multi_reduction <maximumf>, %321, %cst_94 [2] : vector<2x8x8xf32> to vector<2x8xf32>
    %323 = vector.shape_cast %322 : vector<2x8xf32> to vector<2x8x1xf32>
    %324 = vector.broadcast %323 : vector<2x8x1xf32> to vector<2x8x8xf32>
    %325 = arith.subf %321, %324 : vector<2x8x8xf32>
    %326 = math.exp %325 : vector<2x8x8xf32>
    %cst_95 = arith.constant dense<0.000000e+00> : vector<2x8xf32>
    %327 = vector.multi_reduction <add>, %326, %cst_95 [2] : vector<2x8x8xf32> to vector<2x8xf32>
    %328 = vector.shape_cast %327 : vector<2x8xf32> to vector<2x8x1xf32>
    %329 = tpu.reciprocal %328 {approx = true} : vector<2x8x1xf32> -> vector<2x8x1xf32>
    %330 = vector.broadcast %329 : vector<2x8x1xf32> to vector<2x8x8xf32>
    %331 = arith.mulf %326, %330 : vector<2x8x8xf32>
    %332 = arith.truncf %331 : vector<2x8x8xf32> to vector<2x8x8xbf16>
    "tpu.trace_start"() <{level = 10 : i32, message = "bqk,bkd->bqd"}> : () -> ()
    %cst_96 = arith.constant dense<0.000000e+00> : vector<2x8x8xf32>
    %333 = tpu.matmul %332, %320, %cst_96 {dimension_numbers = #tpu.dot_dimension_numbers<[2], [1], [1], [2], [0, 0, 0, 1, 1, 2], [0], [0]>} : vector<2x8x8xbf16>, vector<2x8x8xbf16>, vector<2x8x8xf32> -> vector<2x8x8xf32>
    "tpu.trace_stop"() : () -> ()
    %334 = vector.shape_cast %333 : vector<2x8x8xf32> to vector<16x8xf32>
    %335 = vector.extract_strided_slice %312 {offsets = [0, 8], sizes = [16, 8], strides = [1, 1]} : vector<16x32xbf16> to vector<16x8xbf16>
    %336 = vector.shape_cast %335 : vector<16x8xbf16> to vector<2x8x8xbf16>
    %337 = vector.extract_strided_slice %313 {offsets = [0, 8], sizes = [16, 8], strides = [1, 1]} : vector<16x32xbf16> to vector<16x8xbf16>
    %338 = vector.shape_cast %337 : vector<16x8xbf16> to vector<2x8x8xbf16>
    %339 = vector.extract_strided_slice %314 {offsets = [0, 8], sizes = [16, 8], strides = [1, 1]} : vector<16x32xbf16> to vector<16x8xbf16>
    %340 = vector.shape_cast %339 : vector<16x8xbf16> to vector<2x8x8xbf16>
    "tpu.trace_start"() <{level = 10 : i32, message = "bqd,bkd->bqk"}> : () -> ()
    %cst_97 = arith.constant dense<0.000000e+00> : vector<2x8x8xf32>
    %341 = tpu.matmul %336, %338, %cst_97 {dimension_numbers = #tpu.dot_dimension_numbers<[2], [2], [1], [1], [0, 0, 0, 1, 1, 1], [0], [0]>} : vector<2x8x8xbf16>, vector<2x8x8xbf16>, vector<2x8x8xf32> -> vector<2x8x8xf32>
    "tpu.trace_stop"() : () -> ()
    %cst_98 = arith.constant dense<0xFF800000> : vector<2x8xf32>
    %342 = vector.multi_reduction <maximumf>, %341, %cst_98 [2] : vector<2x8x8xf32> to vector<2x8xf32>
    %343 = vector.shape_cast %342 : vector<2x8xf32> to vector<2x8x1xf32>
    %344 = vector.broadcast %343 : vector<2x8x1xf32> to vector<2x8x8xf32>
    %345 = arith.subf %341, %344 : vector<2x8x8xf32>
    %346 = math.exp %345 : vector<2x8x8xf32>
    %cst_99 = arith.constant dense<0.000000e+00> : vector<2x8xf32>
    %347 = vector.multi_reduction <add>, %346, %cst_99 [2] : vector<2x8x8xf32> to vector<2x8xf32>
    %348 = vector.shape_cast %347 : vector<2x8xf32> to vector<2x8x1xf32>
    %349 = tpu.reciprocal %348 {approx = true} : vector<2x8x1xf32> -> vector<2x8x1xf32>
    %350 = vector.broadcast %349 : vector<2x8x1xf32> to vector<2x8x8xf32>
    %351 = arith.mulf %346, %350 : vector<2x8x8xf32>
    %352 = arith.truncf %351 : vector<2x8x8xf32> to vector<2x8x8xbf16>
    "tpu.trace_start"() <{level = 10 : i32, message = "bqk,bkd->bqd"}> : () -> ()
    %cst_100 = arith.constant dense<0.000000e+00> : vector<2x8x8xf32>
    %353 = tpu.matmul %352, %340, %cst_100 {dimension_numbers = #tpu.dot_dimension_numbers<[2], [1], [1], [2], [0, 0, 0, 1, 1, 2], [0], [0]>} : vector<2x8x8xbf16>, vector<2x8x8xbf16>, vector<2x8x8xf32> -> vector<2x8x8xf32>
    "tpu.trace_stop"() : () -> ()
    %354 = vector.shape_cast %353 : vector<2x8x8xf32> to vector<16x8xf32>
    %355 = vector.extract_strided_slice %312 {offsets = [0, 16], sizes = [16, 8], strides = [1, 1]} : vector<16x32xbf16> to vector<16x8xbf16>
    %356 = vector.shape_cast %355 : vector<16x8xbf16> to vector<2x8x8xbf16>
    %357 = vector.extract_strided_slice %313 {offsets = [0, 16], sizes = [16, 8], strides = [1, 1]} : vector<16x32xbf16> to vector<16x8xbf16>
    %358 = vector.shape_cast %357 : vector<16x8xbf16> to vector<2x8x8xbf16>
    %359 = vector.extract_strided_slice %314 {offsets = [0, 16], sizes = [16, 8], strides = [1, 1]} : vector<16x32xbf16> to vector<16x8xbf16>
    %360 = vector.shape_cast %359 : vector<16x8xbf16> to vector<2x8x8xbf16>
    "tpu.trace_start"() <{level = 10 : i32, message = "bqd,bkd->bqk"}> : () -> ()
    %cst_101 = arith.constant dense<0.000000e+00> : vector<2x8x8xf32>
    %361 = tpu.matmul %356, %358, %cst_101 {dimension_numbers = #tpu.dot_dimension_numbers<[2], [2], [1], [1], [0, 0, 0, 1, 1, 1], [0], [0]>} : vector<2x8x8xbf16>, vector<2x8x8xbf16>, vector<2x8x8xf32> -> vector<2x8x8xf32>
    "tpu.trace_stop"() : () -> ()
    %cst_102 = arith.constant dense<0xFF800000> : vector<2x8xf32>
    %362 = vector.multi_reduction <maximumf>, %361, %cst_102 [2] : vector<2x8x8xf32> to vector<2x8xf32>
    %363 = vector.shape_cast %362 : vector<2x8xf32> to vector<2x8x1xf32>
    %364 = vector.broadcast %363 : vector<2x8x1xf32> to vector<2x8x8xf32>
    %365 = arith.subf %361, %364 : vector<2x8x8xf32>
    %366 = math.exp %365 : vector<2x8x8xf32>
    %cst_103 = arith.constant dense<0.000000e+00> : vector<2x8xf32>
    %367 = vector.multi_reduction <add>, %366, %cst_103 [2] : vector<2x8x8xf32> to vector<2x8xf32>
    %368 = vector.shape_cast %367 : vector<2x8xf32> to vector<2x8x1xf32>
    %369 = tpu.reciprocal %368 {approx = true} : vector<2x8x1xf32> -> vector<2x8x1xf32>
    %370 = vector.broadcast %369 : vector<2x8x1xf32> to vector<2x8x8xf32>
    %371 = arith.mulf %366, %370 : vector<2x8x8xf32>
    %372 = arith.truncf %371 : vector<2x8x8xf32> to vector<2x8x8xbf16>
    "tpu.trace_start"() <{level = 10 : i32, message = "bqk,bkd->bqd"}> : () -> ()
    %cst_104 = arith.constant dense<0.000000e+00> : vector<2x8x8xf32>
    %373 = tpu.matmul %372, %360, %cst_104 {dimension_numbers = #tpu.dot_dimension_numbers<[2], [1], [1], [2], [0, 0, 0, 1, 1, 2], [0], [0]>} : vector<2x8x8xbf16>, vector<2x8x8xbf16>, vector<2x8x8xf32> -> vector<2x8x8xf32>
    "tpu.trace_stop"() : () -> ()
    %374 = vector.shape_cast %373 : vector<2x8x8xf32> to vector<16x8xf32>
    %375 = vector.extract_strided_slice %312 {offsets = [0, 24], sizes = [16, 8], strides = [1, 1]} : vector<16x32xbf16> to vector<16x8xbf16>
    %376 = vector.shape_cast %375 : vector<16x8xbf16> to vector<2x8x8xbf16>
    %377 = vector.extract_strided_slice %313 {offsets = [0, 24], sizes = [16, 8], strides = [1, 1]} : vector<16x32xbf16> to vector<16x8xbf16>
    %378 = vector.shape_cast %377 : vector<16x8xbf16> to vector<2x8x8xbf16>
    %379 = vector.extract_strided_slice %314 {offsets = [0, 24], sizes = [16, 8], strides = [1, 1]} : vector<16x32xbf16> to vector<16x8xbf16>
    %380 = vector.shape_cast %379 : vector<16x8xbf16> to vector<2x8x8xbf16>
    "tpu.trace_start"() <{level = 10 : i32, message = "bqd,bkd->bqk"}> : () -> ()
    %cst_105 = arith.constant dense<0.000000e+00> : vector<2x8x8xf32>
    %381 = tpu.matmul %376, %378, %cst_105 {dimension_numbers = #tpu.dot_dimension_numbers<[2], [2], [1], [1], [0, 0, 0, 1, 1, 1], [0], [0]>} : vector<2x8x8xbf16>, vector<2x8x8xbf16>, vector<2x8x8xf32> -> vector<2x8x8xf32>
    "tpu.trace_stop"() : () -> ()
    %cst_106 = arith.constant dense<0xFF800000> : vector<2x8xf32>
    %382 = vector.multi_reduction <maximumf>, %381, %cst_106 [2] : vector<2x8x8xf32> to vector<2x8xf32>
    %383 = vector.shape_cast %382 : vector<2x8xf32> to vector<2x8x1xf32>
    %384 = vector.broadcast %383 : vector<2x8x1xf32> to vector<2x8x8xf32>
    %385 = arith.subf %381, %384 : vector<2x8x8xf32>
    %386 = math.exp %385 : vector<2x8x8xf32>
    %cst_107 = arith.constant dense<0.000000e+00> : vector<2x8xf32>
    %387 = vector.multi_reduction <add>, %386, %cst_107 [2] : vector<2x8x8xf32> to vector<2x8xf32>
    %388 = vector.shape_cast %387 : vector<2x8xf32> to vector<2x8x1xf32>
    %389 = tpu.reciprocal %388 {approx = true} : vector<2x8x1xf32> -> vector<2x8x1xf32>
    %390 = vector.broadcast %389 : vector<2x8x1xf32> to vector<2x8x8xf32>
    %391 = arith.mulf %386, %390 : vector<2x8x8xf32>
    %392 = arith.truncf %391 : vector<2x8x8xf32> to vector<2x8x8xbf16>
    "tpu.trace_start"() <{level = 10 : i32, message = "bqk,bkd->bqd"}> : () -> ()
    %cst_108 = arith.constant dense<0.000000e+00> : vector<2x8x8xf32>
    %393 = tpu.matmul %392, %380, %cst_108 {dimension_numbers = #tpu.dot_dimension_numbers<[2], [1], [1], [2], [0, 0, 0, 1, 1, 2], [0], [0]>} : vector<2x8x8xbf16>, vector<2x8x8xbf16>, vector<2x8x8xf32> -> vector<2x8x8xf32>
    "tpu.trace_stop"() : () -> ()
    %394 = vector.shape_cast %393 : vector<2x8x8xf32> to vector<16x8xf32>
    %395 = tpu.concatenate %334, %354, %374, %394 in 1 : vector<16x8xf32>, vector<16x8xf32>, vector<16x8xf32>, vector<16x8xf32> -> vector<16x32xf32>
    %396 = arith.truncf %395 : vector<16x32xf32> to vector<16x32xbf16>
    %cst_109 = arith.constant dense<0.000000e+00> : vector<16x32xf32>
    %397 = tpu.matmul %396, %300, %cst_109 {dimension_numbers = #tpu.dot_dimension_numbers<[1], [0], [0], [1], [0, 0, 1, 1], [], []>} : vector<16x32xbf16>, vector<32x32xbf16>, vector<16x32xf32> -> vector<16x32xf32>
    %398 = vector.extract_strided_slice %174 {offsets = [3, 0], sizes = [1, 32], strides = [1, 1]} : vector<10x32xf32> to vector<1x32xf32>
    %399 = vector.broadcast %398 : vector<1x32xf32> to vector<16x32xf32>
    %400 = arith.addf %397, %399 : vector<16x32xf32>
    %401 = arith.addf %400, %296 : vector<16x32xf32>
    %402 = vector.extract_strided_slice %174 {offsets = [4, 0], sizes = [1, 32], strides = [1, 1]} : vector<10x32xf32> to vector<1x32xf32>
    %403 = vector.extract_strided_slice %174 {offsets = [5, 0], sizes = [1, 32], strides = [1, 1]} : vector<10x32xf32> to vector<1x32xf32>
    %cst_110 = arith.constant dense<0.000000e+00> : vector<16xf32>
    %404 = vector.multi_reduction <add>, %401, %cst_110 [1] : vector<16x32xf32> to vector<16xf32>
    %405 = vector.shape_cast %404 : vector<16xf32> to vector<16x1xf32>
    %cst_111 = arith.constant 3.200000e+01 : f32
    %406 = vector.broadcast %cst_111 : f32 to vector<16x1xf32>
    %407 = arith.divf %405, %406 : vector<16x1xf32>
    %408 = vector.broadcast %407 : vector<16x1xf32> to vector<16x32xf32>
    %409 = arith.subf %401, %408 : vector<16x32xf32>
    %410 = arith.mulf %409, %409 : vector<16x32xf32>
    %cst_112 = arith.constant dense<0.000000e+00> : vector<16xf32>
    %411 = vector.multi_reduction <add>, %410, %cst_112 [1] : vector<16x32xf32> to vector<16xf32>
    %412 = vector.shape_cast %411 : vector<16xf32> to vector<16x1xf32>
    %cst_113 = arith.constant 3.200000e+01 : f32
    %413 = vector.broadcast %cst_113 : f32 to vector<16x1xf32>
    %414 = arith.divf %412, %413 : vector<16x1xf32>
    %cst_114 = arith.constant 9.99999974E-6 : f32
    %415 = vector.broadcast %cst_114 : f32 to vector<16x1xf32>
    %416 = arith.addf %414, %415 : vector<16x1xf32>
    %417 = math.rsqrt %416 : vector<16x1xf32>
    %418 = vector.broadcast %417 : vector<16x1xf32> to vector<16x32xf32>
    %419 = arith.mulf %409, %418 : vector<16x32xf32>
    %420 = vector.broadcast %402 : vector<1x32xf32> to vector<16x32xf32>
    %421 = arith.mulf %419, %420 : vector<16x32xf32>
    %422 = vector.broadcast %403 : vector<1x32xf32> to vector<16x32xf32>
    %423 = arith.addf %421, %422 : vector<16x32xf32>
    %c0_115 = arith.constant 0 : index
    %c0_116 = arith.constant 0 : index
    %424 = vector.load %arg18[%c0_115, %c0_116] : memref<32x32xbf16, #tpu.memory_space<vmem>>, vector<32x32xbf16>
    %c0_117 = arith.constant 0 : index
    %c0_118 = arith.constant 0 : index
    %425 = vector.load %arg19[%c0_117, %c0_118] : memref<32x32xbf16, #tpu.memory_space<vmem>>, vector<32x32xbf16>
    %426 = arith.truncf %423 : vector<16x32xf32> to vector<16x32xbf16>
    %cst_119 = arith.constant dense<0.000000e+00> : vector<16x32xf32>
    %427 = tpu.matmul %426, %424, %cst_119 {dimension_numbers = #tpu.dot_dimension_numbers<[1], [0], [0], [1], [0, 0, 1, 1], [], []>} : vector<16x32xbf16>, vector<32x32xbf16>, vector<16x32xf32> -> vector<16x32xf32>
    %428 = vector.extract_strided_slice %174 {offsets = [6, 0], sizes = [1, 32], strides = [1, 1]} : vector<10x32xf32> to vector<1x32xf32>
    %429 = vector.broadcast %428 : vector<1x32xf32> to vector<16x32xf32>
    %430 = arith.addf %427, %429 : vector<16x32xf32>
    %cst_120 = arith.constant 0.000000e+00 : f32
    %431 = vector.broadcast %cst_120 : f32 to vector<16x32xf32>
    %432 = arith.maximumf %430, %431 : vector<16x32xf32>
    %433 = arith.truncf %432 : vector<16x32xf32> to vector<16x32xbf16>
    %cst_121 = arith.constant dense<0.000000e+00> : vector<16x32xf32>
    %434 = tpu.matmul %433, %425, %cst_121 {dimension_numbers = #tpu.dot_dimension_numbers<[1], [0], [0], [1], [0, 0, 1, 1], [], []>} : vector<16x32xbf16>, vector<32x32xbf16>, vector<16x32xf32> -> vector<16x32xf32>
    %435 = vector.extract_strided_slice %174 {offsets = [7, 0], sizes = [1, 32], strides = [1, 1]} : vector<10x32xf32> to vector<1x32xf32>
    %436 = vector.broadcast %435 : vector<1x32xf32> to vector<16x32xf32>
    %437 = arith.addf %434, %436 : vector<16x32xf32>
    %438 = arith.addf %437, %423 : vector<16x32xf32>
    %439 = vector.extract_strided_slice %174 {offsets = [8, 0], sizes = [1, 32], strides = [1, 1]} : vector<10x32xf32> to vector<1x32xf32>
    %440 = vector.extract_strided_slice %174 {offsets = [9, 0], sizes = [1, 32], strides = [1, 1]} : vector<10x32xf32> to vector<1x32xf32>
    %cst_122 = arith.constant dense<0.000000e+00> : vector<16xf32>
    %441 = vector.multi_reduction <add>, %438, %cst_122 [1] : vector<16x32xf32> to vector<16xf32>
    %442 = vector.shape_cast %441 : vector<16xf32> to vector<16x1xf32>
    %cst_123 = arith.constant 3.200000e+01 : f32
    %443 = vector.broadcast %cst_123 : f32 to vector<16x1xf32>
    %444 = arith.divf %442, %443 : vector<16x1xf32>
    %445 = vector.broadcast %444 : vector<16x1xf32> to vector<16x32xf32>
    %446 = arith.subf %438, %445 : vector<16x32xf32>
    %447 = arith.mulf %446, %446 : vector<16x32xf32>
    %cst_124 = arith.constant dense<0.000000e+00> : vector<16xf32>
    %448 = vector.multi_reduction <add>, %447, %cst_124 [1] : vector<16x32xf32> to vector<16xf32>
    %449 = vector.shape_cast %448 : vector<16xf32> to vector<16x1xf32>
    %cst_125 = arith.constant 3.200000e+01 : f32
    %450 = vector.broadcast %cst_125 : f32 to vector<16x1xf32>
    %451 = arith.divf %449, %450 : vector<16x1xf32>
    %cst_126 = arith.constant 9.99999974E-6 : f32
    %452 = vector.broadcast %cst_126 : f32 to vector<16x1xf32>
    %453 = arith.addf %451, %452 : vector<16x1xf32>
    %454 = math.rsqrt %453 : vector<16x1xf32>
    %455 = vector.broadcast %454 : vector<16x1xf32> to vector<16x32xf32>
    %456 = arith.mulf %446, %455 : vector<16x32xf32>
    %457 = vector.broadcast %439 : vector<1x32xf32> to vector<16x32xf32>
    %458 = arith.mulf %456, %457 : vector<16x32xf32>
    %459 = vector.broadcast %440 : vector<1x32xf32> to vector<16x32xf32>
    %460 = arith.addf %458, %459 : vector<16x32xf32>
    %c0_127 = arith.constant 0 : index
    %c0_128 = arith.constant 0 : index
    %461 = vector.load %arg20[%c0_127, %c0_128] : memref<16x32xf32, #tpu.memory_space<vmem>>, vector<16x32xf32>
    tpu.vector_store %arg20[%c0_127, %c0_128], %460 {strides = array<i32>} : memref<16x32xf32, #tpu.memory_space<vmem>>, vector<16x32xf32>,
    return
  }
}

</mosaic_0001>

<bundles_post_ra>
// kernel: gencoder_forward.1
= control target key start
LH: loop header
LB: loop body
LE: loop exit
PB: predicated region body
PF: predicated region fallthrough
CT: control target
= control target key end

     0   :  { %s6142_s0 = inlined_call_operand.vmem [shape: f32[2,8,32], index: 0, kind: input, shape index: {}]   ;;  %s6143_s1 = inlined_call_operand.vmem [shape: f32[2,8,32], index: 1, kind: input, shape index: {}]   ;;  %s6144_s2 = inlined_call_operand.hbm [shape: f32[8,32], index: 2, kind: input, shape index: {}]   ;;  %s6145_s3 = inlined_call_operand.hbm [shape: f32[7,32], index: 3, kind: input, shape index: {}]   ;;  %s6146_s4 = inlined_call_operand.hbm [shape: bf16[32,32], index: 4, kind: input, shape index: {}]   ;;  %s6147_s5 = inlined_call_operand.hbm [shape: bf16[32,64], index: 5, kind: input, shape index: {}]   ;;  %s6148_s6 = inlined_call_operand.vmem [shape: f32[1,96], index: 6, kind: input, shape index: {}, may-alias: {6,12,16}]   ;;  %s6149_s7 = inlined_call_operand.hbm [shape: bf16[32,32], index: 7, kind: input, shape index: {}]   ;;  %s6150_s8 = inlined_call_operand.hbm [shape: bf16[32,32], index: 8, kind: input, shape index: {}]   ;;  %s6151_s9 = inlined_call_operand.hbm [shape: bf16[32,32], index: 9, kind: input, shape index: {}]   ;;  %s6152_s10 = inlined_call_operand.hbm [shape: f32[10,32], index: 10, kind: input, shape index: {}]   ;;  %s6153_s11 = inlined_call_operand.hbm [shape: bf16[32,96], index: 11, kind: input, shape index: {}]   ;;  %s6154_s12 = inlined_call_operand.vmem [shape: f32[1,96], index: 12, kind: input, shape index: {}, may-alias: {6,12,16}]   ;;  %s6155_s13 = inlined_call_operand.hbm [shape: bf16[32,32], index: 13, kind: input, shape index: {}]   ;;  %s6156_s14 = inlined_call_operand.hbm [shape: bf16[32,32], index: 14, kind: input, shape index: {}]   ;;  %s6157_s15 = inlined_call_operand.vmem [shape: bf16[32,64], index: 15, kind: input, shape index: {}]   ;;  %s6158_s16 = inlined_call_operand.vmem [shape: f32[1,96], index: 16, kind: input, shape index: {}, may-alias: {6,12,16}]   ;;  %s6159_s17 = inlined_call_operand.vmem [shape: bf16[32,32], index: 17, kind: input, shape index: {}]   ;;  %s6160_s18 = inlined_call_operand.vmem [shape: bf16[32,32], index: 18, kind: input, shape index: {}]   ;;  %s6161_s19 = inlined_call_operand.vmem [shape: bf16[32,32], index: 19, kind: input, shape index: {}]   ;;  %s6162_s20 = inlined_call_operand.hbm [shape: f32[16,32], index: 20, kind: output, shape index: {}]  }
   0x1   :  { %6171 = sst [smem:[#allocation28_spill]] %s6142_s0 }
   0x2   :  { %6172 = sst [smem:[#allocation29_spill]] %s6143_s1 }
   0x3   :  { %6173 = sst [smem:[#allocation30_spill]] %s6144_s2 }
   0x4   :  { %6174 = sst [smem:[#allocation31_spill]] %s6145_s3 }
   0x5   :  { %6175 = sst [smem:[#allocation32_spill]] %s6146_s4 }
   0x6   :  { %25 = vsyncpa [#allocation3], 0 }
   0x7   :  { %26 = vsyncpa [#allocation6], 0 }
   0x8   :  { %27 = vsyncpa [#allocation9], 0 }
   0x9   :  { %28 = vsyncpa [#allocation12], 0 }
   0xa   :  { %29 = vsyncpa [#allocation15], 0 }
   0xb   :  { %30 = vsyncpa [#allocation18], 0 }
   0xc   :  { %31 = vsyncpa [#allocation4], 0  ;;  %s5095_s1 = smov [#allocation5]   ;;  %s6176_s2 = sld [smem:[#allocation31_spill]] }
   0xd   :  { %s52_s22 = sshll.u32 %s5095_s1, 4  ;;  %s53_s22 = int_to_ptr.vmem [resolvable:$true] %s52_s22 }
  0x12   :  { %s4817_s25 = scalar_lea.hbm %s6176_s2, 128 }
  0x13   :  { %p4818_p0 = scmp.ne.s32.totalorder %s6176_s2, %s4817_s25  ;;  %p4821_p1 = scmp.lt.u32.totalorder %s4817_s25, %s6176_s2 }
  0x15   :  { %p4823_p2 = pnand %p4821_p1, %p4818_p0 }
  0x17   :  { %4826 = shalt.err (!%p4823_p2)
}
  0x18   :  { %s4827_s4 = scalar_lea.vmem %s53_s22, 128  ;;  %p4832_p4 = scmp.lt.s32.totalorder %s53_s22, %s53_s22 }
  0x19   :  { %p4828_p3 = scmp.ne.s32.totalorder %s53_s22, %s4827_s4  ;;  %p4833_p5 = scmp.lt.s32.totalorder %s4827_s4, %s4827_s4 }
  0x1b   :  { %p4834_p6 = por %p4833_p5, %p4832_p4 }
  0x1d   :  { %p4835_p7 = pnand %p4834_p6, %p4828_p3 }
  0x1f   :  { %4838 = shalt.err (!%p4835_p7)
}
  0x20   :  { %55 = dma.hbm_to_vmem [thread:$0]  %s6176_s2, 128, %s53_s22, [#allocation6]  }
  0x21   :  { %s5096_s0 = smov [#allocation8]   ;;  %s5097_s1 = smov [#allocation11]  }
  0x22   :  { %s73_s21 = sshll.u32 %s5096_s0, 4  ;;  %s99_s23 = sshll.u32 %s5097_s1, 4  ;;  %s74_s21 = int_to_ptr.vmem [resolvable:$true] %s73_s21  ;;  %s100_s23 = int_to_ptr.vmem [resolvable:$true] %s99_s23 }
  0x23   :  { %s4839_s3 = scalar_lea.hbm %s6147_s5, 256 }
  0x24   :  { %p4840_p8 = scmp.ne.s32.totalorder %s6147_s5, %s4839_s3  ;;  %p4843_p9 = scmp.lt.u32.totalorder %s4839_s3, %s6147_s5 }
  0x26   :  { %p4845_p10 = pnand %p4843_p9, %p4840_p8 }
  0x28   :  { %4848 = shalt.err (!%p4845_p10)
}
  0x29   :  { %s4849_s22 = scalar_lea.vmem %s74_s21, 256  ;;  %p4854_p12 = scmp.lt.s32.totalorder %s74_s21, %s74_s21 }
  0x2a   :  { %p4850_p11 = scmp.ne.s32.totalorder %s74_s21, %s4849_s22  ;;  %p4855_p13 = scmp.lt.s32.totalorder %s4849_s22, %s4849_s22 }
  0x2c   :  { %p4856_p0 = por %p4855_p13, %p4854_p12 }
  0x2e   :  { %p4857_p1 = pnand %p4856_p0, %p4850_p11 }
  0x30   :  { %4860 = shalt.err (!%p4857_p1)
}
  0x31   :  { %s6168_s2 = smov 64   ;;  %s5099_s29 = smov 4  }
  0x32   :  { %79 = dma.hbm_to_vmem [thread:$0]  %s6147_s5, 256, %s74_s21, [#allocation9], %s6168_s2, %s6168_s2, %s5099_s29  }
  0x33   :  { %s4861_s25 = scalar_lea.hbm %s6150_s8, 256 }
  0x34   :  { %p4862_p2 = scmp.ne.s32.totalorder %s6150_s8, %s4861_s25  ;;  %p4865_p3 = scmp.lt.u32.totalorder %s4861_s25, %s6150_s8 }
  0x36   :  { %p4867_p4 = pnand %p4865_p3, %p4862_p2 }
  0x38   :  { %4870 = shalt.err (!%p4867_p4)
}
  0x39   :  { %s4871_s4 = scalar_lea.vmem %s100_s23, 256  ;;  %p4876_p6 = scmp.lt.s32.totalorder %s100_s23, %s100_s23 }
  0x3a   :  { %p4872_p5 = scmp.ne.s32.totalorder %s100_s23, %s4871_s4  ;;  %p4877_p7 = scmp.lt.s32.totalorder %s4871_s4, %s4871_s4 }
  0x3c   :  { %p4878_p8 = por %p4877_p7, %p4876_p6 }
  0x3e   :  { %p4879_p9 = pnand %p4878_p8, %p4872_p5 }
  0x40   :  { %4882 = shalt.err (!%p4879_p9)
}
  0x41   :  { %105 = dma.hbm_to_vmem [thread:$0]  %s6150_s8, 256, %s100_s23, [#allocation12], %s6168_s2, %s6168_s2, %s5099_s29  }
  0x42   :  { %s5100_s22 = smov [#allocation14]   ;;  %s4883_s24 = scalar_lea.hbm %s6152_s10, 256 }
  0x43   :  { %s123_s30 = sshll.u32 %s5100_s22, 4  ;;  %p4884_p10 = scmp.ne.s32.totalorder %s6152_s10, %s4883_s24  ;;  %s124_s30 = int_to_ptr.vmem [resolvable:$true] %s123_s30 }
  0x44   :  { %p4887_p11 = scmp.lt.u32.totalorder %s4883_s24, %s6152_s10 }
  0x46   :  { %p4889_p12 = pnand %p4887_p11, %p4884_p10 }
  0x48   :  { %4892 = shalt.err (!%p4889_p12)
}
  0x49   :  { %s4893_s28 = scalar_lea.vmem %s124_s30, 256  ;;  %p4898_p0 = scmp.lt.s32.totalorder %s124_s30, %s124_s30 }
  0x4a   :  { %p4894_p13 = scmp.ne.s32.totalorder %s124_s30, %s4893_s28  ;;  %p4899_p1 = scmp.lt.s32.totalorder %s4893_s28, %s4893_s28 }
  0x4c   :  { %p4900_p2 = por %p4899_p1, %p4898_p0 }
  0x4e   :  { %p4901_p3 = pnand %p4900_p2, %p4894_p13 }
  0x50   :  { %4904 = shalt.err (!%p4901_p3)
}
  0x51   :  { %s6170_s8 = smov 128   ;;  %s5102_s23 = smov 8  }
  0x52   :  { %129 = dma.hbm_to_vmem [thread:$0]  %s6152_s10, 256, %s124_s30, [#allocation15], %s6170_s8, %s6170_s8, %s5102_s23  }
  0x53   :  { %s5103_s21 = smov [#allocation17]   ;;  %s5104_s0 = smov [#allocation2]  }
  0x54   :  { %s149_s22 = sshll.u32 %s5103_s21, 4  ;;  %s42_s1 = sshll.u32 %s5104_s0, 4  ;;  %s150_s22 = int_to_ptr.vmem [resolvable:$true] %s149_s22  ;;  %s43_s1 = int_to_ptr.vmem [resolvable:$true] %s42_s1 }
  0x55   :  { %s4905_s3 = scalar_lea.hbm %s6155_s13, 256 }
  0x56   :  { %p4906_p4 = scmp.ne.s32.totalorder %s6155_s13, %s4905_s3  ;;  %p4909_p5 = scmp.lt.u32.totalorder %s4905_s3, %s6155_s13 }
  0x58   :  { %p4911_p6 = pnand %p4909_p5, %p4906_p4 }
  0x5a   :  { %4914 = shalt.err (!%p4911_p6)
}
  0x5b   :  { %s4915_s10 = scalar_lea.vmem %s150_s22, 256  ;;  %p4920_p8 = scmp.lt.s32.totalorder %s150_s22, %s150_s22 }
  0x5c   :  { %p4916_p7 = scmp.ne.s32.totalorder %s150_s22, %s4915_s10  ;;  %p4921_p9 = scmp.lt.s32.totalorder %s4915_s10, %s4915_s10 }
  0x5e   :  { %p4922_p10 = por %p4921_p9, %p4920_p8 }
  0x60   :  { %p4923_p11 = pnand %p4922_p10, %p4916_p7 }
  0x62   :  { %4926 = shalt.err (!%p4923_p11)
}
  0x63   :  { %s6177_s30 = smov 64   ;;  %s6178_s2 = sld [smem:[#allocation30_spill]] }
  0x64   :  { %155 = dma.hbm_to_vmem [thread:$0]  %s6155_s13, 256, %s150_s22, [#allocation18], %s6177_s30, %s6177_s30, %s5099_s29  }
  0x69   :  { %s4927_s24 = scalar_lea.hbm %s6178_s2, 128 }
  0x6a   :  { %p4928_p12 = scmp.ne.s32.totalorder %s6178_s2, %s4927_s24  ;;  %p4931_p13 = scmp.lt.u32.totalorder %s4927_s24, %s6178_s2 }
  0x6c   :  { %p4933_p0 = pnand %p4931_p13, %p4928_p12 }
  0x6e   :  { %4936 = shalt.err (!%p4933_p0)
}
  0x6f   :  { %s4937_s28 = scalar_lea.vmem %s43_s1, 128  ;;  %p4942_p2 = scmp.lt.s32.totalorder %s43_s1, %s43_s1 }
  0x70   :  { %p4938_p1 = scmp.ne.s32.totalorder %s43_s1, %s4937_s28  ;;  %p4943_p3 = scmp.lt.s32.totalorder %s4937_s28, %s4937_s28 }
  0x72   :  { %p4944_p4 = por %p4943_p3, %p4942_p2 }
  0x74   :  { %p4945_p5 = pnand %p4944_p4, %p4938_p1 }
  0x76   :  { %4948 = shalt.err (!%p4945_p5)
}
  0x77   :  { %45 = dma.hbm_to_vmem [thread:$0]  %s6178_s2, 128, %s43_s1, [#allocation3]  }
  0x78   :  { %s5105_s10 = smov [#allocation7]   ;;  %s5106_s5 = smov [#allocation10]  }
  0x79   :  { %s61_s4 = sshll.u32 %s5105_s10, 4  ;;  %s87_s21 = sshll.u32 %s5106_s5, 4  ;;  %s62_s4 = int_to_ptr.vmem [resolvable:$true] %s61_s4  ;;  %s5314_s21 = int_to_ptr.vmem [resolvable:$true] %s87_s21 }
  0x7a   :  { %s6179_s25 = sld [smem:[#allocation32_spill]] }
  0x80   :  { %s4949_s3 = scalar_lea.hbm %s6179_s25, 256 }
  0x81   :  { %p4950_p6 = scmp.ne.s32.totalorder %s6179_s25, %s4949_s3  ;;  %p4953_p7 = scmp.lt.u32.totalorder %s4949_s3, %s6179_s25 }
  0x83   :  { %p4955_p8 = pnand %p4953_p7, %p4950_p6 }
  0x85   :  { %4958 = shalt.err (!%p4955_p8)
}
  0x86   :  { %s4959_s1 = scalar_lea.vmem %s62_s4, 256  ;;  %p4964_p10 = scmp.lt.s32.totalorder %s62_s4, %s62_s4 }
  0x87   :  { %p4960_p9 = scmp.ne.s32.totalorder %s62_s4, %s4959_s1  ;;  %p4965_p11 = scmp.lt.s32.totalorder %s4959_s1, %s4959_s1 }
  0x89   :  { %p4966_p12 = por %p4965_p11, %p4964_p10 }
  0x8b   :  { %p4967_p13 = pnand %p4966_p12, %p4960_p9 }
  0x8d   :  { %4970 = shalt.err (!%p4967_p13)
}
  0x8e   :  { %67 = dma.hbm_to_vmem [thread:$0]  %s6179_s25, 256, %s62_s4, [#allocation6], %s6177_s30, %s6177_s30, %s5099_s29  }
  0x8f   :  { %s4971_s8 = scalar_lea.hbm %s6149_s7, 256 }
  0x90   :  { %p4972_p0 = scmp.ne.s32.totalorder %s6149_s7, %s4971_s8  ;;  %p4975_p1 = scmp.lt.u32.totalorder %s4971_s8, %s6149_s7 }
  0x92   :  { %p4977_p2 = pnand %p4975_p1, %p4972_p0 }
  0x94   :  { %4980 = shalt.err (!%p4977_p2)
}
  0x95   :  { %s4981_s26 = scalar_lea.vmem %s5314_s21, 256  ;;  %p4986_p4 = scmp.lt.s32.totalorder %s5314_s21, %s5314_s21 }
  0x96   :  { %p4982_p3 = scmp.ne.s32.totalorder %s5314_s21, %s4981_s26  ;;  %p4987_p5 = scmp.lt.s32.totalorder %s4981_s26, %s4981_s26 }
  0x98   :  { %p4988_p6 = por %p4987_p5, %p4986_p4 }
  0x9a   :  { %p4989_p7 = pnand %p4988_p6, %p4982_p3 }
  0x9c   :  { %4992 = shalt.err (!%p4989_p7)
}
  0x9d   :  { %93 = dma.hbm_to_vmem [thread:$0]  %s6149_s7, 256, %s5314_s21, [#allocation9], %s6177_s30, %s6177_s30, %s5099_s29  }
  0x9e   :  { %s5107_s27 = smov [#allocation13]   ;;  %s5108_s1 = smov [#allocation16]  }
  0x9f   :  { %s111_s28 = sshll.u32 %s5107_s27, 4  ;;  %s135_s2 = sshll.u32 %s5108_s1, 4  ;;  %s112_s28 = int_to_ptr.vmem [resolvable:$true] %s111_s28  ;;  %s5351_s2 = int_to_ptr.vmem [resolvable:$true] %s135_s2 }
  0xa0   :  { %s4993_s10 = scalar_lea.hbm %s6151_s9, 256 }
  0xa1   :  { %p4994_p8 = scmp.ne.s32.totalorder %s6151_s9, %s4993_s10  ;;  %p4997_p9 = scmp.lt.u32.totalorder %s4993_s10, %s6151_s9 }
  0xa3   :  { %p4999_p10 = pnand %p4997_p9, %p4994_p8 }
  0xa5   :  { %5002 = shalt.err (!%p4999_p10)
}
  0xa6   :  { %s5003_s7 = scalar_lea.vmem %s112_s28, 256  ;;  %p5008_p12 = scmp.lt.s32.totalorder %s112_s28, %s112_s28 }
  0xa7   :  { %p5004_p11 = scmp.ne.s32.totalorder %s112_s28, %s5003_s7  ;;  %p5009_p13 = scmp.lt.s32.totalorder %s5003_s7, %s5003_s7 }
  0xa9   :  { %p5010_p0 = por %p5009_p13, %p5008_p12 }
  0xab   :  { %p5011_p1 = pnand %p5010_p0, %p5004_p11 }
  0xad   :  { %5014 = shalt.err (!%p5011_p1)
}
  0xae   :  { %117 = dma.hbm_to_vmem [thread:$0]  %s6151_s9, 256, %s112_s28, [#allocation12], %s6177_s30, %s6177_s30, %s5099_s29  }
  0xaf   :  { %s5015_s25 = scalar_lea.hbm %s6153_s11, 256 }
  0xb0   :  { %p5016_p2 = scmp.ne.s32.totalorder %s6153_s11, %s5015_s25  ;;  %p5019_p3 = scmp.lt.u32.totalorder %s5015_s25, %s6153_s11 }
  0xb2   :  { %p5021_p4 = pnand %p5019_p3, %p5016_p2 }
  0xb4   :  { %5024 = shalt.err (!%p5021_p4)
}
  0xb5   :  { %s5025_s10 = scalar_lea.vmem %s5351_s2, 256  ;;  %p5030_p6 = scmp.lt.s32.totalorder %s5351_s2, %s5351_s2 }
  0xb6   :  { %p5026_p5 = scmp.ne.s32.totalorder %s5351_s2, %s5025_s10  ;;  %p5031_p7 = scmp.lt.s32.totalorder %s5025_s10, %s5025_s10 }
  0xb8   :  { %p5032_p8 = por %p5031_p7, %p5030_p6 }
  0xba   :  { %p5033_p9 = pnand %p5032_p8, %p5026_p5 }
  0xbc   :  { %5036 = shalt.err (!%p5033_p9)
}
  0xbd   :  { %141 = dma.hbm_to_vmem [thread:$0]  %s6153_s11, 256, %s5351_s2, [#allocation15], %s6177_s30, %s6177_s30, %s5099_s29  }
  0xbe   :  { %s5109_s8 = smov [#allocation19]   ;;  %s5037_s7 = scalar_lea.hbm %s6156_s14, 256 }
  0xbf   :  { %s161_s5 = sshll.u32 %s5109_s8, 4  ;;  %p5038_p10 = scmp.ne.s32.totalorder %s6156_s14, %s5037_s7  ;;  %s162_s5 = int_to_ptr.vmem [resolvable:$true] %s161_s5 }
  0xc0   :  { %p5041_p11 = scmp.lt.u32.totalorder %s5037_s7, %s6156_s14 }
  0xc2   :  { %p5043_p12 = pnand %p5041_p11, %p5038_p10 }
  0xc4   :  { %5046 = shalt.err (!%p5043_p12)
}
  0xc5   :  { %s5047_s25 = scalar_lea.vmem %s162_s5, 256  ;;  %p5052_p0 = scmp.lt.s32.totalorder %s162_s5, %s162_s5 }
  0xc6   :  { %p5048_p13 = scmp.ne.s32.totalorder %s162_s5, %s5047_s25  ;;  %p5053_p1 = scmp.lt.s32.totalorder %s5047_s25, %s5047_s25 }
  0xc8   :  { %p5054_p2 = por %p5053_p1, %p5052_p0 }
  0xca   :  { %p5055_p3 = pnand %p5054_p2, %p5048_p13 }
  0xcc   :  { %5058 = shalt.err (!%p5055_p3)
}
  0xcd   :  { %167 = dma.hbm_to_vmem [thread:$0]  %s6156_s14, 256, %s162_s5, [#allocation18], %s6177_s30, %s6177_s30, %s5099_s29  }
  0xce   :  { %5081 = dma.done.wait [#allocation3], 128  }
  0xcf   :  { %5082 = vsyncadd [#allocation3], 4294967168 }
  0xd0   :  { %5083 = dma.done.wait [#allocation6], 384  }
  0xd1   :  { %5084 = vsyncadd [#allocation6], 4294966912 }
  0xd2   :  { %5085 = dma.done.wait [#allocation9], 512  }
  0xd3   :  { %5086 = vsyncadd [#allocation9], 4294966784 }
  0xd4   :  { %5087 = dma.done.wait [#allocation12], 512  }
  0xd5   :  { %5088 = vsyncadd [#allocation12], 4294966784 }
  0xd6   :  { %5089 = dma.done.wait [#allocation15], 512  }
  0xd7   :  { %5090 = vsyncadd [#allocation15], 4294966784 }
  0xd8   :  { %5091 = dma.done.wait [#allocation18], 512  }
  0xd9   :  { %5092 = vsyncadd [#allocation18], 4294966784  ;;  %v5110_v0 = vmov 0.0   ;;  %vm5111_vm0 = vmmov 0   ;;  %v4677_v1 = vld [vmem:[#allocation8] sm:$0xff]   ;;  %v4678_v2 = vld [vmem:[#allocation8 + $0x8] sm:$0xff]  }
  0xda   :  { %4226 = vmatprep.subr.bf16.mxu1 %v5110_v0  ;;  %4218 = vmatprep.subr.bf16.mxu0 %v5110_v0  ;;  %v4679_v3 = vld [vmem:[#allocation7] sm:$0xff]   ;;  %s6180_s27 = sld [smem:[#allocation29_spill]]  ;;  %v4680_v6 = vld [vmem:[#allocation7 + $0x8] sm:$0xff]   ;;  %s6181_s9 = sld [smem:[#allocation28_spill]]  ;;  %vm253_vm1 = vcmask 261120   ;;  %v216_v10 = vld [vmem:[#allocation2] sm:$0xff] }
  0xdb   :  { %4230 = vmatprep.mubr.msk.bf16.mxu1 %vm5111_vm0, %v5110_v0  ;;  %4222 = vmatprep.mubr.msk.bf16.mxu0 %vm5111_vm0, %v5110_v0  ;;  %v3979_v11 = vld [vmem:[%s6148_s6] ss:$0 sm:$0xff]  ;;  %s5112_s24 = smov 96   ;;  %vm369_vm2 = vcmask 64512   ;;  %s5113_s6 = smov 120   ;;  %vm491_vm3 = vcmask 1043456  }
  0xdc   :  { %4227 = vmatpush3.bf16.msra.mxu1 %v4677_v1  ;;  %4219 = vmatpush3.bf16.msra.mxu0 %v4679_v3  ;;  %s5114_s7 = smov 88   ;;  %s5115_s21 = smov 112   ;;  %vm1269_vm4 = vcmask 130048   ;;  %vm1272_vm5 = vcmask 195584  }
  0xdd   :  { %4228 = vmatprep.subr.bf16.mxu1 %v5110_v0  ;;  %4220 = vmatprep.subr.bf16.mxu0 %v5110_v0  ;;  %s5116_s3 = smov 80   ;;  %s5117_s26 = smov 104  }
  0xde   :  { %310 = vrot.lane.b32.xlu0 %v3979_v11, %s5112_s24  ;;  %s5118_s4 = smov 72   ;;  %s5119_s25 = smov 16  }
  0xdf   :  { %s5120_s11 = smov 24   ;;  %s5123_s29 = smov 40  }
  0xe0   :  { %v214_v4 = vld [vmem:[%s6180_s27] sm:$0xff]  ;;  %v215_v5 = vld [vmem:[%s6180_s27 + $0x8] sm:$0xff]  ;;  %4229 = vmatpush3.bf16.msra.mxu1 %v4678_v2  ;;  %4221 = vmatpush3.bf16.msra.mxu0 %v4680_v6 }
  0xe1   :  { %v212_v7 = vld [vmem:[%s6181_s9] sm:$0xff]  ;;  %v5419_v8 = vpack.c.bf16 %v215_v5, %v214_v4  ;;  %v213_v9 = vld [vmem:[%s6181_s9 + $0x8] sm:$0xff]  ;;  %4240 = vmatprep.subr.bf16.mxu1 %v5110_v0  ;;  %4234 = vmatprep.subr.bf16.mxu0 %v5110_v0 }
  0xe2   :  { %v5428_v12 = vadd.f32 %v216_v10, %v212_v7  ;;  %v5430_v13 = vadd.f32 %v216_v10, %v213_v9 }
  0xe3   :  { %4231 = vmatmul.mubr.msk.bf16.vlgmr.msra.gmra.mrb[0].mxu1 %vm253_vm1, %v5419_v8 }
  0xe4   :  { %v234_v14 = vpack.c.bf16 %v5430_v13, %v5428_v12  ;;  %4242 = vmatprep.mubr.msk.bf16.mxu1 %vm5111_vm0, %v5110_v0 }
  0xe6   :  { %4223 = vmatmul.mubr.msk.bf16.vlgmr.msra.gmra.mrb[0].mxu0 %vm253_vm1, %v234_v14 }
  0xe7   :  { %4236 = vmatprep.mubr.msk.bf16.mxu0 %vm5111_vm0, %v5110_v0 }
 0x150   :  { %v311_v15 = vpop.permute.xlu0 %310 }
 0x1b6   :  { %v350_v16 = vpop.f32.mrb[0].mxu1 }
 0x1b7   :  { %v351_v17 = vadd.f32 %v350_v16, %v311_v15  ;;  %v4232_v18 = vpop.f32.mrb[1].mxu1 }
 0x1b8   :  { %v353_v19 = vpop.f32.mrb[2].mxu1 }
 0x1b9   :  { %v291_v20 = vpop.f32.mrb[0].mxu0  ;;  %v5444_v21 = vpack.c.bf16 %v351_v17, %v351_v17  ;;  %v354_v22 = vadd.f32 %v353_v19, %v311_v15  ;;  %v4233_v23 = vpop.f32.mrb[3].mxu1 }
 0x1ba   :  { %v4224_v24 = vpop.f32.mrb[1].mxu0  ;;  %v292_v27 = vadd.f32 %v3979_v11, %v291_v20 }
 0x1bb   :  { %v294_v25 = vpop.f32.mrb[2].mxu0  ;;  %v5446_v26 = vpack.c.bf16 %v354_v22, %v354_v22  ;;  %v374_v28 = vsel %vm369_vm2, %v5444_v21, 0 }
 0x1bc   :  { %v4225_v29 = vpop.f32.mrb[3].mxu0  ;;  %4235 = vmatpush3.bf16.xpose.msra.mxu0 %v374_v28  ;;  %v5453_v31 = vpack.c.bf16 %v292_v27, %v292_v27  ;;  %v295_v32 = vadd.f32 %v3979_v11, %v294_v25 }
 0x1bd   :  { %v420_v30 = vsel %vm369_vm2, %v5446_v26, 0  ;;  %4246 = vmatprep.subr.bf16.mxu0 %v5110_v0 }
 0x1be   :  { %4241 = vmatpush3.bf16.xpose.msra.mxu1 %v420_v30  ;;  %v5456_v33 = vpack.c.bf16 %v295_v32, %v295_v32 }
 0x1bf   :  { %4252 = vmatprep.subr.bf16.mxu1 %v5110_v0 }
 0x1c3   :  { %4237 = vmatmul.mubr.msk.bf16.vlgmr.msra.gmra.mrb[4].mxu0 %vm369_vm2, %v5453_v31 }
 0x1c4   :  { %4248 = vmatprep.mubr.msk.bf16.mxu0 %vm5111_vm0, %v5110_v0 }
 0x1c5   :  { %4243 = vmatmul.mubr.msk.bf16.vlgmr.msra.gmra.mrb[4].mxu1 %vm369_vm2, %v5456_v33 }
 0x1c6   :  { %4254 = vmatprep.mubr.msk.bf16.mxu1 %vm5111_vm0, %v5110_v0 }
 0x296   :  { %v410_v34 = vpop.f32.mrb[4].mxu0 }
 0x297   :  { %v4238_v35 = vpop.f32.mrb[5].mxu0  ;;  %v462_v36 = vsel %vm369_vm2, %v410_v34, -inf }
 0x298   :  { %v456_v37 = vpop.f32.mrb[4].mxu1  ;;  %463 = vmax.xlane.f32.xlu0 %v462_v36  ;;  %v413_v38 = vpop.f32.mrb[6].mxu0 }
 0x299   :  { %v4239_v39 = vpop.f32.mrb[7].mxu0  ;;  %v4244_v40 = vpop.f32.mrb[5].mxu1  ;;  %v465_v41 = vsel %vm369_vm2, %v456_v37, -inf }
 0x29a   :  { %466 = vmax.xlane.f32.xlu1 %v465_v41  ;;  %v459_v42 = vpop.f32.mrb[6].mxu1 }
 0x29b   :  { %v4245_v43 = vpop.f32.mrb[7].mxu1 }
 0x2ab   :  { %486 = vrot.lane.b32.xlu1 %v5444_v21, %s5112_s24 }
 0x2ae   :  { %635 = vrot.lane.b32.xlu0 %v5446_v26, %s5113_s6 }
 0x2af   :  { %535 = vrot.lane.b32.xlu1 %v5446_v26, %s5112_s24 }
 0x2b3   :  { %585 = vrot.lane.b32.xlu1 %v5444_v21, %s5113_s6 }
 0x325   :  { %v464_v44 = vpop.xlane.xlu0 %463 }
 0x326   :  { %v468_v45 = vsub.f32 %v410_v34, %v464_v44 }
 0x327   :  { %v467_v46 = vpop.xlane.xlu1 %466 }
 0x328   :  { %v470_v47 = vmul.f32 1.442695, %v468_v45  ;;  %v469_v48 = vsub.f32 %v456_v37, %v467_v46 }
 0x329   :  { %v636_v4 = vpop.permute.xlu0 %635 }
 0x32a   :  { %4701 = vpow2.f32 %v470_v47  ;;  %v472_v49 = vmul.f32 1.442695, %v469_v48  ;;  %v641_v6 = vsel %vm369_vm2, %v636_v4, 0 }
 0x32b   :  { %v487_v50 = vpop.permute.xlu1 %486 }
 0x32c   :  { %4703 = vpow2.f32 %v472_v49  ;;  %v493_v51 = vsel %vm491_vm3, %v487_v50, 0 }
 0x32d   :  { %4247 = vmatpush3.bf16.msra.mxu0 %v493_v51 }
 0x32e   :  { %4258 = vmatprep.subr.bf16.mxu0 %v5110_v0 }
 0x32f   :  { %v536_v52 = vpop.permute.xlu1 %535 }
 0x330   :  { %v541_v53 = vsel %vm491_vm3, %v536_v52, 0 }
 0x331   :  { %4253 = vmatpush3.bf16.msra.mxu1 %v541_v53 }
 0x332   :  { %4264 = vmatprep.subr.bf16.mxu1 %v5110_v0 }
 0x333   :  { %v586_v58 = vpop.permute.xlu1 %585 }
 0x334   :  { %v4702_v54 = vpop.eup %4701  ;;  %v591_v2 = vsel %vm369_vm2, %v586_v58, 0 }
 0x335   :  { %v474_v55 = vsel %vm369_vm2, %v4702_v54, 0.0 }
 0x336   :  { %v4704_v56 = vpop.eup %4703  ;;  %475 = vadd.xlane.f32.xlu1 %v474_v55 }
 0x337   :  { %v477_v57 = vsel %vm369_vm2, %v4704_v56, 0.0 }
 0x33a   :  { %478 = vadd.xlane.f32.xlu1 %v477_v57 }
 0x34b   :  { %583 = vrot.lane.b32.xlu1 %v5453_v31, %s5113_s6 }
 0x34f   :  { %633 = vrot.lane.b32.xlu1 %v5456_v33, %s5113_s6 }
 0x3c3   :  { %v476_v59 = vpop.xlane.xlu1 %475 }
 0x3c4   :  { %4705 = vrcp.f32 %v476_v59 }
 0x3c7   :  { %v479_v60 = vpop.xlane.xlu1 %478 }
 0x3c8   :  { %4707 = vrcp.f32 %v479_v60 }
 0x3cb   :  { %v584_v7 = vpop.permute.xlu1 %583 }
 0x3ce   :  { %v4706_v61 = vpop.eup %4705 }
 0x3cf   :  { %v482_v62 = vmul.f32 %v4706_v61, %v4702_v54  ;;  %v634_v9 = vpop.permute.xlu1 %633 }
 0x3d1   :  { %v484_v63 = vpack.c.bf16 %v482_v62, %v482_v62 }
 0x3d2   :  { %v4708_v1 = vpop.eup %4707 }
 0x3d3   :  { %4249 = vmatmul.mubr.msk.bf16.vlgmr.msra.gmra.mrb[8].mxu0 %vm369_vm2, %v484_v63  ;;  %v483_v3 = vmul.f32 %v4708_v1, %v4704_v56 }
 0x3d4   :  { %4259 = vmatpush3.bf16.xpose.msra.mxu0 %v591_v2  ;;  %4260 = vmatprep.mubr.msk.bf16.mxu0 %vm5111_vm0, %v5110_v0 }
 0x3d5   :  { %v485_v5 = vpack.c.bf16 %v483_v3, %v483_v3  ;;  %4270 = vmatprep.subr.bf16.mxu0 %v5110_v0 }
 0x3d7   :  { %4255 = vmatmul.mubr.msk.bf16.vlgmr.msra.gmra.mrb[8].mxu1 %vm369_vm2, %v485_v5 }
 0x3d8   :  { %4265 = vmatpush3.bf16.xpose.msra.mxu1 %v641_v6  ;;  %4266 = vmatprep.mubr.msk.bf16.mxu1 %vm5111_vm0, %v5110_v0 }
 0x3d9   :  { %4276 = vmatprep.subr.bf16.mxu1 %v5110_v0 }
 0x3db   :  { %4261 = vmatmul.mubr.msk.bf16.vlgmr.msra.gmra.mrb[12].mxu0 %vm369_vm2, %v584_v7 }
 0x3dc   :  { %4272 = vmatprep.mubr.msk.bf16.mxu0 %vm5111_vm0, %v5110_v0 }
 0x3df   :  { %4267 = vmatmul.mubr.msk.bf16.vlgmr.msra.gmra.mrb[12].mxu1 %vm369_vm2, %v634_v9 }
 0x3e0   :  { %4278 = vmatprep.mubr.msk.bf16.mxu1 %vm5111_vm0, %v5110_v0 }
 0x4a6   :  { %v5502_v10 = vpop.f32.mrb[8].mxu0 }
 0x4a7   :  { %v4250_v11 = vpop.f32.mrb[9].mxu0 }
 0x4a8   :  { %v532_v14 = vpop.f32.mrb[10].mxu0 }
 0x4a9   :  { %v4251_v15 = vpop.f32.mrb[11].mxu0 }
 0x4aa   :  { %v5504_v16 = vpop.f32.mrb[8].mxu1 }
 0x4ab   :  { %v4256_v17 = vpop.f32.mrb[9].mxu1 }
 0x4ac   :  { %v580_v18 = vpop.f32.mrb[10].mxu1 }
 0x4ad   :  { %v4257_v19 = vpop.f32.mrb[11].mxu1 }
 0x4ae   :  { %v627_v20 = vpop.f32.mrb[12].mxu0 }
 0x4af   :  { %v4262_v22 = vpop.f32.mrb[13].mxu0  ;;  %v683_v23 = vsel %vm369_vm2, %v627_v20, -inf }
 0x4b0   :  { %684 = vmax.xlane.f32.xlu1 %v683_v23  ;;  %v630_v24 = vpop.f32.mrb[14].mxu0 }
 0x4b1   :  { %v4263_v25 = vpop.f32.mrb[15].mxu0 }
 0x4b2   :  { %v677_v27 = vpop.f32.mrb[12].mxu1 }
 0x4b3   :  { %v4268_v28 = vpop.f32.mrb[13].mxu1  ;;  %v686_v29 = vsel %vm369_vm2, %v677_v27, -inf }
 0x4b4   :  { %687 = vmax.xlane.f32.xlu0 %v686_v29  ;;  %v680_v30 = vpop.f32.mrb[14].mxu1 }
 0x4b5   :  { %v4269_v32 = vpop.f32.mrb[15].mxu1 }
 0x4c1   :  { %755 = vrot.lane.b32.xlu1 %v5446_v26, %s5114_s7 }
 0x4ca   :  { %707 = vrot.lane.b32.xlu0 %v5444_v21, %s5114_s7 }
 0x4ce   :  { %855 = vrot.lane.b32.xlu0 %v5446_v26, %s5115_s21 }
 0x4d2   :  { %853 = vrot.lane.b32.xlu0 %v5456_v33, %s5115_s21 }
 0x53d   :  { %v685_v34 = vpop.xlane.xlu1 %684 }
 0x53e   :  { %v689_v35 = vsub.f32 %v627_v20, %v685_v34 }
 0x540   :  { %v691_v36 = vmul.f32 1.442695, %v689_v35 }
 0x541   :  { %v688_v37 = vpop.xlane.xlu0 %687  ;;  %v756_v38 = vpop.permute.xlu1 %755 }
 0x542   :  { %4709 = vpow2.f32 %v691_v36  ;;  %v690_v39 = vsub.f32 %v677_v27, %v688_v37  ;;  %v761_v40 = vsel %vm491_vm3, %v756_v38, 0 }
 0x543   :  { %4277 = vmatpush3.bf16.msra.mxu1 %v761_v40 }
 0x544   :  { %v693_v41 = vmul.f32 1.442695, %v690_v39  ;;  %4288 = vmatprep.subr.bf16.mxu1 %v5110_v0 }
 0x545   :  { %v708_v42 = vpop.permute.xlu0 %707 }
 0x546   :  { %4711 = vpow2.f32 %v693_v41  ;;  %v713_v43 = vsel %vm491_vm3, %v708_v42, 0 }
 0x547   :  { %4271 = vmatpush3.bf16.msra.mxu0 %v713_v43 }
 0x548   :  { %4282 = vmatprep.subr.bf16.mxu0 %v5110_v0 }
 0x549   :  { %v856_v57 = vpop.permute.xlu0 %855 }
 0x54a   :  { %v861_v59 = vsel %vm369_vm2, %v856_v57, 0 }
 0x54c   :  { %v4710_v44 = vpop.eup %4709 }
 0x54d   :  { %v695_v45 = vsel %vm369_vm2, %v4710_v44, 0.0  ;;  %v854_v61 = vpop.permute.xlu0 %853 }
 0x54e   :  { %696 = vadd.xlane.f32.xlu1 %v695_v45 }
 0x550   :  { %v4712_v46 = vpop.eup %4711 }
 0x551   :  { %v698_v47 = vsel %vm369_vm2, %v4712_v46, 0.0 }
 0x552   :  { %699 = vadd.xlane.f32.xlu1 %v698_v47 }
 0x563   :  { %805 = vrot.lane.b32.xlu1 %v5444_v21, %s5115_s21 }
 0x567   :  { %803 = vrot.lane.b32.xlu1 %v5453_v31, %s5115_s21 }
 0x5db   :  { %v697_v48 = vpop.xlane.xlu1 %696 }
 0x5dc   :  { %4713 = vrcp.f32 %v697_v48 }
 0x5df   :  { %v700_v49 = vpop.xlane.xlu1 %699 }
 0x5e0   :  { %4715 = vrcp.f32 %v700_v49 }
 0x5e3   :  { %v806_v52 = vpop.permute.xlu1 %805 }
 0x5e4   :  { %v811_v55 = vsel %vm369_vm2, %v806_v52, 0 }
 0x5e6   :  { %v4714_v50 = vpop.eup %4713 }
 0x5e7   :  { %v703_v51 = vmul.f32 %v4714_v50, %v4710_v44  ;;  %v804_v60 = vpop.permute.xlu1 %803 }
 0x5e9   :  { %v705_v53 = vpack.c.bf16 %v703_v51, %v703_v51 }
 0x5ea   :  { %v4716_v54 = vpop.eup %4715 }
 0x5eb   :  { %4273 = vmatmul.mubr.msk.bf16.vlgmr.msra.gmra.mrb[16].mxu0 %vm369_vm2, %v705_v53  ;;  %v704_v56 = vmul.f32 %v4716_v54, %v4712_v46 }
 0x5ec   :  { %4283 = vmatpush3.bf16.xpose.msra.mxu0 %v811_v55  ;;  %4284 = vmatprep.mubr.msk.bf16.mxu0 %vm5111_vm0, %v5110_v0 }
 0x5ed   :  { %v706_v58 = vpack.c.bf16 %v704_v56, %v704_v56  ;;  %4294 = vmatprep.subr.bf16.mxu0 %v5110_v0 }
 0x5ef   :  { %4279 = vmatmul.mubr.msk.bf16.vlgmr.msra.gmra.mrb[16].mxu1 %vm369_vm2, %v706_v58 }
 0x5f0   :  { %4289 = vmatpush3.bf16.xpose.msra.mxu1 %v861_v59  ;;  %4290 = vmatprep.mubr.msk.bf16.mxu1 %vm5111_vm0, %v5110_v0 }
 0x5f1   :  { %4300 = vmatprep.subr.bf16.mxu1 %v5110_v0 }
 0x5f3   :  { %4285 = vmatmul.mubr.msk.bf16.vlgmr.msra.gmra.mrb[20].mxu0 %vm369_vm2, %v804_v60 }
 0x5f4   :  { %4296 = vmatprep.mubr.msk.bf16.mxu0 %vm5111_vm0, %v5110_v0 }
 0x5f7   :  { %4291 = vmatmul.mubr.msk.bf16.vlgmr.msra.gmra.mrb[20].mxu1 %vm369_vm2, %v854_v61 }
 0x5f8   :  { %4302 = vmatprep.mubr.msk.bf16.mxu1 %vm5111_vm0, %v5110_v0 }
 0x6be   :  { %v5542_v62 = vpop.f32.mrb[16].mxu0 }
 0x6bf   :  { %v4274_v63 = vpop.f32.mrb[17].mxu0 }
 0x6c0   :  { %v752_v1 = vpop.f32.mrb[18].mxu0 }
 0x6c1   :  { %v4275_v2 = vpop.f32.mrb[19].mxu0 }
 0x6c2   :  { %v5544_v3 = vpop.f32.mrb[16].mxu1 }
 0x6c3   :  { %v4632_v4 = vpack.i.bf16 %v5544_v3, %v5542_v62  ;;  %v4280_v5 = vpop.f32.mrb[17].mxu1 }
 0x6c4   :  { %v800_v6 = vpop.f32.mrb[18].mxu1 }
 0x6c5   :  { %v4281_v7 = vpop.f32.mrb[19].mxu1 }
 0x6c6   :  { %v847_v9 = vpop.f32.mrb[20].mxu0 }
 0x6c7   :  { %v4286_v11 = vpop.f32.mrb[21].mxu0  ;;  %v903_v14 = vsel %vm369_vm2, %v847_v9, -inf }
 0x6c8   :  { %904 = vmax.xlane.f32.xlu1 %v903_v14  ;;  %v850_v15 = vpop.f32.mrb[22].mxu0 }
 0x6c9   :  { %v4287_v17 = vpop.f32.mrb[23].mxu0 }
 0x6ca   :  { %v897_v18 = vpop.f32.mrb[20].mxu1 }
 0x6cb   :  { %v4292_v19 = vpop.f32.mrb[21].mxu1  ;;  %v906_v20 = vsel %vm369_vm2, %v897_v18, -inf }
 0x6cc   :  { %907 = vmax.xlane.f32.xlu0 %v906_v20  ;;  %v900_v22 = vpop.f32.mrb[22].mxu1 }
 0x6cd   :  { %v4293_v23 = vpop.f32.mrb[23].mxu1 }
 0x6d9   :  { %975 = vrot.lane.b32.xlu1 %v5446_v26, %s5116_s3 }
 0x6e2   :  { %927 = vrot.lane.b32.xlu0 %v5444_v21, %s5116_s3 }
 0x755   :  { %v905_v24 = vpop.xlane.xlu1 %904 }
 0x756   :  { %v909_v25 = vsub.f32 %v847_v9, %v905_v24 }
 0x758   :  { %v911_v27 = vmul.f32 1.442695, %v909_v25 }
 0x759   :  { %v908_v28 = vpop.xlane.xlu0 %907  ;;  %v976_v29 = vpop.permute.xlu1 %975 }
 0x75a   :  { %4717 = vpow2.f32 %v911_v27  ;;  %v910_v30 = vsub.f32 %v897_v18, %v908_v28  ;;  %v981_v32 = vsel %vm491_vm3, %v976_v29, 0 }
 0x75b   :  { %4301 = vmatpush3.bf16.msra.mxu1 %v981_v32 }
 0x75c   :  { %v913_v34 = vmul.f32 1.442695, %v910_v30  ;;  %4312 = vmatprep.subr.bf16.mxu1 %v5110_v0 }
 0x75d   :  { %v928_v35 = vpop.permute.xlu0 %927 }
 0x75e   :  { %4719 = vpow2.f32 %v913_v34  ;;  %v933_v36 = vsel %vm491_vm3, %v928_v35, 0 }
 0x75f   :  { %4295 = vmatpush3.bf16.msra.mxu0 %v933_v36 }
 0x760   :  { %4306 = vmatprep.subr.bf16.mxu0 %v5110_v0 }
 0x764   :  { %v4718_v37 = vpop.eup %4717 }
 0x765   :  { %v915_v38 = vsel %vm369_vm2, %v4718_v37, 0.0 }
 0x766   :  { %916 = vadd.xlane.f32.xlu0 %v915_v38  ;;  %v4681_v38 = vld [vmem:[#allocation10] sm:$0xff]  }
 0x768   :  { %v4720_v39 = vpop.eup %4719 }
 0x769   :  { %v918_v40 = vsel %vm369_vm2, %v4720_v39, 0.0 }
 0x76a   :  { %919 = vadd.xlane.f32.xlu1 %v918_v40 }
 0x77b   :  { %1025 = vrot.lane.b32.xlu1 %v5444_v21, %s5117_s26 }
 0x77c   :  { %1075 = vrot.lane.b32.xlu0 %v5446_v26, %s5117_s26 }
 0x77f   :  { %1023 = vrot.lane.b32.xlu1 %v5453_v31, %s5117_s26 }
 0x780   :  { %1073 = vrot.lane.b32.xlu0 %v5456_v33, %s5117_s26 }
 0x7f3   :  { %v917_v41 = vpop.xlane.xlu0 %916 }
 0x7f4   :  { %4721 = vrcp.f32 %v917_v41 }
 0x7f7   :  { %v920_v42 = vpop.xlane.xlu1 %919  ;;  %v1076_v50 = vpop.permute.xlu0 %1075 }
 0x7f8   :  { %4723 = vrcp.f32 %v920_v42  ;;  %v1081_v33 = vsel %vm369_vm2, %v1076_v50, 0 }
 0x7fb   :  { %v1026_v45 = vpop.permute.xlu1 %1025  ;;  %v1074_v52 = vpop.permute.xlu0 %1073 }
 0x7fc   :  { %v1031_v48 = vsel %vm369_vm2, %v1026_v45, 0 }
 0x7fe   :  { %v4722_v43 = vpop.eup %4721 }
 0x7ff   :  { %v923_v44 = vmul.f32 %v4722_v43, %v4718_v37  ;;  %v1024_v51 = vpop.permute.xlu1 %1023 }
 0x801   :  { %v925_v46 = vpack.c.bf16 %v923_v44, %v923_v44 }
 0x802   :  { %v4724_v47 = vpop.eup %4723 }
 0x803   :  { %4297 = vmatmul.mubr.msk.bf16.vlgmr.msra.gmra.mrb[24].mxu0 %vm369_vm2, %v925_v46  ;;  %v924_v49 = vmul.f32 %v4724_v47, %v4720_v39  ;;  %v4682_v39 = vld [vmem:[#allocation10 + $0x8] sm:$0xff]  }
 0x804   :  { %4307 = vmatpush3.bf16.xpose.msra.mxu0 %v1031_v48  ;;  %4308 = vmatprep.mubr.msk.bf16.mxu0 %vm5111_vm0, %v5110_v0 }
 0x805   :  { %v926_v31 = vpack.c.bf16 %v924_v49, %v924_v49  ;;  %4318 = vmatprep.subr.bf16.mxu0 %v5110_v0 }
 0x807   :  { %4303 = vmatmul.mubr.msk.bf16.vlgmr.msra.gmra.mrb[24].mxu1 %vm369_vm2, %v926_v31 }
 0x808   :  { %4313 = vmatpush3.bf16.xpose.msra.mxu1 %v1081_v33  ;;  %4314 = vmatprep.mubr.msk.bf16.mxu1 %vm5111_vm0, %v5110_v0 }
 0x809   :  { %4324 = vmatprep.subr.bf16.mxu1 %v5110_v0 }
 0x80b   :  { %4309 = vmatmul.mubr.msk.bf16.vlgmr.msra.gmra.mrb[28].mxu0 %vm369_vm2, %v1024_v51 }
 0x80c   :  { %4320 = vmatprep.mubr.msk.bf16.mxu0 %vm5111_vm0, %v5110_v0 }
 0x80f   :  { %4315 = vmatmul.mubr.msk.bf16.vlgmr.msra.gmra.mrb[28].mxu1 %vm369_vm2, %v1074_v52 }
 0x810   :  { %4326 = vmatprep.mubr.msk.bf16.mxu1 %vm5111_vm0, %v5110_v0 }
 0x8d6   :  { %v969_v53 = vpop.f32.mrb[24].mxu0 }
 0x8d7   :  { %v4298_v54 = vpop.f32.mrb[25].mxu0 }
 0x8d8   :  { %v972_v55 = vpop.f32.mrb[26].mxu0 }
 0x8d9   :  { %v4299_v56 = vpop.f32.mrb[27].mxu0 }
 0x8da   :  { %v1017_v57 = vpop.f32.mrb[24].mxu1 }
 0x8db   :  { %v4637_v58 = vpack.i.bf16 %v1017_v57, %v969_v53  ;;  %v4304_v59 = vpop.f32.mrb[25].mxu1 }
 0x8dc   :  { %v1020_v60 = vpop.f32.mrb[26].mxu1 }
 0x8dd   :  { %v4305_v61 = vpop.f32.mrb[27].mxu1 }
 0x8de   :  { %v1067_v63 = vpop.f32.mrb[28].mxu0 }
 0x8df   :  { %v4310_v1 = vpop.f32.mrb[29].mxu0  ;;  %v1123_v2 = vsel %vm369_vm2, %v1067_v63, -inf }
 0x8e0   :  { %1124 = vmax.xlane.f32.xlu1 %v1123_v2  ;;  %v1070_v5 = vpop.f32.mrb[30].mxu0  ;;  %v5626_v2 = vld [vmem:[#allocation5] sm:$0x7f] }
 0x8e1   :  { %v4311_v6 = vpop.f32.mrb[31].mxu0 }
 0x8e2   :  { %v1117_v7 = vpop.f32.mrb[28].mxu1 }
 0x8e3   :  { %v4316_v9 = vpop.f32.mrb[29].mxu1  ;;  %v1126_v11 = vsel %vm369_vm2, %v1117_v7, -inf }
 0x8e4   :  { %1127 = vmax.xlane.f32.xlu0 %v1126_v11  ;;  %v1120_v14 = vpop.f32.mrb[30].mxu1 }
 0x8e5   :  { %v4317_v15 = vpop.f32.mrb[31].mxu1 }
 0x96d   :  { %v1125_v17 = vpop.xlane.xlu1 %1124 }
 0x96e   :  { %v1129_v18 = vsub.f32 %v1067_v63, %v1125_v17 }
 0x970   :  { %v1131_v19 = vmul.f32 1.442695, %v1129_v18 }
 0x971   :  { %v1128_v20 = vpop.xlane.xlu0 %1127 }
 0x972   :  { %4725 = vpow2.f32 %v1131_v19  ;;  %v1130_v22 = vsub.f32 %v1117_v7, %v1128_v20 }
 0x974   :  { %v1133_v23 = vmul.f32 1.442695, %v1130_v22 }
 0x976   :  { %4727 = vpow2.f32 %v1133_v23 }
 0x97c   :  { %v4726_v24 = vpop.eup %4725 }
 0x97d   :  { %v1135_v25 = vsel %vm369_vm2, %v4726_v24, 0.0 }
 0x97e   :  { %1136 = vadd.xlane.f32.xlu0 %v1135_v25 }
 0x980   :  { %v4728_v27 = vpop.eup %4727 }
 0x981   :  { %v1138_v28 = vsel %vm369_vm2, %v4728_v27, 0.0 }
 0x982   :  { %1139 = vadd.xlane.f32.xlu1 %v1138_v28 }
 0x993   :  { %1195 = vrot.lane.b32.xlu1 %v5446_v26, %s5118_s4 }
 0x994   :  { %1147 = vrot.lane.b32.xlu0 %v5444_v21, %s5118_s4 }
 0x997   :  { %4633 = vrot.lane.b32.xlu1 %v4632_v4, %s5102_s23 }
 0x998   :  { %4638 = vrot.lane.b32.xlu0 %v4637_v58, %s5119_s25 }
 0xa0b   :  { %v1137_v29 = vpop.xlane.xlu0 %1136 }
 0xa0c   :  { %4729 = vrcp.f32 %v1137_v29 }
 0xa0f   :  { %v1148_v30 = vpop.permute.xlu0 %1147  ;;  %v1140_v32 = vpop.xlane.xlu1 %1139 }
 0xa10   :  { %v1153_v34 = vsel %vm491_vm3, %v1148_v30, 0  ;;  %4731 = vrcp.f32 %v1140_v32 }
 0xa11   :  { %4319 = vmatpush3.bf16.msra.mxu0 %v1153_v34  ;;  %v4683_v34 = vld [vmem:[#allocation11] sm:$0xff]  }
 0xa12   :  { %4330 = vmatprep.subr.bf16.mxu0 %v5110_v0 }
 0xa13   :  { %v1196_v26 = vpop.permute.xlu1 %1195  ;;  %v4639_v33 = vpop.permute.xlu0 %4638 }
 0xa14   :  { %v1201_v21 = vsel %vm491_vm3, %v1196_v26, 0  ;;  %v4641_v53 = vunpack.i.h.bf16 %v4639_v33  ;;  %v4640_v54 = vunpack.i.l.bf16 %v4639_v33 }
 0xa15   :  { %4325 = vmatpush3.bf16.msra.mxu1 %v1201_v21 }
 0xa16   :  { %v4730_v35 = vpop.eup %4729  ;;  %4338 = vmatprep.subr.bf16.mxu1 %v5110_v0 }
 0xa17   :  { %v1143_v62 = vmul.f32 %v4730_v35, %v4726_v24  ;;  %v4634_v49 = vpop.permute.xlu1 %4633 }
 0xa18   :  { %v4636_v50 = vunpack.i.h.bf16 %v4634_v49  ;;  %v4635_v31 = vunpack.i.l.bf16 %v4634_v49  ;;  %v4685_v49 = vld [vmem:[#allocation13] sm:$0xff]  }
 0xa19   :  { %v1145_v3 = vpack.c.bf16 %v1143_v62, %v1143_v62 }
 0xa1a   :  { %v4732_v4 = vpop.eup %4731  ;;  %v1268_v51 = vsel %vm369_vm2, %v5504_v16, %v4636_v50  ;;  %v1267_v52 = vsel %vm369_vm2, %v5502_v10, %v4635_v31  ;;  %v1276_v10 = vlaneseq  ;;  %v4686_v50 = vld [vmem:[#allocation13 + $0x8] sm:$0xff]  }
 0xa1b   :  { %4321 = vmatmul.mubr.msk.bf16.vlgmr.msra.gmra.mrb[32].mxu0 %vm369_vm2, %v1145_v3  ;;  %v1144_v36 = vmul.f32 %v4732_v4, %v4728_v27  ;;  %v1270_v58 = vsel %vm1269_vm4, %v1267_v52, %v4640_v54  ;;  %v1271_v59 = vsel %vm1269_vm4, %v1268_v51, %v4641_v53 }
 0xa1c   :  { %4334 = vmatprep.mubr.msk.bf16.mxu0 %vm5111_vm0, %v5110_v0  ;;  %4331 = vmatpush3.bf16.msra.mxu0 %v4681_v38  ;;  %v5621_v16 = vshrl.u32 %v1276_v10, 7 }
 0xa1d   :  { %v1146_v37 = vpack.c.bf16 %v1144_v36, %v1144_v36  ;;  %4332 = vmatprep.subr.bf16.mxu0 %v5110_v0 }
 0xa1e   :  { %v5624_v1 = vsub.s32 0, %v5621_v16  ;;  %v5639_v36 = vsub.s32 1, %v5621_v16  ;;  %v1388_v31 = vsub.s32 3, %v5621_v16 }
 0xa1f   :  { %4327 = vmatmul.mubr.msk.bf16.vlgmr.msra.gmra.mrb[32].mxu1 %vm369_vm2, %v1146_v37 }
 0xa20   :  { %4342 = vmatprep.mubr.msk.bf16.mxu1 %vm5111_vm0, %v5110_v0  ;;  %4333 = vmatpush3.bf16.msra.mxu0 %v4682_v39  ;;  %v1279_v5 = vrot.slane %v5626_v2, %v5624_v1  ;;  %v1368_v38 = vrot.slane %v5626_v2, %v5639_v36  ;;  %v1389_v33 = vrot.slane %v5626_v2, %v1388_v31 }
 0xa21   :  { %4346 = vmatprep.subr.bf16.mxu0 %v5110_v0  ;;  %4339 = vmatpush3.bf16.msra.mxu1 %v4683_v34 }
 0xa22   :  { %4340 = vmatprep.subr.bf16.mxu1 %v5110_v0 }
 0xaee   :  { %v1189_v40 = vpop.f32.mrb[32].mxu0 }
 0xaef   :  { %v4322_v41 = vpop.f32.mrb[33].mxu0 }
 0xaf0   :  { %v1192_v42 = vpop.f32.mrb[34].mxu0 }
 0xaf1   :  { %v4323_v43 = vpop.f32.mrb[35].mxu0 }
 0xaf2   :  { %v1237_v44 = vpop.f32.mrb[32].mxu1 }
 0xaf3   :  { %v4642_v45 = vpack.i.bf16 %v1237_v44, %v1189_v40  ;;  %v4328_v46 = vpop.f32.mrb[33].mxu1  ;;  %v1373_v40 = vsub.s32 2, %v5621_v16 }
 0xaf4   :  { %v1240_v47 = vpop.f32.mrb[34].mxu1 }
 0xaf5   :  { %v4329_v48 = vpop.f32.mrb[35].mxu1  ;;  %4643 = vrot.lane.b32.xlu1 %v4642_v45, %s5120_s11  ;;  %v1374_v44 = vrot.slane %v5626_v2, %v1373_v40 }
 0xb67   :  { %v4644_v55 = vpop.permute.xlu1 %4643 }
 0xb68   :  { %v4646_v56 = vunpack.i.h.bf16 %v4644_v55  ;;  %v4645_v57 = vunpack.i.l.bf16 %v4644_v55 }
 0xb6a   :  { %v1274_v60 = vsel %vm1272_vm5, %v1271_v59, %v4646_v56  ;;  %v1273_v61 = vsel %vm1272_vm5, %v1270_v58, %v4645_v57 }
 0xb6b   :  { %v1275_v63 = vpack.c.bf16 %v1274_v60, %v1273_v61  ;;  %v1451_v60 = vsub.s32 4, %v5621_v16 }
 0xb6d   :  { %4335 = vmatmul.mubr.msk.bf16.vlgmr.msra.gmra.mrb[36].mxu0 %vm253_vm1, %v1275_v63  ;;  %v1452_v61 = vrot.slane %v5626_v2, %v1451_v60 }
 0xb6e   :  { %4350 = vmatprep.mubr.msk.bf16.mxu0 %vm5111_vm0, %v5110_v0  ;;  %4347 = vmatpush3.bf16.msra.mxu0 %v4685_v49 }
 0xb6f   :  { %4348 = vmatprep.subr.bf16.mxu0 %v5110_v0 }
 0xb72   :  { %4349 = vmatpush3.bf16.msra.mxu0 %v4686_v50 }
 0xb73   :  { %4362 = vmatprep.subr.bf16.mxu0 %v5110_v0 }
 0xc40   :  { %v1329_v6 = vpop.f32.mrb[36].mxu0 }
 0xc41   :  { %v1330_v7 = vadd.f32 %v1329_v6, %v1279_v5  ;;  %v4336_v9 = vpop.f32.mrb[37].mxu0 }
 0xc42   :  { %v1332_v11 = vpop.f32.mrb[38].mxu0 }
 0xc43   :  { %v1333_v14 = vadd.f32 %v1332_v11, %v1279_v5  ;;  %v4337_v15 = vpop.f32.mrb[39].mxu0  ;;  %v1336_v17 = vadd.f32 %v1330_v7, %v5428_v12 }
 0xc45   :  { %v1338_v18 = vsel %vm253_vm1, %v1336_v17, 0.0  ;;  %v1337_v19 = vadd.f32 %v1333_v14, %v5430_v13  ;;  %v4684_v13 = vld [vmem:[#allocation11 + $0x8] sm:$0xff]  }
 0xc46   :  { %1339 = vadd.xlane.f32.xlu0 %v1338_v18  ;;  %4341 = vmatpush3.bf16.msra.mxu1 %v4684_v13 }
 0xc47   :  { %v1341_v20 = vsel %vm253_vm1, %v1337_v19, 0.0  ;;  %4354 = vmatprep.subr.bf16.mxu1 %v5110_v0 }
 0xc48   :  { %1342 = vadd.xlane.f32.xlu1 %v1341_v20 }
 0xcd3   :  { %v1340_v22 = vpop.xlane.xlu0 %1339 }
 0xcd4   :  { %v1345_v23 = vmul.f32 0.03125, %v1340_v22 }
 0xcd5   :  { %v1343_v24 = vpop.xlane.xlu1 %1342 }
 0xcd6   :  { %v1347_v25 = vsub.f32 %v1336_v17, %v1345_v23  ;;  %v1346_v27 = vmul.f32 0.03125, %v1343_v24 }
 0xcd8   :  { %v1348_v28 = vsub.f32 %v1337_v19, %v1346_v27  ;;  %v1349_v29 = vmul.f32 %v1347_v25, %v1347_v25 }
 0xcda   :  { %v1351_v30 = vsel %vm253_vm1, %v1349_v29, 0.0  ;;  %v1350_v32 = vmul.f32 %v1348_v28, %v1348_v28 }
 0xcdb   :  { %1352 = vadd.xlane.f32.xlu0 %v1351_v30  ;;  %v4687_v30 = vld [vmem:[#allocation16] sm:$0xff]  }
 0xcdc   :  { %v1354_v12 = vsel %vm253_vm1, %v1350_v32, 0.0  ;;  %v4688_v32 = vld [vmem:[#allocation16 + $0x8] sm:$0xff]  }
 0xcdf   :  { %1355 = vadd.xlane.f32.xlu0 %v1354_v12 }
 0xd68   :  { %v1353_v26 = vpop.xlane.xlu0 %1352 }
 0xd69   :  { %v1357_v21 = vmul.f32 0.03125, %v1353_v26 }
 0xd6b   :  { %v1359_v35 = vadd.f32 1e-05, %v1357_v21 }
 0xd6c   :  { %v1356_v62 = vpop.xlane.xlu0 %1355 }
 0xd6d   :  { %4733 = vrsqrt.f32 %v1359_v35  ;;  %v1358_v3 = vmul.f32 0.03125, %v1356_v62  ;;  %v1539_v62 = vsub.s32 5, %v5621_v16 }
 0xd6f   :  { %v1360_v4 = vadd.f32 1e-05, %v1358_v3  ;;  %v1540_v3 = vrot.slane %v5626_v2, %v1539_v62 }
 0xd71   :  { %4735 = vrsqrt.f32 %v1360_v4  ;;  %v1545_v4 = vsub.s32 6, %v5621_v16 }
 0xd77   :  { %v4734_v37 = vpop.eup %4733 }
 0xd78   :  { %v1363_v39 = vmul.f32 %v4734_v37, %v1347_v25 }
 0xd7a   :  { %v1369_v42 = vmul.f32 %v1368_v38, %v1363_v39 }
 0xd7b   :  { %v4736_v41 = vpop.eup %4735 }
 0xd7c   :  { %v1364_v43 = vmul.f32 %v4736_v41, %v1348_v28  ;;  %v1375_v46 = vadd.f32 %v1374_v44, %v1369_v42 }
 0xd7e   :  { %v1370_v45 = vmul.f32 %v1368_v38, %v1364_v43  ;;  %v1546_v43 = vrot.slane %v5626_v2, %v1545_v4 }
 0xd80   :  { %v1376_v47 = vadd.f32 %v1374_v44, %v1370_v45 }
 0xd82   :  { %v1385_v48 = vpack.c.bf16 %v1376_v47, %v1375_v46 }
 0xd84   :  { %4343 = vmatmul.mubr.msk.bf16.vlgmr.msra.gmra.mrb[36].mxu1 %vm253_vm1, %v1385_v48  ;;  %v4015_v48 = vld [vmem:[%s6154_s12] ss:$0 sm:$0xff]  ;;  %s5121_s12 = smov 56  }
 0xd85   :  { %4358 = vmatprep.mubr.msk.bf16.mxu1 %vm5111_vm0, %v5110_v0  ;;  %4355 = vmatpush3.bf16.msra.mxu1 %v4687_v30 }
 0xd86   :  { %4356 = vmatprep.subr.bf16.mxu1 %v5110_v0 }
 0xd89   :  { %4357 = vmatpush3.bf16.msra.mxu1 %v4688_v32 }
 0xd8a   :  { %4368 = vmatprep.subr.bf16.mxu1 %v5110_v0 }
 0xe57   :  { %v1439_v51 = vpop.f32.mrb[36].mxu1 }
 0xe58   :  { %v1440_v52 = vadd.f32 %v1439_v51, %v1389_v33  ;;  %v4344_v53 = vpop.f32.mrb[37].mxu1 }
 0xe59   :  { %v1442_v54 = vpop.f32.mrb[38].mxu1 }
 0xe5a   :  { %v1443_v55 = vadd.f32 %v1442_v54, %v1389_v33  ;;  %v4345_v56 = vpop.f32.mrb[39].mxu1  ;;  %v1446_v57 = vmax.f32 %v1440_v52, 0.0 }
 0xe5c   :  { %v1447_v58 = vmax.f32 %v1443_v55, 0.0 }
 0xe5e   :  { %v1448_v59 = vpack.c.bf16 %v1447_v58, %v1446_v57 }
 0xe60   :  { %4351 = vmatmul.mubr.msk.bf16.vlgmr.msra.gmra.mrb[40].mxu0 %vm253_vm1, %v1448_v59 }
 0xe61   :  { %4364 = vmatprep.mubr.msk.bf16.mxu0 %vm5111_vm0, %v5110_v0 }
 0xf33   :  { %v1502_v63 = vpop.f32.mrb[40].mxu0 }
 0xf34   :  { %v1503_v10 = vadd.f32 %v1502_v63, %v1452_v61  ;;  %v4352_v5 = vpop.f32.mrb[41].mxu0 }
 0xf35   :  { %v1505_v6 = vpop.f32.mrb[42].mxu0 }
 0xf36   :  { %v1506_v7 = vadd.f32 %v1505_v6, %v1452_v61  ;;  %v4353_v9 = vpop.f32.mrb[43].mxu0  ;;  %v1509_v11 = vadd.f32 %v1503_v10, %v1375_v46 }
 0xf38   :  { %v1511_v14 = vsel %vm253_vm1, %v1509_v11, 0.0  ;;  %v1510_v15 = vadd.f32 %v1506_v7, %v1376_v47 }
 0xf39   :  { %1512 = vadd.xlane.f32.xlu1 %v1511_v14 }
 0xf3a   :  { %v1514_v17 = vsel %vm253_vm1, %v1510_v15, 0.0 }
 0xf3b   :  { %1515 = vadd.xlane.f32.xlu0 %v1514_v17 }
 0xfc6   :  { %v1513_v18 = vpop.xlane.xlu1 %1512 }
 0xfc7   :  { %v1517_v19 = vmul.f32 0.03125, %v1513_v18 }
 0xfc8   :  { %v1516_v20 = vpop.xlane.xlu0 %1515 }
 0xfc9   :  { %v1519_v22 = vsub.f32 %v1509_v11, %v1517_v19  ;;  %v1518_v23 = vmul.f32 0.03125, %v1516_v20 }
 0xfcb   :  { %v1520_v24 = vsub.f32 %v1510_v15, %v1518_v23  ;;  %v1521_v25 = vmul.f32 %v1519_v22, %v1519_v22 }
 0xfcd   :  { %v1523_v27 = vsel %vm253_vm1, %v1521_v25, 0.0  ;;  %v1522_v28 = vmul.f32 %v1520_v24, %v1520_v24 }
 0xfce   :  { %1524 = vadd.xlane.f32.xlu1 %v1523_v27 }
 0xfcf   :  { %v1526_v29 = vsel %vm253_vm1, %v1522_v28, 0.0 }
 0xfd0   :  { %1527 = vadd.xlane.f32.xlu0 %v1526_v29 }
0x105b   :  { %v1525_v12 = vpop.xlane.xlu1 %1524 }
0x105c   :  { %v1529_v34 = vmul.f32 0.03125, %v1525_v12 }
0x105d   :  { %v1528_v13 = vpop.xlane.xlu0 %1527 }
0x105e   :  { %v1531_v26 = vadd.f32 1e-05, %v1529_v34  ;;  %v1530_v21 = vmul.f32 0.03125, %v1528_v13 }
0x1060   :  { %4737 = vrsqrt.f32 %v1531_v26  ;;  %v1532_v35 = vadd.f32 1e-05, %v1530_v21 }
0x1062   :  { %4739 = vrsqrt.f32 %v1532_v35 }
0x106a   :  { %v4738_v37 = vpop.eup %4737 }
0x106b   :  { %v1535_v38 = vmul.f32 %v4738_v37, %v1519_v22 }
0x106c   :  { %v4740_v39 = vpop.eup %4739 }
0x106d   :  { %v1541_v41 = vmul.f32 %v1540_v3, %v1535_v38  ;;  %v1536_v42 = vmul.f32 %v4740_v39, %v1520_v24 }
0x106f   :  { %v1542_v44 = vmul.f32 %v1540_v3, %v1536_v42  ;;  %v5677_v45 = vadd.f32 %v1546_v43, %v1541_v41 }
0x1071   :  { %v5679_v46 = vadd.f32 %v1546_v43, %v1542_v44 }
0x1073   :  { %v1560_v47 = vpack.c.bf16 %v5679_v46, %v5677_v45 }
0x1075   :  { %4359 = vmatmul.mubr.msk.bf16.vlgmr.msra.gmra.mrb[40].mxu1 %vm253_vm1, %v1560_v47 }
0x1076   :  { %4370 = vmatprep.mubr.msk.bf16.mxu1 %vm5111_vm0, %v5110_v0 }
0x1148   :  { %v1616_v49 = vpop.f32.mrb[40].mxu1 }
0x1149   :  { %v1617_v50 = vadd.f32 %v4015_v48, %v1616_v49  ;;  %v4360_v2 = vpop.f32.mrb[41].mxu1 }
0x114a   :  { %v1619_v33 = vpop.f32.mrb[42].mxu1 }
0x114b   :  { %v5689_v51 = vpack.c.bf16 %v1617_v50, %v1617_v50  ;;  %v1620_v52 = vadd.f32 %v4015_v48, %v1619_v33  ;;  %v4361_v53 = vpop.f32.mrb[43].mxu1 }
0x114d   :  { %v5691_v54 = vpack.c.bf16 %v1620_v52, %v1620_v52  ;;  %1629 = vrot.lane.b32.xlu1 %v5689_v51, %s5112_s24 }
0x114f   :  { %1677 = vrot.lane.b32.xlu0 %v5691_v54, %s5112_s24 }
0x11bf   :  { %v1630_v55 = vpop.permute.xlu1 %1629 }
0x11c0   :  { %v1635_v56 = vsel %vm369_vm2, %v1630_v55, 0 }
0x11c1   :  { %4363 = vmatpush3.bf16.xpose.msra.mxu0 %v1635_v56  ;;  %v1678_v57 = vpop.permute.xlu0 %1677 }
0x11c2   :  { %v1683_v58 = vsel %vm369_vm2, %v1678_v57, 0  ;;  %4374 = vmatprep.subr.bf16.mxu0 %v5110_v0 }
0x11c3   :  { %4369 = vmatpush3.bf16.xpose.msra.mxu1 %v1683_v58 }
0x11c4   :  { %4380 = vmatprep.subr.bf16.mxu1 %v5110_v0 }
0x11c8   :  { %4365 = vmatmul.mubr.msk.bf16.vlgmr.msra.gmra.mrb[44].mxu0 %vm369_vm2, %v5689_v51 }
0x11c9   :  { %4376 = vmatprep.mubr.msk.bf16.mxu0 %vm5111_vm0, %v5110_v0 }
0x11ca   :  { %4371 = vmatmul.mubr.msk.bf16.vlgmr.msra.gmra.mrb[44].mxu1 %vm369_vm2, %v5691_v54 }
0x11cb   :  { %4382 = vmatprep.mubr.msk.bf16.mxu1 %vm5111_vm0, %v5110_v0 }
0x129b   :  { %v1671_v59 = vpop.f32.mrb[44].mxu0 }
0x129c   :  { %v4366_v61 = vpop.f32.mrb[45].mxu0  ;;  %v1725_v63 = vsel %vm369_vm2, %v1671_v59, -inf }
0x129d   :  { %v1719_v10 = vpop.f32.mrb[44].mxu1  ;;  %1726 = vmax.xlane.f32.xlu1 %v1725_v63  ;;  %v1674_v5 = vpop.f32.mrb[46].mxu0 }
0x129e   :  { %v4367_v6 = vpop.f32.mrb[47].mxu0  ;;  %v4372_v7 = vpop.f32.mrb[45].mxu1  ;;  %v1728_v9 = vsel %vm369_vm2, %v1719_v10, -inf }
0x129f   :  { %1729 = vmax.xlane.f32.xlu0 %v1728_v9  ;;  %v1722_v11 = vpop.f32.mrb[46].mxu1 }
0x12a0   :  { %v4373_v14 = vpop.f32.mrb[47].mxu1 }
0x12ae   :  { %1749 = vrot.lane.b32.xlu1 %v5689_v51, %s6177_s30 }
0x132a   :  { %v1727_v15 = vpop.xlane.xlu1 %1726 }
0x132b   :  { %v1731_v17 = vsub.f32 %v1671_v59, %v1727_v15 }
0x132c   :  { %v1730_v18 = vpop.xlane.xlu0 %1729 }
0x132d   :  { %v1733_v19 = vmul.f32 1.442695, %v1731_v17  ;;  %v1732_v20 = vsub.f32 %v1719_v10, %v1730_v18 }
0x132e   :  { %v1750_v22 = vpop.permute.xlu1 %1749 }
0x132f   :  { %4741 = vpow2.f32 %v1733_v19  ;;  %v1735_v23 = vmul.f32 1.442695, %v1732_v20  ;;  %v1755_v24 = vsel %vm491_vm3, %v1750_v22, 0 }
0x1330   :  { %4375 = vmatpush3.bf16.msra.mxu0 %v1755_v24 }
0x1331   :  { %4743 = vpow2.f32 %v1735_v23  ;;  %4386 = vmatprep.subr.bf16.mxu0 %v5110_v0 }
0x1339   :  { %v4742_v25 = vpop.eup %4741 }
0x133a   :  { %v1737_v27 = vsel %vm369_vm2, %v4742_v25, 0.0 }
0x133b   :  { %v4744_v28 = vpop.eup %4743  ;;  %1738 = vadd.xlane.f32.xlu1 %v1737_v27 }
0x133c   :  { %v1740_v29 = vsel %vm369_vm2, %v4744_v28, 0.0 }
0x133d   :  { %1741 = vadd.xlane.f32.xlu0 %v1740_v29 }
0x134c   :  { %1847 = vrot.lane.b32.xlu1 %v5689_v51, %s5114_s7 }
0x1350   :  { %1897 = vrot.lane.b32.xlu1 %v5691_v54, %s5114_s7 }
0x1353   :  { %1797 = vrot.lane.b32.xlu0 %v5691_v54, %s6177_s30  ;;  %s5122_s30 = smov 48  }
0x1354   :  { %1895 = vrot.lane.b32.xlu1 %v5691_v54, %s5113_s6 }
0x1357   :  { %1845 = vrot.lane.b32.xlu0 %v5689_v51, %s5113_s6 }
0x13c8   :  { %v1739_v30 = vpop.xlane.xlu1 %1738 }
0x13c9   :  { %4745 = vrcp.f32 %v1739_v30 }
0x13ca   :  { %v1742_v32 = vpop.xlane.xlu0 %1741 }
0x13cb   :  { %4747 = vrcp.f32 %v1742_v32 }
0x13cc   :  { %v1848_v13 = vpop.permute.xlu1 %1847 }
0x13cd   :  { %v1853_v39 = vsel %vm369_vm2, %v1848_v13, 0 }
0x13ce   :  { %v1798_v12 = vpop.permute.xlu0 %1797 }
0x13cf   :  { %v1803_v34 = vsel %vm491_vm3, %v1798_v12, 0 }
0x13d0   :  { %4381 = vmatpush3.bf16.msra.mxu1 %v1803_v34  ;;  %v1898_v38 = vpop.permute.xlu1 %1897 }
0x13d1   :  { %4392 = vmatprep.subr.bf16.mxu1 %v5110_v0  ;;  %v1903_v42 = vsel %vm369_vm2, %v1898_v38, 0 }
0x13d2   :  { %v1846_v43 = vpop.permute.xlu0 %1845 }
0x13d3   :  { %v4746_v26 = vpop.eup %4745 }
0x13d4   :  { %v1745_v21 = vmul.f32 %v4746_v26, %v4742_v25  ;;  %v1896_v44 = vpop.permute.xlu1 %1895 }
0x13d5   :  { %v4748_v35 = vpop.eup %4747 }
0x13d6   :  { %v1746_v3 = vmul.f32 %v4748_v35, %v4744_v28  ;;  %v1747_v37 = vpack.c.bf16 %v1745_v21, %v1745_v21 }
0x13d8   :  { %4377 = vmatmul.mubr.msk.bf16.vlgmr.msra.gmra.mrb[48].mxu0 %vm369_vm2, %v1747_v37  ;;  %v1748_v41 = vpack.c.bf16 %v1746_v3, %v1746_v3 }
0x13d9   :  { %4387 = vmatpush3.bf16.xpose.msra.mxu0 %v1853_v39  ;;  %4388 = vmatprep.mubr.msk.bf16.mxu0 %vm5111_vm0, %v5110_v0 }
0x13da   :  { %4383 = vmatmul.mubr.msk.bf16.vlgmr.msra.gmra.mrb[48].mxu1 %vm369_vm2, %v1748_v41  ;;  %4398 = vmatprep.subr.bf16.mxu0 %v5110_v0 }
0x13db   :  { %4393 = vmatpush3.bf16.xpose.msra.mxu1 %v1903_v42  ;;  %4394 = vmatprep.mubr.msk.bf16.mxu1 %vm5111_vm0, %v5110_v0 }
0x13dc   :  { %4404 = vmatprep.subr.bf16.mxu1 %v5110_v0 }
0x13e0   :  { %4389 = vmatmul.mubr.msk.bf16.vlgmr.msra.gmra.mrb[52].mxu0 %vm369_vm2, %v1846_v43 }
0x13e1   :  { %4400 = vmatprep.mubr.msk.bf16.mxu0 %vm5111_vm0, %v5110_v0 }
0x13e2   :  { %4395 = vmatmul.mubr.msk.bf16.vlgmr.msra.gmra.mrb[52].mxu1 %vm369_vm2, %v1896_v44 }
0x13e3   :  { %4406 = vmatprep.mubr.msk.bf16.mxu1 %vm5111_vm0, %v5110_v0 }
0x14ab   :  { %v5745_v47 = vpop.f32.mrb[48].mxu0 }
0x14ac   :  { %v4378_v48 = vpop.f32.mrb[49].mxu0 }
0x14ad   :  { %v1794_v49 = vpop.f32.mrb[50].mxu0  ;;  %v5747_v50 = vpop.f32.mrb[48].mxu1 }
0x14ae   :  { %v4379_v2 = vpop.f32.mrb[51].mxu0  ;;  %v4384_v33 = vpop.f32.mrb[49].mxu1 }
0x14af   :  { %v1842_v52 = vpop.f32.mrb[50].mxu1 }
0x14b0   :  { %v4385_v53 = vpop.f32.mrb[51].mxu1 }
0x14b3   :  { %v1889_v55 = vpop.f32.mrb[52].mxu0 }
0x14b4   :  { %v4390_v56 = vpop.f32.mrb[53].mxu0  ;;  %v1945_v57 = vsel %vm369_vm2, %v1889_v55, -inf }
0x14b5   :  { %v1939_v58 = vpop.f32.mrb[52].mxu1  ;;  %1946 = vmax.xlane.f32.xlu0 %v1945_v57  ;;  %v1892_v59 = vpop.f32.mrb[54].mxu0 }
0x14b6   :  { %v4391_v61 = vpop.f32.mrb[55].mxu0  ;;  %v4396_v63 = vpop.f32.mrb[53].mxu1  ;;  %v1948_v10 = vsel %vm369_vm2, %v1939_v58, -inf }
0x14b7   :  { %1949 = vmax.xlane.f32.xlu1 %v1948_v10  ;;  %v1942_v5 = vpop.f32.mrb[54].mxu1 }
0x14b8   :  { %v4397_v6 = vpop.f32.mrb[55].mxu1 }
0x14c8   :  { %1969 = vrot.lane.b32.xlu1 %v5689_v51, %s5121_s12 }
0x14cc   :  { %2067 = vrot.lane.b32.xlu1 %v5689_v51, %s5116_s3 }
0x14d0   :  { %2117 = vrot.lane.b32.xlu1 %v5691_v54, %s5116_s3 }
0x14d4   :  { %2115 = vrot.lane.b32.xlu1 %v5691_v54, %s5115_s21 }
0x1542   :  { %v1947_v7 = vpop.xlane.xlu0 %1946 }
0x1543   :  { %v1951_v9 = vsub.f32 %v1889_v55, %v1947_v7 }
0x1544   :  { %v1950_v11 = vpop.xlane.xlu1 %1949 }
0x1545   :  { %v1953_v14 = vmul.f32 1.442695, %v1951_v9  ;;  %v1952_v15 = vsub.f32 %v1939_v58, %v1950_v11 }
0x1547   :  { %4749 = vpow2.f32 %v1953_v14  ;;  %v1955_v17 = vmul.f32 1.442695, %v1952_v15 }
0x1548   :  { %v1970_v18 = vpop.permute.xlu1 %1969 }
0x1549   :  { %4751 = vpow2.f32 %v1955_v17  ;;  %v1975_v19 = vsel %vm491_vm3, %v1970_v18, 0 }
0x154a   :  { %4399 = vmatpush3.bf16.msra.mxu0 %v1975_v19 }
0x154b   :  { %4410 = vmatprep.subr.bf16.mxu0 %v5110_v0 }
0x154c   :  { %v2068_v32 = vpop.permute.xlu1 %2067 }
0x154d   :  { %v2073_v26 = vsel %vm369_vm2, %v2068_v32, 0 }
0x1550   :  { %v2118_v35 = vpop.permute.xlu1 %2117 }
0x1551   :  { %v4750_v20 = vpop.eup %4749  ;;  %v2123_v37 = vsel %vm369_vm2, %v2118_v35, 0 }
0x1552   :  { %v1957_v22 = vsel %vm369_vm2, %v4750_v20, 0.0 }
0x1553   :  { %v4752_v23 = vpop.eup %4751  ;;  %1958 = vadd.xlane.f32.xlu0 %v1957_v22 }
0x1554   :  { %v1960_v24 = vsel %vm369_vm2, %v4752_v23, 0.0  ;;  %v2116_v39 = vpop.permute.xlu1 %2115 }
0x1557   :  { %1961 = vadd.xlane.f32.xlu0 %v1960_v24 }
0x156d   :  { %2017 = vrot.lane.b32.xlu0 %v5691_v54, %s5121_s12 }
0x1571   :  { %2065 = vrot.lane.b32.xlu0 %v5689_v51, %s5115_s21 }
0x15e0   :  { %v1959_v25 = vpop.xlane.xlu0 %1958 }
0x15e1   :  { %4753 = vrcp.f32 %v1959_v25 }
0x15e4   :  { %v1962_v27 = vpop.xlane.xlu0 %1961 }
0x15e5   :  { %4755 = vrcp.f32 %v1962_v27 }
0x15e8   :  { %v2018_v28 = vpop.permute.xlu0 %2017 }
0x15e9   :  { %v2023_v29 = vsel %vm491_vm3, %v2018_v28, 0 }
0x15ea   :  { %4405 = vmatpush3.bf16.msra.mxu1 %v2023_v29 }
0x15eb   :  { %v4754_v30 = vpop.eup %4753  ;;  %4416 = vmatprep.subr.bf16.mxu1 %v5110_v0 }
0x15ec   :  { %v1965_v12 = vmul.f32 %v4754_v30, %v4750_v20  ;;  %v2066_v38 = vpop.permute.xlu0 %2065 }
0x15ee   :  { %v1967_v34 = vpack.c.bf16 %v1965_v12, %v1965_v12 }
0x15ef   :  { %v4756_v13 = vpop.eup %4755 }
0x15f0   :  { %v1966_v21 = vmul.f32 %v4756_v13, %v4752_v23  ;;  %4401 = vmatmul.mubr.msk.bf16.vlgmr.msra.gmra.mrb[56].mxu0 %vm369_vm2, %v1967_v34 }
0x15f1   :  { %4411 = vmatpush3.bf16.xpose.msra.mxu0 %v2073_v26  ;;  %4412 = vmatprep.mubr.msk.bf16.mxu0 %vm5111_vm0, %v5110_v0 }
0x15f2   :  { %v1968_v3 = vpack.c.bf16 %v1966_v21, %v1966_v21  ;;  %4422 = vmatprep.subr.bf16.mxu0 %v5110_v0 }
0x15f4   :  { %4407 = vmatmul.mubr.msk.bf16.vlgmr.msra.gmra.mrb[56].mxu1 %vm369_vm2, %v1968_v3 }
0x15f5   :  { %4417 = vmatpush3.bf16.xpose.msra.mxu1 %v2123_v37  ;;  %4418 = vmatprep.mubr.msk.bf16.mxu1 %vm5111_vm0, %v5110_v0 }
0x15f6   :  { %4428 = vmatprep.subr.bf16.mxu1 %v5110_v0 }
0x15f8   :  { %4413 = vmatmul.mubr.msk.bf16.vlgmr.msra.gmra.mrb[60].mxu0 %vm369_vm2, %v2066_v38 }
0x15f9   :  { %4424 = vmatprep.mubr.msk.bf16.mxu0 %vm5111_vm0, %v5110_v0 }
0x15fc   :  { %4419 = vmatmul.mubr.msk.bf16.vlgmr.msra.gmra.mrb[60].mxu1 %vm369_vm2, %v2116_v39 }
0x15fd   :  { %4430 = vmatprep.mubr.msk.bf16.mxu1 %vm5111_vm0, %v5110_v0 }
0x16c3   :  { %v5783_v41 = vpop.f32.mrb[56].mxu0 }
0x16c4   :  { %v4402_v42 = vpop.f32.mrb[57].mxu0 }
0x16c5   :  { %v2014_v43 = vpop.f32.mrb[58].mxu0 }
0x16c6   :  { %v4403_v44 = vpop.f32.mrb[59].mxu0 }
0x16c7   :  { %v5785_v48 = vpop.f32.mrb[56].mxu1 }
0x16c8   :  { %v4647_v49 = vpack.i.bf16 %v5785_v48, %v5783_v41  ;;  %v4408_v2 = vpop.f32.mrb[57].mxu1 }
0x16c9   :  { %v2062_v33 = vpop.f32.mrb[58].mxu1 }
0x16ca   :  { %v4409_v52 = vpop.f32.mrb[59].mxu1 }
0x16cb   :  { %v2109_v53 = vpop.f32.mrb[60].mxu0 }
0x16cc   :  { %v4414_v55 = vpop.f32.mrb[61].mxu0  ;;  %v2165_v56 = vsel %vm369_vm2, %v2109_v53, -inf }
0x16cd   :  { %2166 = vmax.xlane.f32.xlu0 %v2165_v56  ;;  %v2112_v57 = vpop.f32.mrb[62].mxu0 }
0x16ce   :  { %v4415_v58 = vpop.f32.mrb[63].mxu0 }
0x16cf   :  { %v2159_v59 = vpop.f32.mrb[60].mxu1 }
0x16d0   :  { %v4420_v61 = vpop.f32.mrb[61].mxu1  ;;  %v2168_v63 = vsel %vm369_vm2, %v2159_v59, -inf }
0x16d1   :  { %2169 = vmax.xlane.f32.xlu1 %v2168_v63  ;;  %v2162_v10 = vpop.f32.mrb[62].mxu1 }
0x16d2   :  { %v4421_v5 = vpop.f32.mrb[63].mxu1 }
0x16e2   :  { %2189 = vrot.lane.b32.xlu1 %v5689_v51, %s5122_s30 }
0x16e6   :  { %2287 = vrot.lane.b32.xlu1 %v5689_v51, %s5118_s4 }
0x16ea   :  { %2337 = vrot.lane.b32.xlu1 %v5691_v54, %s5118_s4 }
0x16ee   :  { %2335 = vrot.lane.b32.xlu1 %v5691_v54, %s5117_s26 }
0x175a   :  { %v2167_v6 = vpop.xlane.xlu0 %2166 }
0x175b   :  { %v2171_v7 = vsub.f32 %v2109_v53, %v2167_v6 }
0x175d   :  { %v2173_v9 = vmul.f32 1.442695, %v2171_v7 }
0x175e   :  { %v2170_v11 = vpop.xlane.xlu1 %2169 }
0x175f   :  { %4757 = vpow2.f32 %v2173_v9  ;;  %v2172_v14 = vsub.f32 %v2159_v59, %v2170_v11 }
0x1761   :  { %v2175_v15 = vmul.f32 1.442695, %v2172_v14 }
0x1762   :  { %v2190_v17 = vpop.permute.xlu1 %2189 }
0x1763   :  { %4759 = vpow2.f32 %v2175_v15  ;;  %v2195_v18 = vsel %vm491_vm3, %v2190_v17, 0 }
0x1764   :  { %4423 = vmatpush3.bf16.msra.mxu0 %v2195_v18 }
0x1765   :  { %4434 = vmatprep.subr.bf16.mxu0 %v5110_v0 }
0x1766   :  { %v2288_v30 = vpop.permute.xlu1 %2287 }
0x1767   :  { %v2293_v13 = vsel %vm369_vm2, %v2288_v30, 0 }
0x1769   :  { %v4758_v19 = vpop.eup %4757 }
0x176a   :  { %v2177_v20 = vsel %vm369_vm2, %v4758_v19, 0.0  ;;  %v2338_v21 = vpop.permute.xlu1 %2337 }
0x176b   :  { %2178 = vadd.xlane.f32.xlu0 %v2177_v20  ;;  %v2343_v3 = vsel %vm369_vm2, %v2338_v21, 0 }
0x176d   :  { %v4760_v22 = vpop.eup %4759 }
0x176e   :  { %v2180_v23 = vsel %vm369_vm2, %v4760_v22, 0.0  ;;  %v2336_v38 = vpop.permute.xlu1 %2335 }
0x176f   :  { %2181 = vadd.xlane.f32.xlu0 %v2180_v23 }
0x1785   :  { %2237 = vrot.lane.b32.xlu0 %v5691_v54, %s5122_s30 }
0x1789   :  { %2285 = vrot.lane.b32.xlu0 %v5689_v51, %s5117_s26 }
0x17f8   :  { %v2179_v24 = vpop.xlane.xlu0 %2178 }
0x17f9   :  { %4761 = vrcp.f32 %v2179_v24 }
0x17fc   :  { %v2182_v25 = vpop.xlane.xlu0 %2181 }
0x17fd   :  { %4763 = vrcp.f32 %v2182_v25 }
0x1800   :  { %v2238_v27 = vpop.permute.xlu0 %2237 }
0x1801   :  { %v2243_v28 = vsel %vm491_vm3, %v2238_v27, 0 }
0x1802   :  { %4429 = vmatpush3.bf16.msra.mxu1 %v2243_v28 }
0x1803   :  { %v4762_v29 = vpop.eup %4761  ;;  %4440 = vmatprep.subr.bf16.mxu1 %v5110_v0 }
0x1804   :  { %v2185_v32 = vmul.f32 %v4762_v29, %v4758_v19  ;;  %v2286_v37 = vpop.permute.xlu0 %2285 }
0x1806   :  { %v2187_v12 = vpack.c.bf16 %v2185_v32, %v2185_v32 }
0x1807   :  { %v4764_v34 = vpop.eup %4763 }
0x1808   :  { %v2186_v26 = vmul.f32 %v4764_v34, %v4760_v22  ;;  %4425 = vmatmul.mubr.msk.bf16.vlgmr.msra.gmra.mrb[64].mxu0 %vm369_vm2, %v2187_v12  ;;  %v4689_v12 = vld [vmem:[#allocation17] sm:$0xff]   ;;  %v4690_v34 = vld [vmem:[#allocation17 + $0x8] sm:$0xff]  }
0x1809   :  { %4435 = vmatpush3.bf16.xpose.msra.mxu0 %v2293_v13  ;;  %4436 = vmatprep.mubr.msk.bf16.mxu0 %vm5111_vm0, %v5110_v0 }
0x180a   :  { %v2188_v35 = vpack.c.bf16 %v2186_v26, %v2186_v26  ;;  %4446 = vmatprep.subr.bf16.mxu0 %v5110_v0 }
0x180c   :  { %4431 = vmatmul.mubr.msk.bf16.vlgmr.msra.gmra.mrb[64].mxu1 %vm369_vm2, %v2188_v35 }
0x180d   :  { %4441 = vmatpush3.bf16.xpose.msra.mxu1 %v2343_v3  ;;  %4442 = vmatprep.mubr.msk.bf16.mxu1 %vm5111_vm0, %v5110_v0 }
0x180e   :  { %4452 = vmatprep.subr.bf16.mxu1 %v5110_v0 }
0x1810   :  { %4437 = vmatmul.mubr.msk.bf16.vlgmr.msra.gmra.mrb[68].mxu0 %vm369_vm2, %v2286_v37 }
0x1811   :  { %4448 = vmatprep.mubr.msk.bf16.mxu0 %vm5111_vm0, %v5110_v0 }
0x1814   :  { %4443 = vmatmul.mubr.msk.bf16.vlgmr.msra.gmra.mrb[68].mxu1 %vm369_vm2, %v2336_v38 }
0x1815   :  { %4454 = vmatprep.mubr.msk.bf16.mxu1 %vm5111_vm0, %v5110_v0 }
0x18db   :  { %v2231_v39 = vpop.f32.mrb[64].mxu0 }
0x18dc   :  { %v4426_v42 = vpop.f32.mrb[65].mxu0 }
0x18dd   :  { %v2234_v43 = vpop.f32.mrb[66].mxu0 }
0x18de   :  { %v4427_v44 = vpop.f32.mrb[67].mxu0 }
0x18df   :  { %v2279_v2 = vpop.f32.mrb[64].mxu1 }
0x18e0   :  { %v4652_v33 = vpack.i.bf16 %v2279_v2, %v2231_v39  ;;  %v4432_v52 = vpop.f32.mrb[65].mxu1 }
0x18e1   :  { %v2282_v53 = vpop.f32.mrb[66].mxu1 }
0x18e2   :  { %v4433_v55 = vpop.f32.mrb[67].mxu1 }
0x18e3   :  { %v2329_v56 = vpop.f32.mrb[68].mxu0 }
0x18e4   :  { %v4438_v57 = vpop.f32.mrb[69].mxu0  ;;  %v2385_v58 = vsel %vm369_vm2, %v2329_v56, -inf }
0x18e5   :  { %2386 = vmax.xlane.f32.xlu0 %v2385_v58  ;;  %v2332_v59 = vpop.f32.mrb[70].mxu0 }
0x18e6   :  { %v4439_v61 = vpop.f32.mrb[71].mxu0 }
0x18e7   :  { %v2379_v63 = vpop.f32.mrb[68].mxu1 }
0x18e8   :  { %v4444_v10 = vpop.f32.mrb[69].mxu1  ;;  %v2388_v5 = vsel %vm369_vm2, %v2379_v63, -inf }
0x18e9   :  { %2389 = vmax.xlane.f32.xlu1 %v2388_v5  ;;  %v2382_v6 = vpop.f32.mrb[70].mxu1 }
0x18ea   :  { %v4445_v7 = vpop.f32.mrb[71].mxu1 }
0x18fa   :  { %2409 = vrot.lane.b32.xlu1 %v5689_v51, %s5123_s29 }
0x18fe   :  { %4648 = vrot.lane.b32.xlu1 %v4647_v49, %s5102_s23 }
0x1902   :  { %4653 = vrot.lane.b32.xlu1 %v4652_v33, %s5119_s25 }
0x1972   :  { %v2387_v9 = vpop.xlane.xlu0 %2386 }
0x1973   :  { %v2391_v11 = vsub.f32 %v2329_v56, %v2387_v9 }
0x1975   :  { %v2393_v14 = vmul.f32 1.442695, %v2391_v11 }
0x1976   :  { %v2390_v15 = vpop.xlane.xlu1 %2389 }
0x1977   :  { %4765 = vpow2.f32 %v2393_v14  ;;  %v2392_v17 = vsub.f32 %v2379_v63, %v2390_v15 }
0x1979   :  { %v2395_v18 = vmul.f32 1.442695, %v2392_v17 }
0x197a   :  { %v2410_v19 = vpop.permute.xlu1 %2409 }
0x197b   :  { %4767 = vpow2.f32 %v2395_v18  ;;  %v2415_v20 = vsel %vm491_vm3, %v2410_v19, 0 }
0x197c   :  { %4447 = vmatpush3.bf16.msra.mxu0 %v2415_v20 }
0x197d   :  { %4458 = vmatprep.subr.bf16.mxu0 %v5110_v0 }
0x197e   :  { %v4649_v43 = vpop.permute.xlu1 %4648 }
0x197f   :  { %v4651_v2 = vunpack.i.h.bf16 %v4649_v43  ;;  %v4650_v33 = vunpack.i.l.bf16 %v4649_v43 }
0x1981   :  { %v4766_v51 = vpop.eup %4765  ;;  %v2530_v56 = vsel %vm369_vm2, %v5747_v50, %v4651_v2  ;;  %v2529_v57 = vsel %vm369_vm2, %v5745_v47, %v4650_v33  ;;  %v5858_v50 = vld [vmem:[#allocation14] sm:$0xff] }
0x1982   :  { %v2397_v41 = vsel %vm369_vm2, %v4766_v51, 0.0  ;;  %v4654_v44 = vpop.permute.xlu1 %4653  ;;  %v2539_v47 = vrot.slane %v5858_v50, %v5624_v1  ;;  %v2633_v43 = vrot.slane %v5858_v50, %v1373_v40 }
0x1983   :  { %2398 = vadd.xlane.f32.xlu0 %v2397_v41  ;;  %v4656_v52 = vunpack.i.h.bf16 %v4654_v44  ;;  %v4655_v53 = vunpack.i.l.bf16 %v4654_v44 }
0x1985   :  { %v4768_v48 = vpop.eup %4767  ;;  %v2532_v61 = vsel %vm1269_vm4, %v2530_v56, %v4656_v52  ;;  %v2531_v63 = vsel %vm1269_vm4, %v2529_v57, %v4655_v53 }
0x1986   :  { %v2400_v49 = vsel %vm369_vm2, %v4768_v48, 0.0 }
0x1987   :  { %2401 = vadd.xlane.f32.xlu0 %v2400_v49 }
0x199d   :  { %2457 = vrot.lane.b32.xlu0 %v5691_v54, %s5123_s29 }
0x1a10   :  { %v2399_v22 = vpop.xlane.xlu0 %2398 }
0x1a11   :  { %4769 = vrcp.f32 %v2399_v22 }
0x1a14   :  { %v2402_v23 = vpop.xlane.xlu0 %2401 }
0x1a15   :  { %4771 = vrcp.f32 %v2402_v23 }
0x1a18   :  { %v2458_v24 = vpop.permute.xlu0 %2457 }
0x1a19   :  { %v2463_v25 = vsel %vm491_vm3, %v2458_v24, 0 }
0x1a1a   :  { %4453 = vmatpush3.bf16.msra.mxu1 %v2463_v25 }
0x1a1b   :  { %v4770_v27 = vpop.eup %4769  ;;  %4466 = vmatprep.subr.bf16.mxu1 %v5110_v0 }
0x1a1c   :  { %v2405_v28 = vmul.f32 %v4770_v27, %v4766_v51 }
0x1a1e   :  { %v2407_v29 = vpack.c.bf16 %v2405_v28, %v2405_v28 }
0x1a1f   :  { %v4772_v30 = vpop.eup %4771 }
0x1a20   :  { %v2406_v32 = vmul.f32 %v4772_v30, %v4768_v48  ;;  %4449 = vmatmul.mubr.msk.bf16.vlgmr.msra.gmra.mrb[72].mxu0 %vm369_vm2, %v2407_v29  ;;  %v4692_v29 = vld [vmem:[%s6157_s15 + $0x8] sm:$0xff]   ;;  %v4693_v30 = vld [vmem:[#allocation19] sm:$0xff]  }
0x1a21   :  { %4462 = vmatprep.mubr.msk.bf16.mxu0 %vm5111_vm0, %v5110_v0  ;;  %4459 = vmatpush3.bf16.msra.mxu0 %v4689_v12 }
0x1a22   :  { %v2408_v54 = vpack.c.bf16 %v2406_v32, %v2406_v32  ;;  %4460 = vmatprep.subr.bf16.mxu0 %v5110_v0  ;;  %v4694_v32 = vld [vmem:[#allocation19 + $0x8] sm:$0xff]  }
0x1a24   :  { %4455 = vmatmul.mubr.msk.bf16.vlgmr.msra.gmra.mrb[72].mxu1 %vm369_vm2, %v2408_v54  ;;  %v4040_v54 = vld [vmem:[%s6158_s16] ss:$0 sm:$0xff] }
0x1a25   :  { %4470 = vmatprep.mubr.msk.bf16.mxu1 %vm5111_vm0, %v5110_v0  ;;  %4461 = vmatpush3.bf16.msra.mxu0 %v4690_v34 }
0x1a26   :  { %4474 = vmatprep.subr.bf16.mxu0 %v5110_v0  ;;  %4467 = vmatpush3.bf16.msra.mxu1 %v4693_v30 }
0x1a27   :  { %4468 = vmatprep.subr.bf16.mxu1 %v5110_v0 }
0x1a2a   :  { %4469 = vmatpush3.bf16.msra.mxu1 %v4694_v32 }
0x1a2b   :  { %4482 = vmatprep.subr.bf16.mxu1 %v5110_v0 }
0x1af3   :  { %v2451_v13 = vpop.f32.mrb[72].mxu0 }
0x1af4   :  { %v4450_v26 = vpop.f32.mrb[73].mxu0 }
0x1af5   :  { %v2454_v21 = vpop.f32.mrb[74].mxu0 }
0x1af6   :  { %v4451_v35 = vpop.f32.mrb[75].mxu0 }
0x1af7   :  { %v2499_v3 = vpop.f32.mrb[72].mxu1  ;;  %v2627_v35 = vrot.slane %v5858_v50, %v5639_v36 }
0x1af8   :  { %v4657_v37 = vpack.i.bf16 %v2499_v3, %v2451_v13  ;;  %v4456_v38 = vpop.f32.mrb[73].mxu1 }
0x1af9   :  { %v2502_v39 = vpop.f32.mrb[74].mxu1 }
0x1afa   :  { %v4457_v42 = vpop.f32.mrb[75].mxu1  ;;  %4658 = vrot.lane.b32.xlu0 %v4657_v37, %s5120_s11 }
0x1b6c   :  { %v4659_v55 = vpop.permute.xlu0 %4658 }
0x1b6d   :  { %v4661_v58 = vunpack.i.h.bf16 %v4659_v55  ;;  %v4660_v59 = vunpack.i.l.bf16 %v4659_v55 }
0x1b6f   :  { %v2534_v10 = vsel %vm1272_vm5, %v2532_v61, %v4661_v58  ;;  %v2533_v5 = vsel %vm1272_vm5, %v2531_v63, %v4660_v59 }
0x1b70   :  { %v2535_v6 = vpack.c.bf16 %v2534_v10, %v2533_v5 }
0x1b72   :  { %4463 = vmatmul.mubr.msk.bf16.vlgmr.msra.gmra.mrb[76].mxu0 %vm253_vm1, %v2535_v6 }
0x1b73   :  { %4478 = vmatprep.mubr.msk.bf16.mxu0 %vm5111_vm0, %v5110_v0 }
0x1c45   :  { %v2589_v7 = vpop.f32.mrb[76].mxu0 }
0x1c46   :  { %v2590_v9 = vadd.f32 %v2589_v7, %v2539_v47  ;;  %v4464_v11 = vpop.f32.mrb[77].mxu0 }
0x1c47   :  { %v2592_v14 = vpop.f32.mrb[78].mxu0 }
0x1c48   :  { %v2593_v15 = vadd.f32 %v2592_v14, %v2539_v47  ;;  %v4465_v17 = vpop.f32.mrb[79].mxu0  ;;  %v2596_v18 = vadd.f32 %v2590_v9, %v5677_v45 }
0x1c4a   :  { %v2598_v19 = vsel %vm253_vm1, %v2596_v18, 0.0  ;;  %v2597_v20 = vadd.f32 %v2593_v15, %v5679_v46  ;;  %v4691_v46 = vld [vmem:[%s6157_s15] sm:$0xff]  }
0x1c4b   :  { %2599 = vadd.xlane.f32.xlu1 %v2598_v19  ;;  %4475 = vmatpush3.bf16.msra.mxu0 %v4691_v46 }
0x1c4c   :  { %v2601_v51 = vsel %vm253_vm1, %v2597_v20, 0.0  ;;  %4476 = vmatprep.subr.bf16.mxu0 %v5110_v0 }
0x1c4d   :  { %2602 = vadd.xlane.f32.xlu0 %v2601_v51 }
0x1c4f   :  { %4477 = vmatpush3.bf16.msra.mxu0 %v4692_v29 }
0x1c50   :  { %4488 = vmatprep.subr.bf16.mxu0 %v5110_v0 }
0x1c52   :  { %4479 = vmatmul.mubr.msk.bf16.vlgmr.msra.gmra.mrb[80].mxu0 %vm253_vm1, %v5419_v8 }
0x1c53   :  { %4490 = vmatprep.mubr.msk.bf16.mxu0 %vm5111_vm0, %v5110_v0 }
0x1cd8   :  { %v2600_v41 = vpop.xlane.xlu1 %2599 }
0x1cd9   :  { %v2604_v48 = vmul.f32 0.03125, %v2600_v41 }
0x1cda   :  { %v2603_v49 = vpop.xlane.xlu0 %2602 }
0x1cdb   :  { %v2606_v22 = vsub.f32 %v2596_v18, %v2604_v48  ;;  %v2605_v23 = vmul.f32 0.03125, %v2603_v49 }
0x1cdd   :  { %v2607_v24 = vsub.f32 %v2597_v20, %v2605_v23  ;;  %v2608_v25 = vmul.f32 %v2606_v22, %v2606_v22 }
0x1cdf   :  { %v2610_v27 = vsel %vm253_vm1, %v2608_v25, 0.0  ;;  %v2609_v28 = vmul.f32 %v2607_v24, %v2607_v24 }
0x1ce0   :  { %2611 = vadd.xlane.f32.xlu0 %v2610_v27 }
0x1ce1   :  { %v2613_v45 = vsel %vm253_vm1, %v2609_v28, 0.0 }
0x1ce2   :  { %2614 = vadd.xlane.f32.xlu1 %v2613_v45 }
0x1cf6   :  { %2724 = vrot.lane.b32.xlu0 %v4040_v54, %s5112_s24 }
0x1d25   :  { %v2761_v53 = vpop.f32.mrb[80].mxu0 }
0x1d26   :  { %v4480_v56 = vpop.f32.mrb[81].mxu0 }
0x1d27   :  { %v2764_v58 = vpop.f32.mrb[82].mxu0 }
0x1d28   :  { %v4481_v61 = vpop.f32.mrb[83].mxu0 }
0x1d6d   :  { %v2612_v12 = vpop.xlane.xlu0 %2611 }
0x1d6e   :  { %v2616_v34 = vmul.f32 0.03125, %v2612_v12 }
0x1d6f   :  { %v2615_v8 = vpop.xlane.xlu1 %2614 }
0x1d70   :  { %v2618_v13 = vadd.f32 1e-05, %v2616_v34  ;;  %v2617_v26 = vmul.f32 0.03125, %v2615_v8 }
0x1d71   :  { %v2725_v55 = vpop.permute.xlu0 %2724 }
0x1d72   :  { %4773 = vrsqrt.f32 %v2618_v13  ;;  %v2619_v21 = vadd.f32 1e-05, %v2617_v26  ;;  %v2762_v57 = vadd.f32 %v2761_v53, %v2725_v55  ;;  %v2765_v40 = vadd.f32 %v2764_v58, %v2725_v55 }
0x1d74   :  { %4775 = vrsqrt.f32 %v2619_v21  ;;  %v5900_v59 = vpack.c.bf16 %v2762_v57, %v2762_v57  ;;  %v5902_v63 = vpack.c.bf16 %v2765_v40, %v2765_v40 }
0x1d76   :  { %v2784_v10 = vsel %vm369_vm2, %v5900_v59, 0  ;;  %2944 = vrot.lane.b32.xlu0 %v5902_v63, %s5112_s24  ;;  %v2830_v5 = vsel %vm369_vm2, %v5902_v63, 0 }
0x1d77   :  { %4489 = vmatpush3.bf16.xpose.msra.mxu0 %v2830_v5 }
0x1d78   :  { %4500 = vmatprep.subr.bf16.mxu0 %v5110_v0 }
0x1d7a   :  { %2994 = vrot.lane.b32.xlu0 %v5900_v59, %s5113_s6 }
0x1d7c   :  { %v4774_v3 = vpop.eup %4773 }
0x1d7d   :  { %v2622_v37 = vmul.f32 %v4774_v3, %v2606_v22 }
0x1d7e   :  { %v4776_v38 = vpop.eup %4775  ;;  %3044 = vrot.lane.b32.xlu0 %v5902_v63, %s5113_s6 }
0x1d7f   :  { %v2628_v39 = vmul.f32 %v2627_v35, %v2622_v37  ;;  %v2623_v42 = vmul.f32 %v4776_v38, %v2607_v24 }
0x1d81   :  { %v2629_v44 = vmul.f32 %v2627_v35, %v2623_v42  ;;  %v5891_v2 = vadd.f32 %v2633_v43, %v2628_v39 }
0x1d83   :  { %v5893_v33 = vadd.f32 %v2633_v43, %v2629_v44 }
0x1d85   :  { %v2649_v52 = vpack.c.bf16 %v5893_v33, %v5891_v2 }
0x1d87   :  { %4471 = vmatmul.mubr.msk.bf16.vlgmr.msra.gmra.mrb[76].mxu1 %vm253_vm1, %v2649_v52 }
0x1d88   :  { %4484 = vmatprep.mubr.msk.bf16.mxu1 %vm5111_vm0, %v5110_v0  ;;  %4483 = vmatpush3.bf16.xpose.msra.mxu1 %v2784_v10 }
0x1d89   :  { %4494 = vmatprep.subr.bf16.mxu1 %v5110_v0 }
0x1de8   :  { %v2945_v17 = vpop.permute.xlu0 %2944 }
0x1de9   :  { %v2950_v19 = vsel %vm491_vm3, %v2945_v17, 0 }
0x1dec   :  { %v2995_v37 = vpop.permute.xlu0 %2994 }
0x1ded   :  { %v3000_v52 = vsel %vm369_vm2, %v2995_v37, 0 }
0x1df0   :  { %v3045_v44 = vpop.permute.xlu0 %3044 }
0x1df1   :  { %v3050_v55 = vsel %vm369_vm2, %v3045_v44, 0 }
0x1e5a   :  { %v2705_v6 = vpop.f32.mrb[76].mxu1 }
0x1e5b   :  { %v2706_v47 = vadd.f32 %v4040_v54, %v2705_v6  ;;  %v4472_v7 = vpop.f32.mrb[77].mxu1 }
0x1e5c   :  { %v2708_v9 = vpop.f32.mrb[78].mxu1 }
0x1e5d   :  { %v5916_v11 = vpack.c.bf16 %v2706_v47, %v2706_v47  ;;  %v2709_v14 = vadd.f32 %v4040_v54, %v2708_v9  ;;  %v4473_v15 = vpop.f32.mrb[79].mxu1 }
0x1e5f   :  { %v5918_v18 = vpack.c.bf16 %v2709_v14, %v2709_v14  ;;  %4485 = vmatmul.mubr.msk.bf16.vlgmr.msra.gmra.mrb[80].mxu1 %vm369_vm2, %v5916_v11  ;;  %2992 = vrot.lane.b32.xlu0 %v5916_v11, %s5113_s6 }
0x1e60   :  { %4496 = vmatprep.mubr.msk.bf16.mxu1 %vm5111_vm0, %v5110_v0 }
0x1e61   :  { %4491 = vmatmul.mubr.msk.bf16.vlgmr.msra.gmra.mrb[84].mxu0 %vm369_vm2, %v5918_v18 }
0x1e62   :  { %4501 = vmatpush3.bf16.msra.mxu0 %v2950_v19  ;;  %4502 = vmatprep.mubr.msk.bf16.mxu0 %vm5111_vm0, %v5110_v0 }
0x1e63   :  { %4512 = vmatprep.subr.bf16.mxu0 %v5110_v0 }
0x1ed1   :  { %v2993_v56 = vpop.permute.xlu0 %2992 }
0x1f32   :  { %v2820_v20 = vpop.f32.mrb[80].mxu1 }
0x1f33   :  { %v4486_v51 = vpop.f32.mrb[81].mxu1  ;;  %v2872_v41 = vsel %vm369_vm2, %v2820_v20, -inf }
0x1f34   :  { %2873 = vmax.xlane.f32.xlu1 %v2872_v41  ;;  %v2823_v48 = vpop.f32.mrb[82].mxu1  ;;  %v2866_v49 = vpop.f32.mrb[84].mxu0 }
0x1f35   :  { %v4487_v22 = vpop.f32.mrb[83].mxu1  ;;  %v4492_v23 = vpop.f32.mrb[85].mxu0  ;;  %v2875_v27 = vsel %vm369_vm2, %v2866_v49, -inf }
0x1f36   :  { %v2869_v24 = vpop.f32.mrb[86].mxu0 }
0x1f37   :  { %v4493_v25 = vpop.f32.mrb[87].mxu0 }
0x1f38   :  { %2876 = vmax.xlane.f32.xlu1 %v2875_v27 }
0x1fc1   :  { %v2874_v28 = vpop.xlane.xlu1 %2873 }
0x1fc2   :  { %v2878_v45 = vsub.f32 %v2820_v20, %v2874_v28 }
0x1fc4   :  { %v2880_v46 = vmul.f32 1.442695, %v2878_v45 }
0x1fc5   :  { %v2877_v29 = vpop.xlane.xlu1 %2876 }
0x1fc6   :  { %4777 = vpow2.f32 %v2880_v46  ;;  %v2879_v30 = vsub.f32 %v2866_v49, %v2877_v29 }
0x1fc8   :  { %v2882_v32 = vmul.f32 1.442695, %v2879_v30 }
0x1fca   :  { %4779 = vpow2.f32 %v2882_v32 }
0x1fd0   :  { %v4778_v54 = vpop.eup %4777 }
0x1fd1   :  { %v2884_v12 = vsel %vm369_vm2, %v4778_v54, 0.0 }
0x1fd2   :  { %2885 = vadd.xlane.f32.xlu1 %v2884_v12 }
0x1fd4   :  { %v4780_v34 = vpop.eup %4779 }
0x1fd5   :  { %v2887_v8 = vsel %vm369_vm2, %v4780_v34, 0.0 }
0x1fd6   :  { %2888 = vadd.xlane.f32.xlu1 %v2887_v8 }
0x1fe7   :  { %2896 = vrot.lane.b32.xlu1 %v5900_v59, %s5112_s24 }
0x1feb   :  { %3042 = vrot.lane.b32.xlu1 %v5918_v18, %s5113_s6 }
0x205f   :  { %v2886_v13 = vpop.xlane.xlu1 %2885 }
0x2060   :  { %4781 = vrcp.f32 %v2886_v13 }
0x2063   :  { %v2889_v26 = vpop.xlane.xlu1 %2888 }
0x2064   :  { %4783 = vrcp.f32 %v2889_v26 }
0x2067   :  { %v2897_v21 = vpop.permute.xlu1 %2896 }
0x2068   :  { %v2902_v35 = vsel %vm491_vm3, %v2897_v21, 0 }
0x2069   :  { %4495 = vmatpush3.bf16.msra.mxu1 %v2902_v35 }
0x206a   :  { %v4782_v3 = vpop.eup %4781  ;;  %4506 = vmatprep.subr.bf16.mxu1 %v5110_v0 }
0x206b   :  { %v2892_v38 = vmul.f32 %v4782_v3, %v4778_v54  ;;  %v3043_v57 = vpop.permute.xlu1 %3042 }
0x206d   :  { %v2894_v39 = vpack.c.bf16 %v2892_v38, %v2892_v38 }
0x206e   :  { %v4784_v42 = vpop.eup %4783 }
0x206f   :  { %v2893_v43 = vmul.f32 %v4784_v42, %v4780_v34  ;;  %4497 = vmatmul.mubr.msk.bf16.vlgmr.msra.gmra.mrb[84].mxu1 %vm369_vm2, %v2894_v39 }
0x2070   :  { %4508 = vmatprep.mubr.msk.bf16.mxu1 %vm5111_vm0, %v5110_v0 }
0x2071   :  { %v2895_v53 = vpack.c.bf16 %v2893_v43, %v2893_v43 }
0x2072   :  { %4507 = vmatpush3.bf16.xpose.msra.mxu1 %v3000_v52 }
0x2073   :  { %4503 = vmatmul.mubr.msk.bf16.vlgmr.msra.gmra.mrb[88].mxu0 %vm369_vm2, %v2895_v53  ;;  %4518 = vmatprep.subr.bf16.mxu1 %v5110_v0 }
0x2074   :  { %4513 = vmatpush3.bf16.xpose.msra.mxu0 %v3050_v55  ;;  %4514 = vmatprep.mubr.msk.bf16.mxu0 %vm5111_vm0, %v5110_v0 }
0x2075   :  { %4524 = vmatprep.subr.bf16.mxu0 %v5110_v0 }
0x2079   :  { %4509 = vmatmul.mubr.msk.bf16.vlgmr.msra.gmra.mrb[88].mxu1 %vm369_vm2, %v2993_v56 }
0x207a   :  { %4520 = vmatprep.mubr.msk.bf16.mxu1 %vm5111_vm0, %v5110_v0 }
0x207b   :  { %4515 = vmatmul.mubr.msk.bf16.vlgmr.msra.gmra.mrb[92].mxu0 %vm369_vm2, %v3043_v57 }
0x207c   :  { %4526 = vmatprep.mubr.msk.bf16.mxu0 %vm5111_vm0, %v5110_v0 }
0x2142   :  { %v5958_v58 = vpop.f32.mrb[84].mxu1 }
0x2143   :  { %v4498_v40 = vpop.f32.mrb[85].mxu1 }
0x2144   :  { %v2941_v61 = vpop.f32.mrb[86].mxu1 }
0x2145   :  { %v4499_v10 = vpop.f32.mrb[87].mxu1 }
0x2146   :  { %v5960_v5 = vpop.f32.mrb[88].mxu0 }
0x2147   :  { %v4504_v6 = vpop.f32.mrb[89].mxu0 }
0x2148   :  { %v2989_v47 = vpop.f32.mrb[90].mxu0 }
0x2149   :  { %v4505_v7 = vpop.f32.mrb[91].mxu0 }
0x214c   :  { %v3036_v9 = vpop.f32.mrb[88].mxu1 }
0x214d   :  { %v4510_v14 = vpop.f32.mrb[89].mxu1  ;;  %v3092_v15 = vsel %vm369_vm2, %v3036_v9, -inf }
0x214e   :  { %3093 = vmax.xlane.f32.xlu0 %v3092_v15  ;;  %v3039_v17 = vpop.f32.mrb[90].mxu1  ;;  %v3086_v19 = vpop.f32.mrb[92].mxu0 }
0x214f   :  { %v4511_v20 = vpop.f32.mrb[91].mxu1  ;;  %v4516_v51 = vpop.f32.mrb[93].mxu0  ;;  %v3095_v41 = vsel %vm369_vm2, %v3086_v19, -inf }
0x2150   :  { %3096 = vmax.xlane.f32.xlu1 %v3095_v41  ;;  %v3089_v48 = vpop.f32.mrb[94].mxu0 }
0x2151   :  { %v4517_v49 = vpop.f32.mrb[95].mxu0 }
0x2161   :  { %3116 = vrot.lane.b32.xlu1 %v5900_v59, %s5114_s7 }
0x2165   :  { %3214 = vrot.lane.b32.xlu1 %v5900_v59, %s5115_s21 }
0x2169   :  { %3264 = vrot.lane.b32.xlu1 %v5902_v63, %s5115_s21 }
0x216d   :  { %3262 = vrot.lane.b32.xlu1 %v5918_v18, %s5115_s21 }
0x21db   :  { %v3094_v22 = vpop.xlane.xlu0 %3093 }
0x21dc   :  { %v3098_v23 = vsub.f32 %v3036_v9, %v3094_v22 }
0x21dd   :  { %v3097_v24 = vpop.xlane.xlu1 %3096 }
0x21de   :  { %v3100_v25 = vmul.f32 1.442695, %v3098_v23  ;;  %v3099_v27 = vsub.f32 %v3086_v19, %v3097_v24 }
0x21e0   :  { %4785 = vpow2.f32 %v3100_v25  ;;  %v3102_v28 = vmul.f32 1.442695, %v3099_v27 }
0x21e1   :  { %v3117_v45 = vpop.permute.xlu1 %3116 }
0x21e2   :  { %4787 = vpow2.f32 %v3102_v28  ;;  %v3122_v46 = vsel %vm491_vm3, %v3117_v45, 0 }
0x21e3   :  { %4519 = vmatpush3.bf16.msra.mxu1 %v3122_v46 }
0x21e4   :  { %4530 = vmatprep.subr.bf16.mxu1 %v5110_v0 }
0x21e5   :  { %v3215_v21 = vpop.permute.xlu1 %3214 }
0x21e6   :  { %v3220_v38 = vsel %vm369_vm2, %v3215_v21, 0 }
0x21e9   :  { %v3265_v42 = vpop.permute.xlu1 %3264 }
0x21ea   :  { %v4786_v29 = vpop.eup %4785  ;;  %v3270_v44 = vsel %vm369_vm2, %v3265_v42, 0 }
0x21eb   :  { %v3104_v30 = vsel %vm369_vm2, %v4786_v29, 0.0 }
0x21ec   :  { %v4788_v32 = vpop.eup %4787  ;;  %3105 = vadd.xlane.f32.xlu0 %v3104_v30 }
0x21ed   :  { %v3107_v54 = vsel %vm369_vm2, %v4788_v32, 0.0  ;;  %v3263_v53 = vpop.permute.xlu1 %3262 }
0x21f0   :  { %3108 = vadd.xlane.f32.xlu0 %v3107_v54 }
0x2206   :  { %3164 = vrot.lane.b32.xlu0 %v5902_v63, %s5114_s7 }
0x220a   :  { %3212 = vrot.lane.b32.xlu0 %v5916_v11, %s5115_s21 }
0x2279   :  { %v3106_v12 = vpop.xlane.xlu0 %3105 }
0x227a   :  { %4789 = vrcp.f32 %v3106_v12 }
0x227d   :  { %v3109_v34 = vpop.xlane.xlu0 %3108 }
0x227e   :  { %4791 = vrcp.f32 %v3109_v34 }
0x2281   :  { %v3165_v8 = vpop.permute.xlu0 %3164 }
0x2282   :  { %v3170_v13 = vsel %vm491_vm3, %v3165_v8, 0 }
0x2283   :  { %4525 = vmatpush3.bf16.msra.mxu0 %v3170_v13 }
0x2284   :  { %v4790_v26 = vpop.eup %4789  ;;  %4536 = vmatprep.subr.bf16.mxu0 %v5110_v0 }
0x2285   :  { %v3112_v35 = vmul.f32 %v4790_v26, %v4786_v29  ;;  %v3213_v52 = vpop.permute.xlu0 %3212 }
0x2287   :  { %v3114_v3 = vpack.c.bf16 %v3112_v35, %v3112_v35 }
0x2288   :  { %v4792_v37 = vpop.eup %4791 }
0x2289   :  { %v3113_v39 = vmul.f32 %v4792_v37, %v4788_v32  ;;  %4521 = vmatmul.mubr.msk.bf16.vlgmr.msra.gmra.mrb[92].mxu1 %vm369_vm2, %v3114_v3 }
0x228a   :  { %4531 = vmatpush3.bf16.xpose.msra.mxu1 %v3220_v38  ;;  %4532 = vmatprep.mubr.msk.bf16.mxu1 %vm5111_vm0, %v5110_v0 }
0x228b   :  { %v3115_v43 = vpack.c.bf16 %v3113_v39, %v3113_v39  ;;  %4542 = vmatprep.subr.bf16.mxu1 %v5110_v0 }
0x228d   :  { %4527 = vmatmul.mubr.msk.bf16.vlgmr.msra.gmra.mrb[96].mxu0 %vm369_vm2, %v3115_v43 }
0x228e   :  { %4537 = vmatpush3.bf16.xpose.msra.mxu0 %v3270_v44  ;;  %4538 = vmatprep.mubr.msk.bf16.mxu0 %vm5111_vm0, %v5110_v0 }
0x228f   :  { %4548 = vmatprep.subr.bf16.mxu0 %v5110_v0 }
0x2291   :  { %4533 = vmatmul.mubr.msk.bf16.vlgmr.msra.gmra.mrb[96].mxu1 %vm369_vm2, %v3213_v52 }
0x2292   :  { %4544 = vmatprep.mubr.msk.bf16.mxu1 %vm5111_vm0, %v5110_v0 }
0x2295   :  { %4539 = vmatmul.mubr.msk.bf16.vlgmr.msra.gmra.mrb[100].mxu0 %vm369_vm2, %v3263_v53 }
0x2296   :  { %4550 = vmatprep.mubr.msk.bf16.mxu0 %vm5111_vm0, %v5110_v0 }
0x235c   :  { %v5998_v55 = vpop.f32.mrb[92].mxu1 }
0x235d   :  { %v4522_v56 = vpop.f32.mrb[93].mxu1 }
0x235e   :  { %v3161_v57 = vpop.f32.mrb[94].mxu1 }
0x235f   :  { %v4523_v40 = vpop.f32.mrb[95].mxu1 }
0x2360   :  { %v6000_v61 = vpop.f32.mrb[96].mxu0 }
0x2361   :  { %v4662_v10 = vpack.i.bf16 %v6000_v61, %v5998_v55  ;;  %v4528_v6 = vpop.f32.mrb[97].mxu0 }
0x2362   :  { %v3209_v47 = vpop.f32.mrb[98].mxu0 }
0x2363   :  { %v4529_v7 = vpop.f32.mrb[99].mxu0 }
0x2364   :  { %v3256_v9 = vpop.f32.mrb[96].mxu1 }
0x2365   :  { %v4534_v14 = vpop.f32.mrb[97].mxu1  ;;  %v3312_v15 = vsel %vm369_vm2, %v3256_v9, -inf }
0x2366   :  { %3313 = vmax.xlane.f32.xlu0 %v3312_v15  ;;  %v3259_v17 = vpop.f32.mrb[98].mxu1 }
0x2367   :  { %v4535_v19 = vpop.f32.mrb[99].mxu1 }
0x2368   :  { %v3306_v20 = vpop.f32.mrb[100].mxu0 }
0x2369   :  { %v4540_v51 = vpop.f32.mrb[101].mxu0  ;;  %v3315_v41 = vsel %vm369_vm2, %v3306_v20, -inf }
0x236a   :  { %3316 = vmax.xlane.f32.xlu1 %v3315_v41  ;;  %v3309_v48 = vpop.f32.mrb[102].mxu0 }
0x236b   :  { %v4541_v49 = vpop.f32.mrb[103].mxu0 }
0x237b   :  { %3336 = vrot.lane.b32.xlu1 %v5900_v59, %s5116_s3 }
0x237f   :  { %3434 = vrot.lane.b32.xlu1 %v5900_v59, %s5117_s26 }
0x2383   :  { %3484 = vrot.lane.b32.xlu1 %v5902_v63, %s5117_s26 }
0x2387   :  { %3482 = vrot.lane.b32.xlu1 %v5918_v18, %s5117_s26 }
0x23f3   :  { %v3314_v22 = vpop.xlane.xlu0 %3313 }
0x23f4   :  { %v3318_v23 = vsub.f32 %v3256_v9, %v3314_v22 }
0x23f6   :  { %v3320_v24 = vmul.f32 1.442695, %v3318_v23 }
0x23f7   :  { %v3317_v25 = vpop.xlane.xlu1 %3316 }
0x23f8   :  { %4793 = vpow2.f32 %v3320_v24  ;;  %v3319_v27 = vsub.f32 %v3306_v20, %v3317_v25 }
0x23fa   :  { %v3322_v28 = vmul.f32 1.442695, %v3319_v27 }
0x23fb   :  { %v3337_v45 = vpop.permute.xlu1 %3336 }
0x23fc   :  { %4795 = vpow2.f32 %v3322_v28  ;;  %v3342_v46 = vsel %vm491_vm3, %v3337_v45, 0 }
0x23fd   :  { %4543 = vmatpush3.bf16.msra.mxu1 %v3342_v46 }
0x23fe   :  { %4554 = vmatprep.subr.bf16.mxu1 %v5110_v0 }
0x23ff   :  { %v3435_v26 = vpop.permute.xlu1 %3434 }
0x2400   :  { %v3440_v37 = vsel %vm369_vm2, %v3435_v26, 0 }
0x2402   :  { %v4794_v29 = vpop.eup %4793 }
0x2403   :  { %v3324_v30 = vsel %vm369_vm2, %v4794_v29, 0.0 }
0x2404   :  { %3325 = vadd.xlane.f32.xlu0 %v3324_v30 }
0x2406   :  { %v4796_v32 = vpop.eup %4795 }
0x2407   :  { %v3327_v18 = vsel %vm369_vm2, %v4796_v32, 0.0 }
0x2408   :  { %3328 = vadd.xlane.f32.xlu0 %v3327_v18 }
0x241e   :  { %3384 = vrot.lane.b32.xlu0 %v5902_v63, %s5116_s3 }
0x2422   :  { %3432 = vrot.lane.b32.xlu0 %v5916_v11, %s5117_s26  ;;  %v3485_v11 = vpop.permute.xlu1 %3484 }
0x2423   :  { %v3490_v42 = vsel %vm369_vm2, %v3485_v11, 0 }
0x2426   :  { %v3483_v44 = vpop.permute.xlu1 %3482 }
0x2491   :  { %v3326_v54 = vpop.xlane.xlu0 %3325 }
0x2492   :  { %4797 = vrcp.f32 %v3326_v54 }
0x2495   :  { %v3329_v12 = vpop.xlane.xlu0 %3328 }
0x2496   :  { %4799 = vrcp.f32 %v3329_v12 }
0x2499   :  { %v3385_v34 = vpop.permute.xlu0 %3384 }
0x249a   :  { %v3390_v8 = vsel %vm491_vm3, %v3385_v34, 0 }
0x249b   :  { %4549 = vmatpush3.bf16.msra.mxu0 %v3390_v8 }
0x249c   :  { %v4798_v13 = vpop.eup %4797  ;;  %4560 = vmatprep.subr.bf16.mxu0 %v5110_v0 }
0x249d   :  { %v3332_v21 = vmul.f32 %v4798_v13, %v4794_v29  ;;  %v3433_v43 = vpop.permute.xlu0 %3432 }
0x249f   :  { %v3334_v35 = vpack.c.bf16 %v3332_v21, %v3332_v21  ;;  %v4695_v21 = vld [vmem:[%s6159_s17] sm:$0xff]  }
0x24a0   :  { %v4800_v3 = vpop.eup %4799 }
0x24a1   :  { %v3333_v38 = vmul.f32 %v4800_v3, %v4796_v32  ;;  %4545 = vmatmul.mubr.msk.bf16.vlgmr.msra.gmra.mrb[100].mxu1 %vm369_vm2, %v3334_v35  ;;  %v4696_v35 = vld [vmem:[%s6159_s17 + $0x8] sm:$0xff]  }
0x24a2   :  { %4555 = vmatpush3.bf16.xpose.msra.mxu1 %v3440_v37  ;;  %4556 = vmatprep.mubr.msk.bf16.mxu1 %vm5111_vm0, %v5110_v0 }
0x24a3   :  { %v3335_v39 = vpack.c.bf16 %v3333_v38, %v3333_v38  ;;  %4566 = vmatprep.subr.bf16.mxu1 %v5110_v0 }
0x24a5   :  { %4551 = vmatmul.mubr.msk.bf16.vlgmr.msra.gmra.mrb[104].mxu0 %vm369_vm2, %v3335_v39 }
0x24a6   :  { %4561 = vmatpush3.bf16.xpose.msra.mxu0 %v3490_v42  ;;  %4562 = vmatprep.mubr.msk.bf16.mxu0 %vm5111_vm0, %v5110_v0 }
0x24a7   :  { %4572 = vmatprep.subr.bf16.mxu0 %v5110_v0 }
0x24a9   :  { %4557 = vmatmul.mubr.msk.bf16.vlgmr.msra.gmra.mrb[104].mxu1 %vm369_vm2, %v3433_v43 }
0x24aa   :  { %4568 = vmatprep.mubr.msk.bf16.mxu1 %vm5111_vm0, %v5110_v0 }
0x24ad   :  { %4563 = vmatmul.mubr.msk.bf16.vlgmr.msra.gmra.mrb[108].mxu0 %vm369_vm2, %v3483_v44 }
0x24ae   :  { %4574 = vmatprep.mubr.msk.bf16.mxu0 %vm5111_vm0, %v5110_v0 }
0x2574   :  { %v3378_v52 = vpop.f32.mrb[100].mxu1 }
0x2575   :  { %v4546_v53 = vpop.f32.mrb[101].mxu1 }
0x2576   :  { %v3381_v56 = vpop.f32.mrb[102].mxu1 }
0x2577   :  { %v4547_v57 = vpop.f32.mrb[103].mxu1 }
0x2578   :  { %v3426_v40 = vpop.f32.mrb[104].mxu0 }
0x2579   :  { %v4667_v6 = vpack.i.bf16 %v3426_v40, %v3378_v52  ;;  %v4552_v47 = vpop.f32.mrb[105].mxu0 }
0x257a   :  { %v3429_v7 = vpop.f32.mrb[106].mxu0 }
0x257b   :  { %v4553_v9 = vpop.f32.mrb[107].mxu0 }
0x257c   :  { %v3476_v14 = vpop.f32.mrb[104].mxu1 }
0x257d   :  { %v4558_v15 = vpop.f32.mrb[105].mxu1  ;;  %v3532_v17 = vsel %vm369_vm2, %v3476_v14, -inf }
0x257e   :  { %3533 = vmax.xlane.f32.xlu0 %v3532_v17  ;;  %v3479_v19 = vpop.f32.mrb[106].mxu1 }
0x257f   :  { %v4559_v20 = vpop.f32.mrb[107].mxu1 }
0x2580   :  { %v3526_v51 = vpop.f32.mrb[108].mxu0 }
0x2581   :  { %v4564_v41 = vpop.f32.mrb[109].mxu0  ;;  %v3535_v48 = vsel %vm369_vm2, %v3526_v51, -inf }
0x2582   :  { %3536 = vmax.xlane.f32.xlu1 %v3535_v48  ;;  %v3529_v49 = vpop.f32.mrb[110].mxu0 }
0x2583   :  { %v4565_v22 = vpop.f32.mrb[111].mxu0 }
0x2593   :  { %3556 = vrot.lane.b32.xlu1 %v5900_v59, %s5118_s4 }
0x2597   :  { %4663 = vrot.lane.b32.xlu1 %v4662_v10, %s5102_s23 }
0x259b   :  { %4668 = vrot.lane.b32.xlu1 %v4667_v6, %s5119_s25 }
0x260b   :  { %v3534_v23 = vpop.xlane.xlu0 %3533 }
0x260c   :  { %v3538_v24 = vsub.f32 %v3476_v14, %v3534_v23 }
0x260e   :  { %v3540_v25 = vmul.f32 1.442695, %v3538_v24 }
0x260f   :  { %v3537_v27 = vpop.xlane.xlu1 %3536 }
0x2610   :  { %4801 = vpow2.f32 %v3540_v25  ;;  %v3539_v28 = vsub.f32 %v3526_v51, %v3537_v27 }
0x2612   :  { %v3542_v45 = vmul.f32 1.442695, %v3539_v28 }
0x2613   :  { %v3557_v46 = vpop.permute.xlu1 %3556 }
0x2614   :  { %4803 = vpow2.f32 %v3542_v45  ;;  %v3562_v29 = vsel %vm491_vm3, %v3557_v46, 0 }
0x2615   :  { %4567 = vmatpush3.bf16.msra.mxu1 %v3562_v29 }
0x2616   :  { %4578 = vmatprep.subr.bf16.mxu1 %v5110_v0 }
0x2617   :  { %v4664_v53 = vpop.permute.xlu1 %4663 }
0x2618   :  { %v4666_v57 = vunpack.i.h.bf16 %v4664_v53  ;;  %v4665_v40 = vunpack.i.l.bf16 %v4664_v53  ;;  %v4699_v53 = vld [vmem:[%s6161_s19] sm:$0xff]  }
0x261a   :  { %v4802_v59 = vpop.eup %4801  ;;  %v3677_v9 = vsel %vm369_vm2, %v5960_v5, %v4666_v57  ;;  %v3676_v14 = vsel %vm369_vm2, %v5958_v58, %v4665_v40  ;;  %v3686_v58 = vrot.slane %v5858_v50, %v1388_v31 }
0x261b   :  { %v3544_v55 = vsel %vm369_vm2, %v4802_v59, 0.0  ;;  %v4669_v56 = vpop.permute.xlu1 %4668 }
0x261c   :  { %3545 = vadd.xlane.f32.xlu0 %v3544_v55  ;;  %v4671_v6 = vunpack.i.h.bf16 %v4669_v56  ;;  %v4670_v47 = vunpack.i.l.bf16 %v4669_v56 }
0x261e   :  { %v4804_v61 = vpop.eup %4803  ;;  %v3678_v19 = vsel %vm1269_vm4, %v3676_v14, %v4670_v47  ;;  %v3679_v20 = vsel %vm1269_vm4, %v3677_v9, %v4671_v6 }
0x261f   :  { %v3547_v10 = vsel %vm369_vm2, %v4804_v61, 0.0 }
0x2620   :  { %3548 = vadd.xlane.f32.xlu0 %v3547_v10 }
0x2636   :  { %3604 = vrot.lane.b32.xlu0 %v5902_v63, %s5118_s4 }
0x26a9   :  { %v3546_v30 = vpop.xlane.xlu0 %3545 }
0x26aa   :  { %4805 = vrcp.f32 %v3546_v30 }
0x26ad   :  { %v3549_v32 = vpop.xlane.xlu0 %3548 }
0x26ae   :  { %4807 = vrcp.f32 %v3549_v32 }
0x26b1   :  { %v3605_v18 = vpop.permute.xlu0 %3604 }
0x26b2   :  { %v3610_v54 = vsel %vm491_vm3, %v3605_v18, 0 }
0x26b3   :  { %4573 = vmatpush3.bf16.msra.mxu0 %v3610_v54  ;;  %v4698_v54 = vld [vmem:[%s6160_s18 + $0x8] sm:$0xff]  }
0x26b4   :  { %v4806_v12 = vpop.eup %4805  ;;  %4586 = vmatprep.subr.bf16.mxu0 %v5110_v0 }
0x26b5   :  { %v3552_v34 = vmul.f32 %v4806_v12, %v4802_v59 }
0x26b7   :  { %v3554_v8 = vpack.c.bf16 %v3552_v34, %v3552_v34 }
0x26b8   :  { %v4808_v13 = vpop.eup %4807 }
0x26b9   :  { %v3553_v26 = vmul.f32 %v4808_v13, %v4804_v61  ;;  %4569 = vmatmul.mubr.msk.bf16.vlgmr.msra.gmra.mrb[108].mxu1 %vm369_vm2, %v3554_v8 }
0x26ba   :  { %4582 = vmatprep.mubr.msk.bf16.mxu1 %vm5111_vm0, %v5110_v0  ;;  %4579 = vmatpush3.bf16.msra.mxu1 %v4695_v21  ;;  %v3774_v21 = vrot.slane %v5858_v50, %v1451_v60  ;;  %v4700_v60 = vld [vmem:[%s6161_s19 + $0x8] sm:$0xff]   ;;  %s5124_s19 = smov [#allocation20]  }
0x26bb   :  { %v3555_v63 = vpack.c.bf16 %v3553_v26, %v3553_v26  ;;  %4580 = vmatprep.subr.bf16.mxu1 %v5110_v0  ;;  %s3962_s3 = sshll.u32 %s5124_s19, 4  ;;  %s3963_s3 = int_to_ptr.vmem [resolvable:$true] %s3962_s3 }
0x26bc   :  { %s5059_s26 = scalar_lea.vmem %s3963_s3, 256  ;;  %p5064_p5 = scmp.lt.s32.totalorder %s3963_s3, %s3963_s3 }
0x26bd   :  { %4575 = vmatmul.mubr.msk.bf16.vlgmr.msra.gmra.mrb[112].mxu0 %vm369_vm2, %v3555_v63  ;;  %p5060_p4 = scmp.ne.s32.totalorder %s3963_s3, %s5059_s26  ;;  %p5065_p6 = scmp.lt.s32.totalorder %s5059_s26, %s5059_s26 }
0x26be   :  { %4590 = vmatprep.mubr.msk.bf16.mxu0 %vm5111_vm0, %v5110_v0  ;;  %4581 = vmatpush3.bf16.msra.mxu1 %v4696_v35 }
0x26bf   :  { %4594 = vmatprep.subr.bf16.mxu1 %v5110_v0  ;;  %p5066_p7 = por %p5065_p6, %p5064_p5 }
0x26c1   :  { %p5067_p8 = pnand %p5066_p7, %p5060_p4 }
0x278c   :  { %v3598_v3 = vpop.f32.mrb[108].mxu1 }
0x278d   :  { %v4570_v37 = vpop.f32.mrb[109].mxu1 }
0x278e   :  { %v3601_v38 = vpop.f32.mrb[110].mxu1 }
0x278f   :  { %v4571_v11 = vpop.f32.mrb[111].mxu1 }
0x2790   :  { %v3646_v39 = vpop.f32.mrb[112].mxu0 }
0x2791   :  { %v4672_v42 = vpack.i.bf16 %v3646_v39, %v3598_v3  ;;  %v4576_v43 = vpop.f32.mrb[113].mxu0  ;;  %v3780_v39 = vrot.slane %v5858_v50, %v1539_v62  ;;  %v3795_v62 = vrot.slane %v5858_v50, %v1545_v4 }
0x2792   :  { %v3649_v44 = vpop.f32.mrb[114].mxu0 }
0x2793   :  { %4673 = vrot.lane.b32.xlu0 %v4672_v42, %s5120_s11  ;;  %v4577_v52 = vpop.f32.mrb[115].mxu0 }
0x2805   :  { %v4674_v7 = vpop.permute.xlu0 %4673 }
0x2806   :  { %v4676_v15 = vunpack.i.h.bf16 %v4674_v7  ;;  %v4675_v17 = vunpack.i.l.bf16 %v4674_v7 }
0x2808   :  { %v3681_v51 = vsel %vm1272_vm5, %v3679_v20, %v4676_v15  ;;  %v3680_v41 = vsel %vm1272_vm5, %v3678_v19, %v4675_v17 }
0x2809   :  { %v3682_v48 = vpack.c.bf16 %v3681_v51, %v3680_v41 }
0x280b   :  { %4583 = vmatmul.mubr.msk.bf16.vlgmr.msra.gmra.mrb[112].mxu1 %vm253_vm1, %v3682_v48 }
0x280c   :  { %4598 = vmatprep.mubr.msk.bf16.mxu1 %vm5111_vm0, %v5110_v0  ;;  %4595 = vmatpush3.bf16.msra.mxu1 %v4699_v53 }
0x280d   :  { %4596 = vmatprep.subr.bf16.mxu1 %v5110_v0 }
0x2810   :  { %4597 = vmatpush3.bf16.msra.mxu1 %v4700_v60 }
0x28de   :  { %v3736_v5 = vpop.f32.mrb[112].mxu1 }
0x28df   :  { %v3737_v49 = vadd.f32 %v3736_v5, %v3686_v58  ;;  %v4584_v22 = vpop.f32.mrb[113].mxu1 }
0x28e0   :  { %v3739_v23 = vpop.f32.mrb[114].mxu1 }
0x28e1   :  { %v3743_v24 = vadd.f32 %v3737_v49, %v5891_v2  ;;  %v3740_v25 = vadd.f32 %v3739_v23, %v3686_v58  ;;  %v4585_v27 = vpop.f32.mrb[115].mxu1 }
0x28e3   :  { %v3744_v28 = vadd.f32 %v3740_v25, %v5893_v33  ;;  %v3745_v45 = vsel %vm253_vm1, %v3743_v24, 0.0  ;;  %v4697_v33 = vld [vmem:[%s6160_s18] sm:$0xff]  }
0x28e4   :  { %3746 = vadd.xlane.f32.xlu1 %v3745_v45  ;;  %4587 = vmatpush3.bf16.msra.mxu0 %v4697_v33 }
0x28e5   :  { %v3748_v46 = vsel %vm253_vm1, %v3744_v28, 0.0  ;;  %4588 = vmatprep.subr.bf16.mxu0 %v5110_v0  ;;  %v3857_v0 = vsub.s32 7, %v5621_v16 }
0x28e6   :  { %3749 = vadd.xlane.f32.xlu0 %v3748_v46 }
0x28e7   :  { %v3858_v17 = vrot.slane %v5858_v50, %v3857_v0 }
0x28e8   :  { %4589 = vmatpush3.bf16.msra.mxu0 %v4698_v54 }
0x2971   :  { %v3747_v29 = vpop.xlane.xlu1 %3746 }
0x2972   :  { %v3751_v59 = vmul.f32 0.03125, %v3747_v29 }
0x2973   :  { %v3750_v55 = vpop.xlane.xlu0 %3749 }
0x2974   :  { %v3753_v31 = vsub.f32 %v3743_v24, %v3751_v59  ;;  %v3752_v61 = vmul.f32 0.03125, %v3750_v55 }
0x2976   :  { %v3754_v10 = vsub.f32 %v3744_v28, %v3752_v61  ;;  %v3755_v30 = vmul.f32 %v3753_v31, %v3753_v31 }
0x2978   :  { %v3757_v32 = vsel %vm253_vm1, %v3755_v30, 0.0  ;;  %v3756_v2 = vmul.f32 %v3754_v10, %v3754_v10 }
0x2979   :  { %3758 = vadd.xlane.f32.xlu0 %v3757_v32  ;;  %v1550_v32 = vld [vmem:[#allocation14 + $0x8] sm:$0x3] }
0x297a   :  { %v3760_v18 = vsel %vm253_vm1, %v3756_v2, 0.0  ;;  %v3946_v2 = vrot.slane %v1550_v32, %v5624_v1  ;;  %v3952_v54 = vrot.slane %v1550_v32, %v5639_v36 }
0x297b   :  { %3761 = vadd.xlane.f32.xlu1 %v3760_v18 }
0x2a06   :  { %v3759_v12 = vpop.xlane.xlu0 %3758 }
0x2a07   :  { %v3763_v34 = vmul.f32 0.03125, %v3759_v12 }
0x2a08   :  { %v3762_v8 = vpop.xlane.xlu1 %3761 }
0x2a09   :  { %v3765_v13 = vadd.f32 1e-05, %v3763_v34  ;;  %v3764_v26 = vmul.f32 0.03125, %v3762_v8 }
0x2a0b   :  { %4809 = vrsqrt.f32 %v3765_v13  ;;  %v3766_v63 = vadd.f32 1e-05, %v3764_v26 }
0x2a0d   :  { %4811 = vrsqrt.f32 %v3766_v63 }
0x2a15   :  { %v4810_v35 = vpop.eup %4809 }
0x2a16   :  { %v3769_v3 = vmul.f32 %v4810_v35, %v3753_v31 }
0x2a17   :  { %v4812_v37 = vpop.eup %4811 }
0x2a18   :  { %v3775_v38 = vmul.f32 %v3774_v21, %v3769_v3  ;;  %v3770_v11 = vmul.f32 %v4812_v37, %v3754_v10 }
0x2a1a   :  { %v3776_v42 = vmul.f32 %v3774_v21, %v3770_v11  ;;  %v3781_v43 = vadd.f32 %v3780_v39, %v3775_v38 }
0x2a1c   :  { %v3782_v44 = vadd.f32 %v3780_v39, %v3776_v42 }
0x2a1e   :  { %v3791_v52 = vpack.c.bf16 %v3782_v44, %v3781_v43 }
0x2a20   :  { %4591 = vmatmul.mubr.msk.bf16.vlgmr.msra.gmra.mrb[116].mxu0 %vm253_vm1, %v3791_v52 }
0x2af3   :  { %v3845_v56 = vpop.f32.mrb[116].mxu0 }
0x2af4   :  { %v3846_v57 = vadd.f32 %v3845_v56, %v3795_v62  ;;  %v4592_v40 = vpop.f32.mrb[117].mxu0 }
0x2af5   :  { %v3848_v6 = vpop.f32.mrb[118].mxu0 }
0x2af6   :  { %v3849_v47 = vadd.f32 %v3848_v6, %v3795_v62  ;;  %v4593_v7 = vpop.f32.mrb[119].mxu0  ;;  %v3852_v9 = vmax.f32 %v3846_v57, 0.0 }
0x2af8   :  { %v3853_v14 = vmax.f32 %v3849_v47, 0.0 }
0x2afa   :  { %v3854_v15 = vpack.c.bf16 %v3853_v14, %v3852_v9 }
0x2afc   :  { %4599 = vmatmul.mubr.msk.bf16.vlgmr.msra.gmra.mrb[116].mxu1 %vm253_vm1, %v3854_v15 }
0x2bcf   :  { %v3908_v19 = vpop.f32.mrb[116].mxu1 }
0x2bd0   :  { %v3909_v20 = vadd.f32 %v3908_v19, %v3858_v17  ;;  %v4600_v51 = vpop.f32.mrb[117].mxu1 }
0x2bd1   :  { %v3911_v41 = vpop.f32.mrb[118].mxu1 }
0x2bd2   :  { %v3915_v4 = vadd.f32 %v3909_v20, %v3781_v43  ;;  %v3912_v48 = vadd.f32 %v3911_v41, %v3858_v17  ;;  %v4601_v58 = vpop.f32.mrb[119].mxu1 }
0x2bd4   :  { %v3916_v5 = vadd.f32 %v3912_v48, %v3782_v44  ;;  %v3917_v49 = vsel %vm253_vm1, %v3915_v4, 0.0 }
0x2bd5   :  { %3918 = vadd.xlane.f32.xlu0 %v3917_v49 }
0x2bd6   :  { %v3920_v22 = vsel %vm253_vm1, %v3916_v5, 0.0 }
0x2bd7   :  { %3921 = vadd.xlane.f32.xlu1 %v3920_v22 }
0x2c62   :  { %v3919_v23 = vpop.xlane.xlu0 %3918 }
0x2c63   :  { %v3923_v24 = vmul.f32 0.03125, %v3919_v23 }
0x2c64   :  { %v3922_v25 = vpop.xlane.xlu1 %3921 }
0x2c65   :  { %v3925_v16 = vsub.f32 %v3915_v4, %v3923_v24  ;;  %v3924_v27 = vmul.f32 0.03125, %v3922_v25 }
0x2c67   :  { %v3926_v50 = vsub.f32 %v3916_v5, %v3924_v27  ;;  %v3927_v28 = vmul.f32 %v3925_v16, %v3925_v16 }
0x2c69   :  { %v3929_v45 = vsel %vm253_vm1, %v3927_v28, 0.0  ;;  %v3928_v46 = vmul.f32 %v3926_v50, %v3926_v50 }
0x2c6a   :  { %3930 = vadd.xlane.f32.xlu0 %v3929_v45 }
0x2c6b   :  { %v3932_v29 = vsel %vm253_vm1, %v3928_v46, 0.0 }
0x2c6c   :  { %3933 = vadd.xlane.f32.xlu1 %v3932_v29 }
0x2cf7   :  { %v3931_v59 = vpop.xlane.xlu0 %3930 }
0x2cf8   :  { %v3935_v55 = vmul.f32 0.03125, %v3931_v59 }
0x2cf9   :  { %v3934_v31 = vpop.xlane.xlu1 %3933 }
0x2cfa   :  { %v3937_v61 = vadd.f32 1e-05, %v3935_v55  ;;  %v3936_v10 = vmul.f32 0.03125, %v3934_v31 }
0x2cfc   :  { %4813 = vrsqrt.f32 %v3937_v61  ;;  %v3938_v30 = vadd.f32 1e-05, %v3936_v10 }
0x2cfe   :  { %4815 = vrsqrt.f32 %v3938_v30 }
0x2d06   :  { %v4814_v18 = vpop.eup %4813 }
0x2d07   :  { %v3941_v33 = vmul.f32 %v4814_v18, %v3925_v16 }
0x2d08   :  { %v4816_v12 = vpop.eup %4815 }
0x2d09   :  { %v3942_v34 = vmul.f32 %v4816_v12, %v3926_v50  ;;  %v3947_v8 = vmul.f32 %v3946_v2, %v3941_v33 }
0x2d0b   :  { %v3948_v13 = vmul.f32 %v3946_v2, %v3942_v34  ;;  %v3953_v26 = vadd.f32 %v3952_v54, %v3947_v8 }
0x2d0d   :  { %v3954_v63 = vadd.f32 %v3952_v54, %v3948_v13  ;;  %3955 = vst.msk [vmem:[#allocation20] sm:$0xff] %vm253_vm1, %v3953_v26 }
0x2d0f   :  { %3956 = vst.msk [vmem:[#allocation20 + $0x8] sm:$0xff] %vm253_vm1, %v3954_v63 }
0x2d10   :  { %5070 = shalt.err (!%p5067_p8)
}
0x2d11   :  { %s5071_s11 = scalar_lea.hbm %s6162_s20, 256 }
0x2d12   :  { %p5072_p9 = scmp.ne.s32.totalorder %s6162_s20, %s5071_s11  ;;  %p5075_p10 = scmp.lt.u32.totalorder %s5071_s11, %s6162_s20 }
0x2d14   :  { %p5077_p11 = pnand %p5075_p10, %p5072_p9 }
0x2d16   :  { %5080 = shalt.err (!%p5077_p11)
}
0x2d17   :  { %s6182_s29 = smov 128  }
0x2d18   :  { %3968 = dma.vmem_to_hbm [thread:$0]  %s3963_s3, 256, %s6162_s20, [#allocation4], %s6182_s29, %s6182_s29, %s5102_s23  }
0x2d19   :  { %5093 = dma.done.wait [#allocation4], 256  }
0x2d1a   :  { %5094 = vsyncadd [#allocation4], 4294967040 }
0x2d1b   :  { %3972 = vsyncpa [#allocation3], 1 }
0x2d1c   :  { %3973 = vsyncpa [#allocation6], 1 }
0x2d1d   :  { %3974 = vsyncpa [#allocation9], 1 }
0x2d1e   :  { %3975 = vsyncpa [#allocation12], 1 }
0x2d1f   :  { %3976 = vsyncpa [#allocation15], 1 }
0x2d20   :  { %3977 = vsyncpa [#allocation18], 1 }
0x2d21   :  { %3978 = vsyncpa [#allocation4], 1 }

</bundles_post_ra>
